<compile_context>
chip_gen: v7x
topology: tpu7x:2x2x1
jax: 0.10.0
libtpu: 0.0.40
codegen_flags: <defaults>
</compile_context>

<pallas_src>
import functools
import math

import jax
import jax.numpy as jnp
from jax.experimental import pallas as pl
from jax.experimental.pallas import tpu as pltpu


# ----------------------------------------------------------------------------
# shared elementwise helpers (used by kernel and JAX reference -> same numerics)
# ----------------------------------------------------------------------------
def _sigmoid(x):
    return 1.0 / (1.0 + jnp.exp(-x))


def _softplus(x):
    return jnp.where(x > 20.0, x, jnp.log(1.0 + jnp.exp(jnp.minimum(x, 20.0))))


# ----------------------------------------------------------------------------
# flatten_for_scan('yz-diag') / module's unflatten, as XLA index plumbing
# ----------------------------------------------------------------------------
def _flatten_yz_diag(x):
    # x: (B, C, D, H, W) -> (B, L, C), L = D*H*W, in the module's yz-diag order.
    B, C, D_, H, W = x.shape
    x_perm = jnp.transpose(x, (0, 1, 4, 3, 2))          # (B, C, X=W, Y=H, Z=D)
    X, Y, Z = W, H, D_
    zz, yy = jnp.meshgrid(jnp.arange(Z), jnp.arange(Y), indexing="ij")
    diag_order = jnp.argsort((zz + yy).reshape(-1))
    x_flat = x_perm.reshape(B, C, X, Y * Z)[:, :, :, diag_order]
    return jnp.transpose(x_flat.reshape(B, C, -1), (0, 2, 1))


def _unflatten_yz_diag_from_cl(y_cl, img_dims):
    # y_cl: (B, C, L).  Replicates exactly what MambaLayer.forward does for
    # 'yz-diag': x_mamba.transpose(-1,-2).reshape(B,C,D,H,W) followed by
    # unpermute = reshape(B,C,W,H,D).permute(0,1,4,3,2)  (no inverse diag gather).
    B, C, L = y_cl.shape
    D_, H, W = img_dims
    out = y_cl.reshape(B, C, W, H, D_)
    return jnp.transpose(out, (0, 1, 4, 3, 2))          # (B, C, D, H, W)


# ----------------------------------------------------------------------------
# fused Mamba-layer Pallas kernel (one batch element per grid step)
# ----------------------------------------------------------------------------
def _mamba_layer_kernel(
    x_ref, gamma_ref, beta_ref, w_in_ref, convw_ref, convb_ref,
    w_dbc_ref, bdelta_ref, at_ref, dskip_ref, wout_ref,
    o_ref,
    delta_sc, du_sc, b_sc, c_sc, ys_sc,
    *, chunk,
):
    f32 = jnp.float32
    L = x_ref.shape[1]
    DI = du_sc.shape[1]
    DS = at_ref.shape[0]
    d_conv = convw_ref.shape[0]
    mm_dtype = w_in_ref.dtype                                   # f32 or bf16 MXU feed

    # ---- LayerNorm over channels (lane axis); upcast happens here, in VMEM ----
    xb = x_ref[0].astype(f32)                                   # (L, C)
    mu = jnp.mean(xb, axis=-1, keepdims=True)
    cen = xb - mu
    var = jnp.mean(cen * cen, axis=-1, keepdims=True)
    xn = cen * jax.lax.rsqrt(var + 1e-5) * gamma_ref[...] + beta_ref[...]

    # ---- fused in_proj: one (L,C)@(C,2*DI) matmul, static split into x / gate z ----
    xz = jnp.dot(xn.astype(mm_dtype), w_in_ref[...], preferred_element_type=f32)
    x_in = xz[:, :DI]                                           # (L, DI)
    z = xz[:, DI:]                                              # (L, DI)

    # ---- depthwise causal conv1d + SiLU, from the in-register value:
    #      shifted copies via pltpu.roll (XLU slot) + mask of the first rows ----
    row = jax.lax.broadcasted_iota(jnp.int32, (L, 1), 0)        # hoisted once
    x_c = convb_ref[...] + convw_ref[d_conv - 1:d_conv, :] * x_in
    for k in range(d_conv - 1):                                 # static unroll
        shift = d_conv - 1 - k
        shifted = pltpu.roll(x_in, shift=shift, axis=0)
        shifted = jnp.where(row < shift, 0.0, shifted)
        x_c = x_c + convw_ref[k:k + 1, :] * shifted
    x_c = x_c * _sigmoid(x_c)                                   # SiLU

    # ---- fused x_proj / dt_proj: one (L,DI)@(DI,DI+2*DS) matmul, static split ----
    dbc = jnp.dot(x_c.astype(mm_dtype), w_dbc_ref[...], preferred_element_type=f32)
    delta = _softplus(dbc[:, :DI] + bdelta_ref[...])            # (L, DI)

    # stage per-chunk operands in VMEM scratch (aligned sublane-dynamic pl.ds reads)
    delta_sc[...] = delta
    du_sc[...] = delta * x_c
    b_sc[...] = dbc[:, DI:DI + DS]
    c_sc[...] = dbc[:, DI + DS:]

    At = at_ref[...]                                            # (DS, DI), hoisted

    # ---- selective scan: chunked recurrence, state carried in registers ----
    n_chunks = L // chunk

    def chunk_step(ci, state):
        base = pl.multiple_of(ci * chunk, chunk)
        d_blk = delta_sc[pl.ds(base, chunk), :]                 # (T, DI)
        du_blk = du_sc[pl.ds(base, chunk), :]                   # (T, DI)
        b_blk = b_sc[pl.ds(base, chunk), :]                     # (T, DS)
        c_blk = c_sc[pl.ds(base, chunk), :]                     # (T, DS)

        # batched off the serial chain: all T exps at once (EUP), one tiny transpose
        dA_blk = jnp.exp(d_blk[:, None, :] * At[None, :, :])    # (T, DS, DI)
        bT_blk = jnp.transpose(b_blk)                           # (DS, T)

        ys_rows = []
        for t in range(chunk):                                  # static unroll
            dBu_t = bT_blk[:, t:t + 1] * du_blk[t:t + 1, :]     # (DS, DI) outer product
            state = dA_blk[t] * state + dBu_t                   # critical-path FMA only
            ys_rows.append(jnp.dot(c_blk[t:t + 1, :], state,
                                   preferred_element_type=f32)) # (1, DI), off-path MXU
        ys_sc[pl.ds(base, chunk), :] = jnp.concatenate(ys_rows, axis=0)   # one (T,DI) store
        return state

    jax.lax.fori_loop(0, n_chunks, chunk_step, jnp.zeros((DS, DI), f32))

    # ---- D skip, SiLU gate, out_proj; store lane-dense as (C, L) ----
    y = ys_sc[...] + x_c * dskip_ref[...]
    y = y * (z * _sigmoid(z))
    out = jnp.dot(y.astype(mm_dtype), wout_ref[...], preferred_element_type=f32)  # (L, C)
    o_ref[0] = jnp.transpose(out).astype(o_ref.dtype)           # (C, L): lane-dense store


# ----------------------------------------------------------------------------
# wrapper: MambaLayer.forward (scan_type='yz-diag')
# ----------------------------------------------------------------------------
def mamba_layer_forward(x, params, *, d_state=16, d_conv=4, expand=2,
                        scan_type="yz-diag", matmul_dtype=jnp.float32):
    if scan_type != "yz-diag":
        raise NotImplementedError("only the module-default 'yz-diag' scan is implemented")
    B, C, D_, H, W = x.shape
    L = D_ * H * W
    DI = expand * C
    R = math.ceil(C / 16)                        # dt_rank ("auto")
    f32 = jnp.float32

    # flatten is pure index plumbing; keep x in its original dtype (kernel upcasts)
    x_flat = _flatten_yz_diag(x)                 # (B, L, C)

    # torch-layout params -> matmul-ready, fused, lane-major kernel operands
    gamma = params["ln_gamma"].reshape(1, C).astype(f32)
    beta = params["ln_beta"].reshape(1, C).astype(f32)
    w_in = jnp.transpose(params["in_proj_w"].astype(f32)).astype(matmul_dtype)  # (C, 2*DI)
    conv_w = jnp.transpose(params["conv_w"][:, 0, :]).astype(f32)               # (d_conv, DI)
    conv_b = params["conv_b"].reshape(1, DI).astype(f32)
    w_xp = params["x_proj_w"].astype(f32)                                       # (R+2*DS, DI)
    w_dt = jnp.transpose(w_xp[:R])                                              # (DI, R)
    w_delta = w_dt @ jnp.transpose(params["dt_proj_w"].astype(f32))             # (DI, DI), f32
    w_b = jnp.transpose(w_xp[R:R + d_state])                                    # (DI, DS)
    w_c = jnp.transpose(w_xp[R + d_state:])                                     # (DI, DS)
    w_dbc = jnp.concatenate([w_delta, w_b, w_c], axis=1).astype(matmul_dtype)   # (DI, DI+2*DS)
    b_delta = params["dt_proj_b"].reshape(1, DI).astype(f32)
    a_t = jnp.transpose(-jnp.exp(params["A_log"].astype(f32)))                  # (DS, DI)
    d_skip = params["D"].reshape(1, DI).astype(f32)
    w_out = jnp.transpose(params["out_proj_w"].astype(f32)).astype(matmul_dtype)  # (DI, C)

    chunk = next(t for t in (8, 4, 2, 1) if L % t == 0)          # scan unroll/chunk factor

    operands = (x_flat, gamma, beta, w_in, conv_w, conv_b,
                w_dbc, b_delta, a_t, d_skip, w_out)
    in_specs = [pl.BlockSpec((1, L, C), lambda b: (b, 0, 0))]
    in_specs += [pl.BlockSpec(a.shape, lambda b: (0, 0)) for a in operands[1:]]  # VMEM-resident

    y_cl = pl.pallas_call(
        functools.partial(_mamba_layer_kernel, chunk=chunk),
        out_shape=jax.ShapeDtypeStruct((B, C, L), jnp.float32),
        grid_spec=pltpu.PrefetchScalarGridSpec(
            num_scalar_prefetch=0,
            grid=(B,),
            in_specs=in_specs,
            out_specs=pl.BlockSpec((1, C, L), lambda b: (b, 0, 0)),
            scratch_shapes=[
                pltpu.VMEM((L, DI), jnp.float32),                # delta
                pltpu.VMEM((L, DI), jnp.float32),                # delta * u
                pltpu.VMEM((L, d_state), jnp.float32),           # B rows
                pltpu.VMEM((L, d_state), jnp.float32),           # C rows
                pltpu.VMEM((L, DI), jnp.float32),                # scan outputs
            ],
        ),
        compiler_params=pltpu.CompilerParams(
            dimension_semantics=("parallel",)),                  # v7x: 2 TCs split batch
    )(*operands)

    return _unflatten_yz_diag_from_cl(y_cl, (D_, H, W))


# ----------------------------------------------------------------------------
# pure-JAX step-by-step reference (mirrors the torch module exactly)
# ----------------------------------------------------------------------------
def _reference_forward(x, p, *, d_state=16, d_conv=4, expand=2):
    x = x.astype(jnp.float32)
    B, C, D_, H, W = x.shape
    DI = expand * C
    R = math.ceil(C / 16)

    xf = _flatten_yz_diag(x)                                     # (B, L, C)
    L = xf.shape[1]
    mu = jnp.mean(xf, axis=-1, keepdims=True)
    var = jnp.mean((xf - mu) ** 2, axis=-1, keepdims=True)
    xn = (xf - mu) * jax.lax.rsqrt(var + 1e-5) * p["ln_gamma"] + p["ln_beta"]

    xz = xn @ p["in_proj_w"].T                                   # (B, L, 2*DI)
    x_in, z = xz[..., :DI], xz[..., DI:]

    xpad = jnp.pad(x_in, ((0, 0), (d_conv - 1, 0), (0, 0)))
    cw = p["conv_w"][:, 0, :]                                    # (DI, d_conv)
    x_c = jnp.zeros_like(x_in) + p["conv_b"][None, None, :]
    for k in range(d_conv):
        x_c = x_c + cw[:, k][None, None, :] * xpad[:, k:k + L, :]
    x_c = x_c * _sigmoid(x_c)

    dbc = x_c @ p["x_proj_w"].T
    dt_in = dbc[..., :R]
    b_m = dbc[..., R:R + d_state]
    c_m = dbc[..., R + d_state:]
    delta = _softplus(dt_in @ p["dt_proj_w"].T + p["dt_proj_b"])
    A = -jnp.exp(p["A_log"])                                     # (DI, DS)

    def step(state, inp):
        d_t, u_t, b_t, c_t = inp
        dA = jnp.exp(d_t[..., None] * A[None])
        dBu = (d_t * u_t)[..., None] * b_t[:, None, :]
        state = dA * state + dBu
        return state, jnp.einsum("bds,bs->bd", state, c_t)

    xs = (jnp.swapaxes(delta, 0, 1), jnp.swapaxes(x_c, 0, 1),
          jnp.swapaxes(b_m, 0, 1), jnp.swapaxes(c_m, 0, 1))
    _, ys = jax.lax.scan(step, jnp.zeros((B, DI, d_state), jnp.float32), xs)
    ys = jnp.swapaxes(ys, 0, 1)                                  # (B, L, DI)

    y = ys + x_c * p["D"][None, None, :]
    y = y * (z * _sigmoid(z))
    out = y @ p["out_proj_w"].T                                  # (B, L, C)
    return _unflatten_yz_diag_from_cl(jnp.transpose(out, (0, 2, 1)), (D_, H, W))


if __name__ == "__main__":
    key = jax.random.PRNGKey(0)
    ks = jax.random.split(key, 10)

    # MambaLayer(dim=16) with Mamba defaults (d_state=16, d_conv=4, expand=2),
    # scan_type='yz-diag'; input (B, C, D, H, W) = (2, 16, 4, 4, 8) -> L = 128.
    dim, d_state, d_conv, expand = 16, 16, 4, 2
    d_inner = expand * dim
    dt_rank = math.ceil(dim / 16)
    B, D_, H, W = 2, 4, 4, 8

    x = jax.random.normal(ks[0], (B, dim, D_, H, W), dtype=jnp.float32)

    params = {
        "ln_gamma": 1.0 + 0.1 * jax.random.normal(ks[1], (dim,), jnp.float32),
        "ln_beta": 0.1 * jax.random.normal(ks[2], (dim,), jnp.float32),
        "in_proj_w": 0.1 * jax.random.normal(ks[3], (2 * d_inner, dim), jnp.float32),
        "conv_w": 0.3 * jax.random.normal(ks[4], (d_inner, 1, d_conv), jnp.float32),
        "conv_b": 0.1 * jax.random.normal(ks[5], (d_inner,), jnp.float32),
        "x_proj_w": 0.1 * jax.random.normal(
            ks[6], (dt_rank + 2 * d_state, d_inner), jnp.float32),
        "dt_proj_w": 0.1 * jax.random.normal(ks[7], (d_inner, dt_rank), jnp.float32),
        "dt_proj_b": 0.5 + 0.1 * jax.random.normal(ks[8], (d_inner,), jnp.float32),
        "A_log": jnp.log(jnp.broadcast_to(
            jnp.arange(1, d_state + 1, dtype=jnp.float32), (d_inner, d_state))),
        "D": jnp.ones((d_inner,), jnp.float32),
        "out_proj_w": 0.1 * jax.random.normal(ks[9], (dim, d_inner), jnp.float32),
    }

    out = mamba_layer_forward(x, params, d_state=d_state, d_conv=d_conv, expand=expand)
    out = jax.block_until_ready(out)

    ref = _reference_forward(x, params, d_state=d_state, d_conv=d_conv, expand=expand)
    assert out.shape == (B, dim, D_, H, W), out.shape
    err = float(jnp.max(jnp.abs(out - ref)))
    assert err < 1e-3, f"max abs err {err}"
    print("KERNEL_OK")
</pallas_src>

<mosaic_0001>
module attributes {stable_mosaic.version = 11 : i64} {
  func.func @_mamba_layer_kernel(%arg0: i32, %arg1: memref<1x128x16xf32, #tpu.memory_space<vmem>>, %arg2: memref<1x16xf32, #tpu.memory_space<vmem>>, %arg3: memref<1x16xf32, #tpu.memory_space<vmem>>, %arg4: memref<16x64xf32, #tpu.memory_space<vmem>>, %arg5: memref<4x32xf32, #tpu.memory_space<vmem>>, %arg6: memref<1x32xf32, #tpu.memory_space<vmem>>, %arg7: memref<32x64xf32, #tpu.memory_space<vmem>>, %arg8: memref<1x32xf32, #tpu.memory_space<vmem>>, %arg9: memref<16x32xf32, #tpu.memory_space<vmem>>, %arg10: memref<1x32xf32, #tpu.memory_space<vmem>>, %arg11: memref<32x16xf32, #tpu.memory_space<vmem>>, %arg12: memref<1x16x128xf32, #tpu.memory_space<vmem>>, %arg13: memref<128x32xf32, #tpu.memory_space<vmem>>, %arg14: memref<128x32xf32, #tpu.memory_space<vmem>>, %arg15: memref<128x16xf32, #tpu.memory_space<vmem>>, %arg16: memref<128x16xf32, #tpu.memory_space<vmem>>, %arg17: memref<128x32xf32, #tpu.memory_space<vmem>>) attributes {dimension_semantics = [#tpu.dimension_semantics<parallel>], iteration_bounds = array<i64: 2>, scalar_prefetch = 0 : i64, scratch_operands = 5 : i64, tpu.core_type = #tpu.core_type<tc>, window_params = [{transform_indices = @transform_0, window_bounds = array<i64: 1, 128, 16>}, {pipeline_mode = #tpu.pipeline_mode<synchronous>, transform_indices = @transform_1, window_bounds = array<i64: 1, 16>}, {pipeline_mode = #tpu.pipeline_mode<synchronous>, transform_indices = @transform_2, window_bounds = array<i64: 1, 16>}, {pipeline_mode = #tpu.pipeline_mode<synchronous>, transform_indices = @transform_3, window_bounds = array<i64: 16, 64>}, {pipeline_mode = #tpu.pipeline_mode<synchronous>, transform_indices = @transform_4, window_bounds = array<i64: 4, 32>}, {pipeline_mode = #tpu.pipeline_mode<synchronous>, transform_indices = @transform_5, window_bounds = array<i64: 1, 32>}, {pipeline_mode = #tpu.pipeline_mode<synchronous>, transform_indices = @transform_6, window_bounds = array<i64: 32, 64>}, {pipeline_mode = #tpu.pipeline_mode<synchronous>, transform_indices = @transform_7, window_bounds = array<i64: 1, 32>}, {pipeline_mode = #tpu.pipeline_mode<synchronous>, transform_indices = @transform_8, window_bounds = array<i64: 16, 32>}, {pipeline_mode = #tpu.pipeline_mode<synchronous>, transform_indices = @transform_9, window_bounds = array<i64: 1, 32>}, {pipeline_mode = #tpu.pipeline_mode<synchronous>, transform_indices = @transform_10, window_bounds = array<i64: 32, 16>}, {transform_indices = @transform_11, window_bounds = array<i64: 1, 16, 128>}]} {
    %c0 = arith.constant 0 : index
    %c0_0 = arith.constant 0 : index
    %c0_1 = arith.constant 0 : index
    %0 = vector.load %arg1[%c0, %c0_0, %c0_1] : memref<1x128x16xf32, #tpu.memory_space<vmem>>, vector<1x128x16xf32>
    %1 = vector.shape_cast %0 : vector<1x128x16xf32> to vector<128x16xf32>
    %cst = arith.constant dense<0.000000e+00> : vector<128xf32>
    %2 = vector.multi_reduction <add>, %1, %cst [1] : vector<128x16xf32> to vector<128xf32>
    %3 = vector.shape_cast %2 : vector<128xf32> to vector<128x1xf32>
    %cst_2 = arith.constant 1.600000e+01 : f32
    %4 = vector.broadcast %cst_2 : f32 to vector<128x1xf32>
    %5 = arith.divf %3, %4 : vector<128x1xf32>
    %6 = vector.broadcast %5 : vector<128x1xf32> to vector<128x16xf32>
    %7 = arith.subf %1, %6 : vector<128x16xf32>
    %8 = arith.mulf %7, %7 : vector<128x16xf32>
    %cst_3 = arith.constant dense<0.000000e+00> : vector<128xf32>
    %9 = vector.multi_reduction <add>, %8, %cst_3 [1] : vector<128x16xf32> to vector<128xf32>
    %10 = vector.shape_cast %9 : vector<128xf32> to vector<128x1xf32>
    %cst_4 = arith.constant 1.600000e+01 : f32
    %11 = vector.broadcast %cst_4 : f32 to vector<128x1xf32>
    %12 = arith.divf %10, %11 : vector<128x1xf32>
    %cst_5 = arith.constant 9.99999974E-6 : f32
    %13 = vector.broadcast %cst_5 : f32 to vector<128x1xf32>
    %14 = arith.addf %12, %13 : vector<128x1xf32>
    %15 = math.rsqrt %14 : vector<128x1xf32>
    %16 = vector.broadcast %15 : vector<128x1xf32> to vector<128x16xf32>
    %17 = arith.mulf %7, %16 : vector<128x16xf32>
    %c0_6 = arith.constant 0 : index
    %c0_7 = arith.constant 0 : index
    %18 = vector.load %arg2[%c0_6, %c0_7] : memref<1x16xf32, #tpu.memory_space<vmem>>, vector<1x16xf32>
    %19 = vector.broadcast %18 : vector<1x16xf32> to vector<128x16xf32>
    %20 = arith.mulf %17, %19 : vector<128x16xf32>
    %c0_8 = arith.constant 0 : index
    %c0_9 = arith.constant 0 : index
    %21 = vector.load %arg3[%c0_8, %c0_9] : memref<1x16xf32, #tpu.memory_space<vmem>>, vector<1x16xf32>
    %22 = vector.broadcast %21 : vector<1x16xf32> to vector<128x16xf32>
    %23 = arith.addf %20, %22 : vector<128x16xf32>
    %c0_10 = arith.constant 0 : index
    %c0_11 = arith.constant 0 : index
    %24 = vector.load %arg4[%c0_10, %c0_11] : memref<16x64xf32, #tpu.memory_space<vmem>>, vector<16x64xf32>
    %cst_12 = arith.constant dense<0.000000e+00> : vector<128x64xf32>
    %25 = tpu.matmul %23, %24, %cst_12 {dimension_numbers = #tpu.dot_dimension_numbers<[1], [0], [0], [1], [0, 0, 1, 1], [], []>} : vector<128x16xf32>, vector<16x64xf32>, vector<128x64xf32> -> vector<128x64xf32>
    %26 = vector.extract_strided_slice %25 {offsets = [0, 0], sizes = [128, 32], strides = [1, 1]} : vector<128x64xf32> to vector<128x32xf32>
    %27 = vector.extract_strided_slice %25 {offsets = [0, 32], sizes = [128, 32], strides = [1, 1]} : vector<128x64xf32> to vector<128x32xf32>
    %28 = tpu.iota {dimensions = array<i32: 0>} : vector<128x1xi32>
    %c0_13 = arith.constant 0 : index
    %c0_14 = arith.constant 0 : index
    %29 = vector.load %arg6[%c0_13, %c0_14] : memref<1x32xf32, #tpu.memory_space<vmem>>, vector<1x32xf32>
    %c3 = arith.constant 3 : index
    %c0_15 = arith.constant 0 : index
    %30 = vector.load %arg5[%c3, %c0_15] : memref<4x32xf32, #tpu.memory_space<vmem>>, vector<1x32xf32>
    %31 = vector.broadcast %30 : vector<1x32xf32> to vector<128x32xf32>
    %32 = arith.mulf %31, %26 : vector<128x32xf32>
    %33 = vector.broadcast %29 : vector<1x32xf32> to vector<128x32xf32>
    %34 = arith.addf %33, %32 : vector<128x32xf32>
    %c3_i32 = arith.constant 3 : i32
    %35 = tpu.dynamic_rotate %26 by %c3_i32 dim 0 : vector<128x32xf32>, i32 -> vector<128x32xf32>
    %c3_i32_16 = arith.constant 3 : i32
    %36 = vector.broadcast %c3_i32_16 : i32 to vector<128x1xi32>
    %37 = arith.cmpi slt, %28, %36 : vector<128x1xi32>
    %cst_17 = arith.constant 0.000000e+00 : f32
    %38 = vector.shape_cast %37 : vector<128x1xi1> to vector<128x1xi1>
    %39 = vector.broadcast %38 : vector<128x1xi1> to vector<128x32xi1>
    %40 = vector.broadcast %cst_17 : f32 to vector<128x32xf32>
    %41 = arith.select %39, %40, %35 : vector<128x32xi1>, vector<128x32xf32>
    %c0_18 = arith.constant 0 : index
    %c0_19 = arith.constant 0 : index
    %42 = vector.load %arg5[%c0_18, %c0_19] : memref<4x32xf32, #tpu.memory_space<vmem>>, vector<1x32xf32>
    %43 = vector.broadcast %42 : vector<1x32xf32> to vector<128x32xf32>
    %44 = arith.mulf %43, %41 : vector<128x32xf32>
    %45 = arith.addf %34, %44 : vector<128x32xf32>
    %c2_i32 = arith.constant 2 : i32
    %46 = tpu.dynamic_rotate %26 by %c2_i32 dim 0 : vector<128x32xf32>, i32 -> vector<128x32xf32>
    %c2_i32_20 = arith.constant 2 : i32
    %47 = vector.broadcast %c2_i32_20 : i32 to vector<128x1xi32>
    %48 = arith.cmpi slt, %28, %47 : vector<128x1xi32>
    %cst_21 = arith.constant 0.000000e+00 : f32
    %49 = vector.shape_cast %48 : vector<128x1xi1> to vector<128x1xi1>
    %50 = vector.broadcast %49 : vector<128x1xi1> to vector<128x32xi1>
    %51 = vector.broadcast %cst_21 : f32 to vector<128x32xf32>
    %52 = arith.select %50, %51, %46 : vector<128x32xi1>, vector<128x32xf32>
    %c1 = arith.constant 1 : index
    %c0_22 = arith.constant 0 : index
    %53 = vector.load %arg5[%c1, %c0_22] : memref<4x32xf32, #tpu.memory_space<vmem>>, vector<1x32xf32>
    %54 = vector.broadcast %53 : vector<1x32xf32> to vector<128x32xf32>
    %55 = arith.mulf %54, %52 : vector<128x32xf32>
    %56 = arith.addf %45, %55 : vector<128x32xf32>
    %c1_i32 = arith.constant 1 : i32
    %57 = tpu.dynamic_rotate %26 by %c1_i32 dim 0 : vector<128x32xf32>, i32 -> vector<128x32xf32>
    %c1_i32_23 = arith.constant 1 : i32
    %58 = vector.broadcast %c1_i32_23 : i32 to vector<128x1xi32>
    %59 = arith.cmpi slt, %28, %58 : vector<128x1xi32>
    %cst_24 = arith.constant 0.000000e+00 : f32
    %60 = vector.shape_cast %59 : vector<128x1xi1> to vector<128x1xi1>
    %61 = vector.broadcast %60 : vector<128x1xi1> to vector<128x32xi1>
    %62 = vector.broadcast %cst_24 : f32 to vector<128x32xf32>
    %63 = arith.select %61, %62, %57 : vector<128x32xi1>, vector<128x32xf32>
    %c2 = arith.constant 2 : index
    %c0_25 = arith.constant 0 : index
    %64 = vector.load %arg5[%c2, %c0_25] : memref<4x32xf32, #tpu.memory_space<vmem>>, vector<1x32xf32>
    %65 = vector.broadcast %64 : vector<1x32xf32> to vector<128x32xf32>
    %66 = arith.mulf %65, %63 : vector<128x32xf32>
    %67 = arith.addf %56, %66 : vector<128x32xf32>
    %cst_26 = arith.constant 0.000000e+00 : f32
    %68 = vector.broadcast %cst_26 : f32 to vector<128x32xf32>
    %69 = arith.subf %68, %67 : vector<128x32xf32>
    %70 = math.exp %69 : vector<128x32xf32>
    %cst_27 = arith.constant 1.000000e+00 : f32
    %71 = vector.broadcast %cst_27 : f32 to vector<128x32xf32>
    %72 = arith.addf %71, %70 : vector<128x32xf32>
    %cst_28 = arith.constant 1.000000e+00 : f32
    %73 = vector.broadcast %cst_28 : f32 to vector<128x32xf32>
    %74 = arith.divf %73, %72 : vector<128x32xf32>
    %75 = arith.mulf %67, %74 : vector<128x32xf32>
    %c0_29 = arith.constant 0 : index
    %c0_30 = arith.constant 0 : index
    %76 = vector.load %arg7[%c0_29, %c0_30] : memref<32x64xf32, #tpu.memory_space<vmem>>, vector<32x64xf32>
    %cst_31 = arith.constant dense<0.000000e+00> : vector<128x64xf32>
    %77 = tpu.matmul %75, %76, %cst_31 {dimension_numbers = #tpu.dot_dimension_numbers<[1], [0], [0], [1], [0, 0, 1, 1], [], []>} : vector<128x32xf32>, vector<32x64xf32>, vector<128x64xf32> -> vector<128x64xf32>
    %78 = vector.extract_strided_slice %77 {offsets = [0, 0], sizes = [128, 32], strides = [1, 1]} : vector<128x64xf32> to vector<128x32xf32>
    %c0_32 = arith.constant 0 : index
    %c0_33 = arith.constant 0 : index
    %79 = vector.load %arg8[%c0_32, %c0_33] : memref<1x32xf32, #tpu.memory_space<vmem>>, vector<1x32xf32>
    %80 = vector.broadcast %79 : vector<1x32xf32> to vector<128x32xf32>
    %81 = arith.addf %78, %80 : vector<128x32xf32>
    %cst_34 = arith.constant 2.000000e+01 : f32
    %82 = vector.broadcast %cst_34 : f32 to vector<128x32xf32>
    %83 = arith.cmpf ogt, %81, %82 : vector<128x32xf32>
    %cst_35 = arith.constant 2.000000e+01 : f32
    %84 = vector.broadcast %cst_35 : f32 to vector<128x32xf32>
    %85 = arith.minimumf %81, %84 : vector<128x32xf32>
    %86 = math.exp %85 : vector<128x32xf32>
    %cst_36 = arith.constant 1.000000e+00 : f32
    %87 = vector.broadcast %cst_36 : f32 to vector<128x32xf32>
    %88 = arith.addf %87, %86 : vector<128x32xf32>
    %89 = math.log %88 : vector<128x32xf32>
    %90 = arith.select %83, %81, %89 : vector<128x32xi1>, vector<128x32xf32>
    %c0_37 = arith.constant 0 : index
    %c0_38 = arith.constant 0 : index
    %91 = vector.load %arg13[%c0_37, %c0_38] : memref<128x32xf32, #tpu.memory_space<vmem>>, vector<128x32xf32>
    tpu.vector_store %arg13[%c0_37, %c0_38], %90 {strides = array<i32>} : memref<128x32xf32, #tpu.memory_space<vmem>>, vector<128x32xf32>,
    %92 = arith.mulf %90, %75 : vector<128x32xf32>
    %c0_39 = arith.constant 0 : index
    %c0_40 = arith.constant 0 : index
    %93 = vector.load %arg14[%c0_39, %c0_40] : memref<128x32xf32, #tpu.memory_space<vmem>>, vector<128x32xf32>
    tpu.vector_store %arg14[%c0_39, %c0_40], %92 {strides = array<i32>} : memref<128x32xf32, #tpu.memory_space<vmem>>, vector<128x32xf32>,
    %94 = vector.extract_strided_slice %77 {offsets = [0, 32], sizes = [128, 16], strides = [1, 1]} : vector<128x64xf32> to vector<128x16xf32>
    %c0_41 = arith.constant 0 : index
    %c0_42 = arith.constant 0 : index
    %95 = vector.load %arg15[%c0_41, %c0_42] : memref<128x16xf32, #tpu.memory_space<vmem>>, vector<128x16xf32>
    tpu.vector_store %arg15[%c0_41, %c0_42], %94 {strides = array<i32>} : memref<128x16xf32, #tpu.memory_space<vmem>>, vector<128x16xf32>,
    %96 = vector.extract_strided_slice %77 {offsets = [0, 48], sizes = [128, 16], strides = [1, 1]} : vector<128x64xf32> to vector<128x16xf32>
    %c0_43 = arith.constant 0 : index
    %c0_44 = arith.constant 0 : index
    %97 = vector.load %arg16[%c0_43, %c0_44] : memref<128x16xf32, #tpu.memory_space<vmem>>, vector<128x16xf32>
    tpu.vector_store %arg16[%c0_43, %c0_44], %96 {strides = array<i32>} : memref<128x16xf32, #tpu.memory_space<vmem>>, vector<128x16xf32>,
    %c0_45 = arith.constant 0 : index
    %c0_46 = arith.constant 0 : index
    %98 = vector.load %arg9[%c0_45, %c0_46] : memref<16x32xf32, #tpu.memory_space<vmem>>, vector<16x32xf32>
    %cst_47 = arith.constant 0.000000e+00 : f32
    %99 = vector.broadcast %cst_47 : f32 to vector<16x32xf32>
    %c0_i32 = arith.constant 0 : i32
    %c16_i32 = arith.constant 16 : i32
    %100 = arith.addi %c0_i32, %c16_i32 : i32
    %c1_i32_48 = arith.constant 1 : i32
    %101 = scf.for %arg18 = %c0_i32 to %100 step %c1_i32_48 iter_args(%arg19 = %99) -> (vector<16x32xf32>)  : i32 {
      %c8_i32 = arith.constant 8 : i32
      %122 = arith.muli %arg18, %c8_i32 : i32
      %123 = tpu.assume_multiple %122, 8 : i32
      %124 = arith.index_cast %123 : i32 to index
      %c0_63 = arith.constant 0 : index
      %125 = vector.load %arg13[%124, %c0_63] : memref<128x32xf32, #tpu.memory_space<vmem>>, vector<8x32xf32>
      %126 = arith.index_cast %123 : i32 to index
      %c0_64 = arith.constant 0 : index
      %127 = vector.load %arg14[%126, %c0_64] : memref<128x32xf32, #tpu.memory_space<vmem>>, vector<8x32xf32>
      %128 = arith.index_cast %123 : i32 to index
      %c0_65 = arith.constant 0 : index
      %129 = vector.load %arg15[%128, %c0_65] : memref<128x16xf32, #tpu.memory_space<vmem>>, vector<8x16xf32>
      %130 = arith.index_cast %123 : i32 to index
      %c0_66 = arith.constant 0 : index
      %131 = vector.load %arg16[%130, %c0_66] : memref<128x16xf32, #tpu.memory_space<vmem>>, vector<8x16xf32>
      %132 = vector.shape_cast %125 : vector<8x32xf32> to vector<8x1x32xf32>
      %133 = vector.shape_cast %98 : vector<16x32xf32> to vector<1x16x32xf32>
      %134 = vector.broadcast %132 : vector<8x1x32xf32> to vector<8x16x32xf32>
      %135 = vector.broadcast %133 : vector<1x16x32xf32> to vector<8x16x32xf32>
      %136 = arith.mulf %134, %135 : vector<8x16x32xf32>
      %137 = math.exp %136 : vector<8x16x32xf32>
      %138 = tpu.transpose %129, [1, 0] : vector<8x16xf32> -> vector<16x8xf32>
      %139 = vector.extract_strided_slice %138 {offsets = [0, 0], sizes = [16, 1], strides = [1, 1]} : vector<16x8xf32> to vector<16x1xf32>
      %140 = vector.extract_strided_slice %127 {offsets = [0, 0], sizes = [1, 32], strides = [1, 1]} : vector<8x32xf32> to vector<1x32xf32>
      %141 = vector.broadcast %139 : vector<16x1xf32> to vector<16x32xf32>
      %142 = vector.broadcast %140 : vector<1x32xf32> to vector<16x32xf32>
      %143 = arith.mulf %141, %142 : vector<16x32xf32>
      %144 = vector.extract_strided_slice %137 {offsets = [0, 0, 0], sizes = [1, 16, 32], strides = [1, 1, 1]} : vector<8x16x32xf32> to vector<1x16x32xf32>
      %145 = vector.shape_cast %144 : vector<1x16x32xf32> to vector<16x32xf32>
      %146 = arith.mulf %145, %arg19 : vector<16x32xf32>
      %147 = arith.addf %146, %143 : vector<16x32xf32>
      %148 = vector.extract_strided_slice %131 {offsets = [0, 0], sizes = [1, 16], strides = [1, 1]} : vector<8x16xf32> to vector<1x16xf32>
      %cst_67 = arith.constant dense<0.000000e+00> : vector<1x32xf32>
      %149 = tpu.matmul %148, %147, %cst_67 {dimension_numbers = #tpu.dot_dimension_numbers<[1], [0], [0], [1], [0, 0, 1, 1], [], []>} : vector<1x16xf32>, vector<16x32xf32>, vector<1x32xf32> -> vector<1x32xf32>
      %150 = vector.extract_strided_slice %138 {offsets = [0, 1], sizes = [16, 1], strides = [1, 1]} : vector<16x8xf32> to vector<16x1xf32>
      %151 = vector.extract_strided_slice %127 {offsets = [1, 0], sizes = [1, 32], strides = [1, 1]} : vector<8x32xf32> to vector<1x32xf32>
      %152 = vector.broadcast %150 : vector<16x1xf32> to vector<16x32xf32>
      %153 = vector.broadcast %151 : vector<1x32xf32> to vector<16x32xf32>
      %154 = arith.mulf %152, %153 : vector<16x32xf32>
      %155 = vector.extract_strided_slice %137 {offsets = [1, 0, 0], sizes = [1, 16, 32], strides = [1, 1, 1]} : vector<8x16x32xf32> to vector<1x16x32xf32>
      %156 = vector.shape_cast %155 : vector<1x16x32xf32> to vector<16x32xf32>
      %157 = arith.mulf %156, %147 : vector<16x32xf32>
      %158 = arith.addf %157, %154 : vector<16x32xf32>
      %159 = vector.extract_strided_slice %131 {offsets = [1, 0], sizes = [1, 16], strides = [1, 1]} : vector<8x16xf32> to vector<1x16xf32>
      %cst_68 = arith.constant dense<0.000000e+00> : vector<1x32xf32>
      %160 = tpu.matmul %159, %158, %cst_68 {dimension_numbers = #tpu.dot_dimension_numbers<[1], [0], [0], [1], [0, 0, 1, 1], [], []>} : vector<1x16xf32>, vector<16x32xf32>, vector<1x32xf32> -> vector<1x32xf32>
      %161 = vector.extract_strided_slice %138 {offsets = [0, 2], sizes = [16, 1], strides = [1, 1]} : vector<16x8xf32> to vector<16x1xf32>
      %162 = vector.extract_strided_slice %127 {offsets = [2, 0], sizes = [1, 32], strides = [1, 1]} : vector<8x32xf32> to vector<1x32xf32>
      %163 = vector.broadcast %161 : vector<16x1xf32> to vector<16x32xf32>
      %164 = vector.broadcast %162 : vector<1x32xf32> to vector<16x32xf32>
      %165 = arith.mulf %163, %164 : vector<16x32xf32>
      %166 = vector.extract_strided_slice %137 {offsets = [2, 0, 0], sizes = [1, 16, 32], strides = [1, 1, 1]} : vector<8x16x32xf32> to vector<1x16x32xf32>
      %167 = vector.shape_cast %166 : vector<1x16x32xf32> to vector<16x32xf32>
      %168 = arith.mulf %167, %158 : vector<16x32xf32>
      %169 = arith.addf %168, %165 : vector<16x32xf32>
      %170 = vector.extract_strided_slice %131 {offsets = [2, 0], sizes = [1, 16], strides = [1, 1]} : vector<8x16xf32> to vector<1x16xf32>
      %cst_69 = arith.constant dense<0.000000e+00> : vector<1x32xf32>
      %171 = tpu.matmul %170, %169, %cst_69 {dimension_numbers = #tpu.dot_dimension_numbers<[1], [0], [0], [1], [0, 0, 1, 1], [], []>} : vector<1x16xf32>, vector<16x32xf32>, vector<1x32xf32> -> vector<1x32xf32>
      %172 = vector.extract_strided_slice %138 {offsets = [0, 3], sizes = [16, 1], strides = [1, 1]} : vector<16x8xf32> to vector<16x1xf32>
      %173 = vector.extract_strided_slice %127 {offsets = [3, 0], sizes = [1, 32], strides = [1, 1]} : vector<8x32xf32> to vector<1x32xf32>
      %174 = vector.broadcast %172 : vector<16x1xf32> to vector<16x32xf32>
      %175 = vector.broadcast %173 : vector<1x32xf32> to vector<16x32xf32>
      %176 = arith.mulf %174, %175 : vector<16x32xf32>
      %177 = vector.extract_strided_slice %137 {offsets = [3, 0, 0], sizes = [1, 16, 32], strides = [1, 1, 1]} : vector<8x16x32xf32> to vector<1x16x32xf32>
      %178 = vector.shape_cast %177 : vector<1x16x32xf32> to vector<16x32xf32>
      %179 = arith.mulf %178, %169 : vector<16x32xf32>
      %180 = arith.addf %179, %176 : vector<16x32xf32>
      %181 = vector.extract_strided_slice %131 {offsets = [3, 0], sizes = [1, 16], strides = [1, 1]} : vector<8x16xf32> to vector<1x16xf32>
      %cst_70 = arith.constant dense<0.000000e+00> : vector<1x32xf32>
      %182 = tpu.matmul %181, %180, %cst_70 {dimension_numbers = #tpu.dot_dimension_numbers<[1], [0], [0], [1], [0, 0, 1, 1], [], []>} : vector<1x16xf32>, vector<16x32xf32>, vector<1x32xf32> -> vector<1x32xf32>
      %183 = vector.extract_strided_slice %138 {offsets = [0, 4], sizes = [16, 1], strides = [1, 1]} : vector<16x8xf32> to vector<16x1xf32>
      %184 = vector.extract_strided_slice %127 {offsets = [4, 0], sizes = [1, 32], strides = [1, 1]} : vector<8x32xf32> to vector<1x32xf32>
      %185 = vector.broadcast %183 : vector<16x1xf32> to vector<16x32xf32>
      %186 = vector.broadcast %184 : vector<1x32xf32> to vector<16x32xf32>
      %187 = arith.mulf %185, %186 : vector<16x32xf32>
      %188 = vector.extract_strided_slice %137 {offsets = [4, 0, 0], sizes = [1, 16, 32], strides = [1, 1, 1]} : vector<8x16x32xf32> to vector<1x16x32xf32>
      %189 = vector.shape_cast %188 : vector<1x16x32xf32> to vector<16x32xf32>
      %190 = arith.mulf %189, %180 : vector<16x32xf32>
      %191 = arith.addf %190, %187 : vector<16x32xf32>
      %192 = vector.extract_strided_slice %131 {offsets = [4, 0], sizes = [1, 16], strides = [1, 1]} : vector<8x16xf32> to vector<1x16xf32>
      %cst_71 = arith.constant dense<0.000000e+00> : vector<1x32xf32>
      %193 = tpu.matmul %192, %191, %cst_71 {dimension_numbers = #tpu.dot_dimension_numbers<[1], [0], [0], [1], [0, 0, 1, 1], [], []>} : vector<1x16xf32>, vector<16x32xf32>, vector<1x32xf32> -> vector<1x32xf32>
      %194 = vector.extract_strided_slice %138 {offsets = [0, 5], sizes = [16, 1], strides = [1, 1]} : vector<16x8xf32> to vector<16x1xf32>
      %195 = vector.extract_strided_slice %127 {offsets = [5, 0], sizes = [1, 32], strides = [1, 1]} : vector<8x32xf32> to vector<1x32xf32>
      %196 = vector.broadcast %194 : vector<16x1xf32> to vector<16x32xf32>
      %197 = vector.broadcast %195 : vector<1x32xf32> to vector<16x32xf32>
      %198 = arith.mulf %196, %197 : vector<16x32xf32>
      %199 = vector.extract_strided_slice %137 {offsets = [5, 0, 0], sizes = [1, 16, 32], strides = [1, 1, 1]} : vector<8x16x32xf32> to vector<1x16x32xf32>
      %200 = vector.shape_cast %199 : vector<1x16x32xf32> to vector<16x32xf32>
      %201 = arith.mulf %200, %191 : vector<16x32xf32>
      %202 = arith.addf %201, %198 : vector<16x32xf32>
      %203 = vector.extract_strided_slice %131 {offsets = [5, 0], sizes = [1, 16], strides = [1, 1]} : vector<8x16xf32> to vector<1x16xf32>
      %cst_72 = arith.constant dense<0.000000e+00> : vector<1x32xf32>
      %204 = tpu.matmul %203, %202, %cst_72 {dimension_numbers = #tpu.dot_dimension_numbers<[1], [0], [0], [1], [0, 0, 1, 1], [], []>} : vector<1x16xf32>, vector<16x32xf32>, vector<1x32xf32> -> vector<1x32xf32>
      %205 = vector.extract_strided_slice %138 {offsets = [0, 6], sizes = [16, 1], strides = [1, 1]} : vector<16x8xf32> to vector<16x1xf32>
      %206 = vector.extract_strided_slice %127 {offsets = [6, 0], sizes = [1, 32], strides = [1, 1]} : vector<8x32xf32> to vector<1x32xf32>
      %207 = vector.broadcast %205 : vector<16x1xf32> to vector<16x32xf32>
      %208 = vector.broadcast %206 : vector<1x32xf32> to vector<16x32xf32>
      %209 = arith.mulf %207, %208 : vector<16x32xf32>
      %210 = vector.extract_strided_slice %137 {offsets = [6, 0, 0], sizes = [1, 16, 32], strides = [1, 1, 1]} : vector<8x16x32xf32> to vector<1x16x32xf32>
      %211 = vector.shape_cast %210 : vector<1x16x32xf32> to vector<16x32xf32>
      %212 = arith.mulf %211, %202 : vector<16x32xf32>
      %213 = arith.addf %212, %209 : vector<16x32xf32>
      %214 = vector.extract_strided_slice %131 {offsets = [6, 0], sizes = [1, 16], strides = [1, 1]} : vector<8x16xf32> to vector<1x16xf32>
      %cst_73 = arith.constant dense<0.000000e+00> : vector<1x32xf32>
      %215 = tpu.matmul %214, %213, %cst_73 {dimension_numbers = #tpu.dot_dimension_numbers<[1], [0], [0], [1], [0, 0, 1, 1], [], []>} : vector<1x16xf32>, vector<16x32xf32>, vector<1x32xf32> -> vector<1x32xf32>
      %216 = vector.extract_strided_slice %138 {offsets = [0, 7], sizes = [16, 1], strides = [1, 1]} : vector<16x8xf32> to vector<16x1xf32>
      %217 = vector.extract_strided_slice %127 {offsets = [7, 0], sizes = [1, 32], strides = [1, 1]} : vector<8x32xf32> to vector<1x32xf32>
      %218 = vector.broadcast %216 : vector<16x1xf32> to vector<16x32xf32>
      %219 = vector.broadcast %217 : vector<1x32xf32> to vector<16x32xf32>
      %220 = arith.mulf %218, %219 : vector<16x32xf32>
      %221 = vector.extract_strided_slice %137 {offsets = [7, 0, 0], sizes = [1, 16, 32], strides = [1, 1, 1]} : vector<8x16x32xf32> to vector<1x16x32xf32>
      %222 = vector.shape_cast %221 : vector<1x16x32xf32> to vector<16x32xf32>
      %223 = arith.mulf %222, %213 : vector<16x32xf32>
      %224 = arith.addf %223, %220 : vector<16x32xf32>
      %225 = vector.extract_strided_slice %131 {offsets = [7, 0], sizes = [1, 16], strides = [1, 1]} : vector<8x16xf32> to vector<1x16xf32>
      %cst_74 = arith.constant dense<0.000000e+00> : vector<1x32xf32>
      %226 = tpu.matmul %225, %224, %cst_74 {dimension_numbers = #tpu.dot_dimension_numbers<[1], [0], [0], [1], [0, 0, 1, 1], [], []>} : vector<1x16xf32>, vector<16x32xf32>, vector<1x32xf32> -> vector<1x32xf32>
      %227 = tpu.concatenate %149, %160, %171, %182, %193, %204, %215, %226 in 0 : vector<1x32xf32>, vector<1x32xf32>, vector<1x32xf32>, vector<1x32xf32>, vector<1x32xf32>, vector<1x32xf32>, vector<1x32xf32>, vector<1x32xf32> -> vector<8x32xf32>
      %228 = arith.index_cast %123 : i32 to index
      %c0_75 = arith.constant 0 : index
      %229 = vector.load %arg17[%228, %c0_75] : memref<128x32xf32, #tpu.memory_space<vmem>>, vector<8x32xf32>
      tpu.vector_store %arg17[%228, %c0_75], %227 {strides = array<i32>} : memref<128x32xf32, #tpu.memory_space<vmem>>, vector<8x32xf32>,
      scf.yield %224 : vector<16x32xf32>
    }
    %c16_i32_49 = arith.constant 16 : i32
    %c0_50 = arith.constant 0 : index
    %c0_51 = arith.constant 0 : index
    %102 = vector.load %arg17[%c0_50, %c0_51] : memref<128x32xf32, #tpu.memory_space<vmem>>, vector<128x32xf32>
    %c0_52 = arith.constant 0 : index
    %c0_53 = arith.constant 0 : index
    %103 = vector.load %arg10[%c0_52, %c0_53] : memref<1x32xf32, #tpu.memory_space<vmem>>, vector<1x32xf32>
    %104 = vector.broadcast %103 : vector<1x32xf32> to vector<128x32xf32>
    %105 = arith.mulf %75, %104 : vector<128x32xf32>
    %106 = arith.addf %102, %105 : vector<128x32xf32>
    %cst_54 = arith.constant 0.000000e+00 : f32
    %107 = vector.broadcast %cst_54 : f32 to vector<128x32xf32>
    %108 = arith.subf %107, %27 : vector<128x32xf32>
    %109 = math.exp %108 : vector<128x32xf32>
    %cst_55 = arith.constant 1.000000e+00 : f32
    %110 = vector.broadcast %cst_55 : f32 to vector<128x32xf32>
    %111 = arith.addf %110, %109 : vector<128x32xf32>
    %cst_56 = arith.constant 1.000000e+00 : f32
    %112 = vector.broadcast %cst_56 : f32 to vector<128x32xf32>
    %113 = arith.divf %112, %111 : vector<128x32xf32>
    %114 = arith.mulf %27, %113 : vector<128x32xf32>
    %115 = arith.mulf %106, %114 : vector<128x32xf32>
    %c0_57 = arith.constant 0 : index
    %c0_58 = arith.constant 0 : index
    %116 = vector.load %arg11[%c0_57, %c0_58] : memref<32x16xf32, #tpu.memory_space<vmem>>, vector<32x16xf32>
    %cst_59 = arith.constant dense<0.000000e+00> : vector<128x16xf32>
    %117 = tpu.matmul %115, %116, %cst_59 {dimension_numbers = #tpu.dot_dimension_numbers<[1], [0], [0], [1], [0, 0, 1, 1], [], []>} : vector<128x32xf32>, vector<32x16xf32>, vector<128x16xf32> -> vector<128x16xf32>
    %118 = tpu.transpose %117, [1, 0] : vector<128x16xf32> -> vector<16x128xf32>
    %c0_60 = arith.constant 0 : index
    %c0_61 = arith.constant 0 : index
    %c0_62 = arith.constant 0 : index
    %119 = vector.load %arg12[%c0_60, %c0_61, %c0_62] : memref<1x16x128xf32, #tpu.memory_space<vmem>>, vector<1x16x128xf32>
    %120 = vector.shape_cast %119 : vector<1x16x128xf32> to vector<16x128xf32>
    %121 = vector.shape_cast %118 : vector<16x128xf32> to vector<1x16x128xf32>
    tpu.vector_store %arg12[%c0_60, %c0_61, %c0_62], %121 {strides = array<i32>} : memref<1x16x128xf32, #tpu.memory_space<vmem>>, vector<1x16x128xf32>,
    return
  }
  func.func @transform_0(%arg0: i32) -> (i32, i32, i32) {
    %c0_i32 = arith.constant 0 : i32
    %c0_i32_0 = arith.constant 0 : i32
    %c0_i32_1 = arith.constant 0 : i32
    return %arg0, %c0_i32, %c0_i32_0 : i32, i32, i32
  }
  func.func @transform_1(%arg0: i32) -> (i32, i32) {
    %c0_i32 = arith.constant 0 : i32
    %c0_i32_0 = arith.constant 0 : i32
    %c0_i32_1 = arith.constant 0 : i32
    return %c0_i32, %c0_i32_0 : i32, i32
  }
  func.func @transform_2(%arg0: i32) -> (i32, i32) {
    %c0_i32 = arith.constant 0 : i32
    %c0_i32_0 = arith.constant 0 : i32
    %c0_i32_1 = arith.constant 0 : i32
    return %c0_i32, %c0_i32_0 : i32, i32
  }
  func.func @transform_3(%arg0: i32) -> (i32, i32) {
    %c0_i32 = arith.constant 0 : i32
    %c0_i32_0 = arith.constant 0 : i32
    %c0_i32_1 = arith.constant 0 : i32
    return %c0_i32, %c0_i32_0 : i32, i32
  }
  func.func @transform_4(%arg0: i32) -> (i32, i32) {
    %c0_i32 = arith.constant 0 : i32
    %c0_i32_0 = arith.constant 0 : i32
    %c0_i32_1 = arith.constant 0 : i32
    return %c0_i32, %c0_i32_0 : i32, i32
  }
  func.func @transform_5(%arg0: i32) -> (i32, i32) {
    %c0_i32 = arith.constant 0 : i32
    %c0_i32_0 = arith.constant 0 : i32
    %c0_i32_1 = arith.constant 0 : i32
    return %c0_i32, %c0_i32_0 : i32, i32
  }
  func.func @transform_6(%arg0: i32) -> (i32, i32) {
    %c0_i32 = arith.constant 0 : i32
    %c0_i32_0 = arith.constant 0 : i32
    %c0_i32_1 = arith.constant 0 : i32
    return %c0_i32, %c0_i32_0 : i32, i32
  }
  func.func @transform_7(%arg0: i32) -> (i32, i32) {
    %c0_i32 = arith.constant 0 : i32
    %c0_i32_0 = arith.constant 0 : i32
    %c0_i32_1 = arith.constant 0 : i32
    return %c0_i32, %c0_i32_0 : i32, i32
  }
  func.func @transform_8(%arg0: i32) -> (i32, i32) {
    %c0_i32 = arith.constant 0 : i32
    %c0_i32_0 = arith.constant 0 : i32
    %c0_i32_1 = arith.constant 0 : i32
    return %c0_i32, %c0_i32_0 : i32, i32
  }
  func.func @transform_9(%arg0: i32) -> (i32, i32) {
    %c0_i32 = arith.constant 0 : i32
    %c0_i32_0 = arith.constant 0 : i32
    %c0_i32_1 = arith.constant 0 : i32
    return %c0_i32, %c0_i32_0 : i32, i32
  }
  func.func @transform_10(%arg0: i32) -> (i32, i32) {
    %c0_i32 = arith.constant 0 : i32
    %c0_i32_0 = arith.constant 0 : i32
    %c0_i32_1 = arith.constant 0 : i32
    return %c0_i32, %c0_i32_0 : i32, i32
  }
  func.func @transform_11(%arg0: i32) -> (i32, i32, i32) {
    %c0_i32 = arith.constant 0 : i32
    %c0_i32_0 = arith.constant 0 : i32
    %c0_i32_1 = arith.constant 0 : i32
    return %arg0, %c0_i32, %c0_i32_0 : i32, i32, i32
  }
}

</mosaic_0001>

<bundles_post_ra>
// kernel: tpu_custom_call.1
= control target key start
LH: loop header
LB: loop body
LE: loop exit
PB: predicated region body
PF: predicated region fallthrough
CT: control target
= control target key end

     0   :  { %16 = vsyncpa [#allocation8], 0  ;;  %s5841_s0 = inlined_call_operand.vmem [shape: f32[2,128,16], index: 0, kind: input, shape index: {}]   ;;  %s5842_s1 = inlined_call_operand.vmem [shape: f32[1,16], index: 1, kind: input, shape index: {}]   ;;  %s5843_s2 = inlined_call_operand.vmem [shape: f32[1,16], index: 2, kind: input, shape index: {}]   ;;  %s5844_s3 = inlined_call_operand.vmem [shape: f32[16,64], index: 3, kind: input, shape index: {}]   ;;  %s5845_s4 = inlined_call_operand.vmem [shape: f32[4,32], index: 4, kind: input, shape index: {}]   ;;  %s5846_s5 = inlined_call_operand.vmem [shape: f32[1,32], index: 5, kind: input, shape index: {}]   ;;  %s5847_s6 = inlined_call_operand.vmem [shape: f32[32,64], index: 6, kind: input, shape index: {}]   ;;  %s5848_s7 = inlined_call_operand.vmem [shape: f32[1,32], index: 7, kind: input, shape index: {}]   ;;  %s5849_s8 = inlined_call_operand.vmem [shape: f32[16,32], index: 8, kind: input, shape index: {}]   ;;  %s5850_s9 = inlined_call_operand.vmem [shape: f32[1,32], index: 9, kind: input, shape index: {}]   ;;  %s5851_s10 = inlined_call_operand.vmem [shape: f32[32,16], index: 10, kind: input, shape index: {}]   ;;  %s5852_s11 = inlined_call_operand.hbm [shape: f32[2,16,128], index: 11, kind: output, shape index: {}]  }
   0x1   :  { %18 = vsyncpa [#allocation8 + $0x1], 0  ;;  %s4371_s17 = smov 0   ;;  %s4373_s18 = smov 0  }
   0x2   :  { %s4375_s19 = smov 0   ;;  %s4377_s20 = smov 0  }
   0x3 LB: > { %s4392_s21 = sadd.s32 4294967295, %s4280_s20   ;;  %s3496_s22 = sadd.s32 4294967294, %s4280_s20   ;;  %s4280_s20 = sphi %s4377_s20, %s5934_s20   ;;  %s4276_s19 = sphi %s4375_s19, %s5933_s19   ;;  %s4272_s18 = sphi %s4373_s18, %s5932_s18   ;;  %s4268_s17 = sphi %s4371_s17, %s5931_s17  }
   0x4   : > { %s4396_s23 = sadd.s32 1, %s4280_s20   ;;  %s267_s24 = sadd.s32 1, %s4276_s19 }
   0x5   : > { %s264_s25 = ssub.s32 %s4280_s20, %s4396_s23  ;;  %p277_p0 = scmp.ne.s32.totalorder %s4276_s19, %s4272_s18 }
   0x6   : > { %p265_p1 = scmp.eq.s32.totalorder %s264_s25, 0  ;;  %p278_p2 = scmp.eq.s32.totalorder %s4392_s21, 1 }
   0x7   : > { %p283_p3 = scmp.ne.s32.totalorder %s4272_s18, %s4268_s17  ;;  %p284_p4 = scmp.eq.s32.totalorder %s3496_s22, 1 }
   0x8   : > { %s4407_s26 = scalar_select %p265_p1, %s4276_s19, %s267_s24  }
   0x9   : > { %p4409_p5 = por %p278_p2, %p277_p0  ;;  %p4413_p6 = por %p284_p4, %p283_p3 }
   0xa   : > { %p3499_p7 = scmp.ge.s32.totalorder %s4280_s20, 1  ;;  %p340_p8 = scmp.lt.s32.totalorder %s4280_s20, 3 }
   0xc   : > { %p341_p9 = pnand %p3499_p7, %p340_p8 }
   0xe   : > { %344 = sbr.rel (%p341_p9) target bundleno = 2081 (0x821), region = 64 }
  0x15   : > { %p380_p10 = scmp.lt.s32.totalorder %s4392_s21, 1  ;;  %vm401_vm0 = vcmask 130048   ;;  %s377_s25 = sand.u32 1, %s4272_s18   ;;  %vm1428_vm4 = vcmask 261120  }
  0x16   : > { %s4295_s12 = smov 80   ;;  %s5532_s24 = smov 0  }
  0x17   : > { %s381_s29 = scalar_select %p380_p10, %s4392_s21, 1 }
  0x19   : > { %s3574_s30 = sshll.u32 %s381_s29, 7  ;;  %s4587_s29 = sshll.u32 %s377_s25, 4 }
  0x1a   : > { %s4424_s14 = scalar_lea.vmem %s5841_s0, %s3574_s30  ;;  %s4294_s30 = smov 96  }
  0x1b   : > { %v385_v0 = vld [vmem:[%s4424_s14] sm:$0xff]  ;;  %v387_v1 = vld [vmem:[%s4424_s14 + $0x10] sm:$0xff]  ;;  %v386_v2 = vld [vmem:[%s4424_s14 + $0x8] sm:$0xff]  ;;  %s5526_s22 = scalar_lea.vmem [#allocation7], %s4587_s29 }
  0x1c   : > { %v402_v3 = vsel %vm401_vm0, %v385_v0, 0.0  ;;  %v408_v4 = vsel %vm401_vm0, %v387_v1, 0.0  ;;  %v388_v5 = vld [vmem:[%s4424_s14 + $0x18] sm:$0xff]  ;;  %v405_v6 = vsel %vm401_vm0, %v386_v2, 0.0  ;;  %v389_v8 = vld [vmem:[%s4424_s14 + $0x20] sm:$0xff]  ;;  %v390_v9 = vld [vmem:[%s4424_s14 + $0x28] sm:$0xff] }
  0x1d   : > { %403 = vadd.xlane.f32.xlu0 %v402_v3  ;;  %409 = vadd.xlane.f32.xlu1 %v408_v4  ;;  %v411_v7 = vsel %vm401_vm0, %v388_v5, 0.0  ;;  %v414_v10 = vsel %vm401_vm0, %v389_v8, 0.0  ;;  %v417_v11 = vsel %vm401_vm0, %v390_v9, 0.0  ;;  %v4439_v12 = vld [vmem:[%s4424_s14 + $0x30] sm:$0xff]  ;;  %v4442_v13 = vld [vmem:[%s4424_s14 + $0x38] sm:$0xff]  ;;  %v4449_v16 = vld [vmem:[%s4424_s14 + $0x40] sm:$0xff] }
  0x1e   : > { %v420_v14 = vsel %vm401_vm0, %v4439_v12, 0.0  ;;  %v423_v15 = vsel %vm401_vm0, %v4442_v13, 0.0  ;;  %v4452_v17 = vld [vmem:[%s4424_s14 + $0x48] sm:$0xff]  ;;  %v426_v18 = vsel %vm401_vm0, %v4449_v16, 0.0  ;;  %v4459_v20 = vld [vmem:[%s4424_s14 + $0x50] sm:$0xff]  ;;  %v4462_v21 = vld [vmem:[%s4424_s14 + $0x58] sm:$0xff] }
  0x1f   : > { %v429_v19 = vsel %vm401_vm0, %v4452_v17, 0.0  ;;  %v432_v22 = vsel %vm401_vm0, %v4459_v20, 0.0  ;;  %v435_v23 = vsel %vm401_vm0, %v4462_v21, 0.0  ;;  %v4469_v24 = vld [vmem:[%s4424_s14 + $0x60] sm:$0xff]  ;;  %v4472_v25 = vld [vmem:[%s4424_s14 + $0x68] sm:$0xff]  ;;  %v4479_v28 = vld [vmem:[%s4424_s14 + $0x70] sm:$0xff] }
  0x20   : > { %v438_v26 = vsel %vm401_vm0, %v4469_v24, 0.0  ;;  %v441_v27 = vsel %vm401_vm0, %v4472_v25, 0.0  ;;  %v4482_v29 = vld [vmem:[%s4424_s14 + $0x78] sm:$0xff]  ;;  %v444_v30 = vsel %vm401_vm0, %v4479_v28, 0.0 }
  0x21   : > { %406 = vadd.xlane.f32.xlu0 %v405_v6  ;;  %412 = vadd.xlane.f32.xlu1 %v411_v7  ;;  %v447_v31 = vsel %vm401_vm0, %v4482_v29, 0.0 }
  0x25   : > { %415 = vadd.xlane.f32.xlu0 %v414_v10  ;;  %418 = vadd.xlane.f32.xlu1 %v417_v11 }
  0x29   : > { %421 = vadd.xlane.f32.xlu0 %v420_v14  ;;  %424 = vadd.xlane.f32.xlu1 %v423_v15 }
  0x2d   : > { %427 = vadd.xlane.f32.xlu0 %v426_v18  ;;  %430 = vadd.xlane.f32.xlu1 %v429_v19 }
  0x31   : > { %433 = vadd.xlane.f32.xlu0 %v432_v22  ;;  %436 = vadd.xlane.f32.xlu1 %v435_v23 }
  0x35   : > { %439 = vadd.xlane.f32.xlu0 %v438_v26  ;;  %442 = vadd.xlane.f32.xlu1 %v441_v27 }
  0x39   : > { %445 = vadd.xlane.f32.xlu0 %v444_v30  ;;  %448 = vadd.xlane.f32.xlu1 %v447_v31 }
  0xaa   : > { %v404_v32 = vpop.xlane.xlu0 %403  ;;  %v410_v33 = vpop.xlane.xlu1 %409 }
  0xab   : > { %v451_v34 = vmul.f32 0.0625, %v404_v32  ;;  %v453_v35 = vmul.f32 0.0625, %v410_v33 }
  0xad   : > { %v4488_v36 = vsub.f32 %v385_v0, %v451_v34  ;;  %v4490_v37 = vsub.f32 %v387_v1, %v453_v35 }
  0xae   : > { %v407_v38 = vpop.xlane.xlu0 %406  ;;  %v413_v39 = vpop.xlane.xlu1 %412 }
  0xaf   : > { %v452_v40 = vmul.f32 0.0625, %v407_v38  ;;  %v454_v41 = vmul.f32 0.0625, %v413_v39  ;;  %v483_v42 = vmul.f32 %v4488_v36, %v4488_v36  ;;  %v485_v43 = vmul.f32 %v4490_v37, %v4490_v37 }
  0xb1   : > { %v4496_v44 = vsub.f32 %v386_v2, %v452_v40  ;;  %v4498_v45 = vsub.f32 %v388_v5, %v454_v41  ;;  %v499_v46 = vsel %vm401_vm0, %v483_v42, 0.0  ;;  %v505_v49 = vsel %vm401_vm0, %v485_v43, 0.0 }
  0xb2   : > { %500 = vadd.xlane.f32.xlu0 %v499_v46  ;;  %v416_v47 = vpop.xlane.xlu0 %415  ;;  %v419_v48 = vpop.xlane.xlu1 %418 }
  0xb3   : > { %v455_v50 = vmul.f32 0.0625, %v416_v47  ;;  %v456_v51 = vmul.f32 0.0625, %v419_v48  ;;  %v484_v52 = vmul.f32 %v4496_v44, %v4496_v44  ;;  %v486_v53 = vmul.f32 %v4498_v45, %v4498_v45 }
  0xb5   : > { %v4506_v54 = vsub.f32 %v389_v8, %v455_v50  ;;  %v4508_v55 = vsub.f32 %v390_v9, %v456_v51  ;;  %v502_v56 = vsel %vm401_vm0, %v484_v52, 0.0  ;;  %v508_v59 = vsel %vm401_vm0, %v486_v53, 0.0  ;;  %v657_v52 = vld [vmem:[%s5844_s3] sm:$0xff]  ;;  %v658_v53 = vld [vmem:[%s5844_s3 + $0x8] sm:$0xff] }
  0xb6   : > { %506 = vadd.xlane.f32.xlu0 %v505_v49  ;;  %503 = vadd.xlane.f32.xlu1 %v502_v56  ;;  %v422_v57 = vpop.xlane.xlu0 %421  ;;  %v425_v58 = vpop.xlane.xlu1 %424  ;;  %v3806_v56 = vpack.c.bf16 %v658_v53, %v657_v52 }
  0xb7   : > { %v457_v60 = vmul.f32 0.0625, %v422_v57  ;;  %v458_v61 = vmul.f32 0.0625, %v425_v58  ;;  %v487_v62 = vmul.f32 %v4506_v54, %v4506_v54  ;;  %v488_v63 = vmul.f32 %v4508_v55, %v4508_v55 }
  0xb8   : > { %3807 = vmatprep.subr.bf16.mxu0 %v3806_v56 }
  0xb9   : > { %v4517_v0 = vsub.f32 %v4439_v12, %v457_v60  ;;  %v4520_v1 = vsub.f32 %v4442_v13, %v458_v61  ;;  %v511_v2 = vsel %vm401_vm0, %v487_v62, 0.0  ;;  %v514_v5 = vsel %vm401_vm0, %v488_v63, 0.0  ;;  %3809 = vmatpush3.bf16.msra.mxu0 %v3806_v56 }
  0xba   : > { %509 = vadd.xlane.f32.xlu1 %v508_v59  ;;  %512 = vadd.xlane.f32.xlu0 %v511_v2  ;;  %v428_v3 = vpop.xlane.xlu0 %427  ;;  %v431_v4 = vpop.xlane.xlu1 %430 }
  0xbb   : > { %v459_v6 = vmul.f32 0.0625, %v428_v3  ;;  %v460_v7 = vmul.f32 0.0625, %v431_v4  ;;  %v489_v8 = vmul.f32 %v4517_v0, %v4517_v0  ;;  %v490_v9 = vmul.f32 %v4520_v1, %v4520_v1 }
  0xbd   : > { %v4529_v10 = vsub.f32 %v4449_v16, %v459_v6  ;;  %v4532_v11 = vsub.f32 %v4452_v17, %v460_v7  ;;  %v517_v12 = vsel %vm401_vm0, %v489_v8, 0.0  ;;  %v520_v15 = vsel %vm401_vm0, %v490_v9, 0.0 }
  0xbe   : > { %515 = vadd.xlane.f32.xlu1 %v514_v5  ;;  %518 = vadd.xlane.f32.xlu0 %v517_v12  ;;  %v434_v13 = vpop.xlane.xlu0 %433  ;;  %v437_v14 = vpop.xlane.xlu1 %436 }
  0xbf   : > { %v461_v18 = vmul.f32 0.0625, %v434_v13  ;;  %v462_v19 = vmul.f32 0.0625, %v437_v14  ;;  %v491_v22 = vmul.f32 %v4529_v10, %v4529_v10  ;;  %v492_v16 = vmul.f32 %v4532_v11, %v4532_v11 }
  0xc1   : > { %v4541_v23 = vsub.f32 %v4459_v20, %v461_v18  ;;  %v4544_v17 = vsub.f32 %v4462_v21, %v462_v19  ;;  %v523_v26 = vsel %vm401_vm0, %v491_v22, 0.0  ;;  %v526_v31 = vsel %vm401_vm0, %v492_v16, 0.0  ;;  %v4592_v16 = vld [vmem:[%s5842_s1] ss:$0 sm:$0xff] }
  0xc2   : > { %521 = vadd.xlane.f32.xlu1 %v520_v15  ;;  %524 = vadd.xlane.f32.xlu0 %v523_v26  ;;  %v440_v27 = vpop.xlane.xlu0 %439  ;;  %v443_v30 = vpop.xlane.xlu1 %442 }
  0xc3   : > { %v463_v32 = vmul.f32 0.0625, %v440_v27  ;;  %v464_v33 = vmul.f32 0.0625, %v443_v30  ;;  %v493_v34 = vmul.f32 %v4541_v23, %v4541_v23  ;;  %v494_v20 = vmul.f32 %v4544_v17, %v4544_v17 }
  0xc5   : > { %v4553_v35 = vsub.f32 %v4469_v24, %v463_v32  ;;  %v4556_v21 = vsub.f32 %v4472_v25, %v464_v33  ;;  %v529_v38 = vsel %vm401_vm0, %v493_v34, 0.0  ;;  %v532_v41 = vsel %vm401_vm0, %v494_v20, 0.0  ;;  %v4598_v33 = vld [vmem:[%s5843_s2] ss:$0 sm:$0xff] }
  0xc6   : > { %527 = vadd.xlane.f32.xlu1 %v526_v31  ;;  %530 = vadd.xlane.f32.xlu0 %v529_v38  ;;  %v446_v39 = vpop.xlane.xlu0 %445  ;;  %v449_v40 = vpop.xlane.xlu1 %448 }
  0xc7   : > { %v465_v42 = vmul.f32 0.0625, %v446_v39  ;;  %v466_v43 = vmul.f32 0.0625, %v449_v40  ;;  %v495_v46 = vmul.f32 %v4553_v35, %v4553_v35  ;;  %v496_v24 = vmul.f32 %v4556_v21, %v4556_v21 }
  0xc9   : > { %v4565_v47 = vsub.f32 %v4479_v28, %v465_v42  ;;  %v4568_v25 = vsub.f32 %v4482_v29, %v466_v43  ;;  %v535_v48 = vsel %vm401_vm0, %v495_v46, 0.0  ;;  %v538_v49 = vsel %vm401_vm0, %v496_v24, 0.0 }
  0xca   : > { %533 = vadd.xlane.f32.xlu1 %v532_v41  ;;  %536 = vadd.xlane.f32.xlu0 %v535_v48 }
  0xcb   : > { %v497_v50 = vmul.f32 %v4565_v47, %v4565_v47  ;;  %v498_v51 = vmul.f32 %v4568_v25, %v4568_v25 }
  0xcd   : > { %v541_v28 = vsel %vm401_vm0, %v497_v50, 0.0  ;;  %v544_v29 = vsel %vm401_vm0, %v498_v51, 0.0 }
  0xce   : > { %539 = vadd.xlane.f32.xlu1 %v538_v49  ;;  %542 = vadd.xlane.f32.xlu0 %v541_v28 }
  0xd2   : > { %545 = vadd.xlane.f32.xlu1 %v544_v29 }
 0x13f   : > { %v501_v57 = vpop.xlane.xlu0 %500 }
 0x140   : > { %v547_v58 = vmul.f32 0.0625, %v501_v57 }
 0x142   : > { %v563_v59 = vadd.f32 1e-05, %v547_v58 }
 0x143   : > { %v504_v60 = vpop.xlane.xlu1 %503  ;;  %v507_v61 = vpop.xlane.xlu0 %506 }
 0x144   : > { %3933 = vrsqrt.f32 %v563_v59  ;;  %v548_v62 = vmul.f32 0.0625, %v504_v60  ;;  %v549_v63 = vmul.f32 0.0625, %v507_v61 }
 0x146   : > { %v564_v2 = vadd.f32 1e-05, %v548_v62  ;;  %v565_v3 = vadd.f32 1e-05, %v549_v63 }
 0x147   : > { %v510_v4 = vpop.xlane.xlu1 %509  ;;  %v513_v5 = vpop.xlane.xlu0 %512 }
 0x148   : > { %3935 = vrsqrt.f32 %v564_v2  ;;  %v550_v6 = vmul.f32 0.0625, %v510_v4  ;;  %v551_v7 = vmul.f32 0.0625, %v513_v5 }
 0x149   : > { %3937 = vrsqrt.f32 %v565_v3 }
 0x14a   : > { %v566_v8 = vadd.f32 1e-05, %v550_v6  ;;  %v567_v9 = vadd.f32 1e-05, %v551_v7 }
 0x14b   : > { %v516_v12 = vpop.xlane.xlu1 %515  ;;  %v519_v13 = vpop.xlane.xlu0 %518 }
 0x14c   : > { %3939 = vrsqrt.f32 %v566_v8  ;;  %v552_v14 = vmul.f32 0.0625, %v516_v12  ;;  %v553_v15 = vmul.f32 0.0625, %v519_v13 }
 0x14d   : > { %3941 = vrsqrt.f32 %v567_v9 }
 0x14e   : > { %v3934_v18 = vpop.eup %3933  ;;  %v568_v19 = vadd.f32 1e-05, %v552_v14  ;;  %v569_v22 = vadd.f32 1e-05, %v553_v15 }
 0x14f   : > { %v522_v26 = vpop.xlane.xlu1 %521  ;;  %v525_v27 = vpop.xlane.xlu0 %524  ;;  %v595_v30 = vmul.f32 %v3934_v18, %v4488_v36 }
 0x150   : > { %3943 = vrsqrt.f32 %v568_v19  ;;  %v554_v31 = vmul.f32 0.0625, %v522_v26  ;;  %v555_v32 = vmul.f32 0.0625, %v525_v27 }
 0x151   : > { %3945 = vrsqrt.f32 %v569_v22  ;;  %v618_v34 = vmul.f32 %v4592_v16, %v595_v30 }
 0x152   : > { %v3936_v20 = vpop.eup %3935  ;;  %v570_v38 = vadd.f32 1e-05, %v554_v31  ;;  %v571_v39 = vadd.f32 1e-05, %v555_v32 }
 0x153   : > { %v3938_v40 = vpop.eup %3937  ;;  %v528_v41 = vpop.xlane.xlu1 %527  ;;  %v641_v43 = vadd.f32 %v4598_v33, %v618_v34  ;;  %v596_v36 = vmul.f32 %v3936_v20, %v4496_v44 }
 0x154   : > { %v531_v42 = vpop.xlane.xlu0 %530  ;;  %3947 = vrsqrt.f32 %v570_v38  ;;  %v556_v46 = vmul.f32 0.0625, %v528_v41  ;;  %v597_v48 = vmul.f32 %v3938_v40, %v4490_v37 }
 0x155   : > { %v557_v24 = vmul.f32 0.0625, %v531_v42  ;;  %3949 = vrsqrt.f32 %v571_v39  ;;  %3662 = vmatprep.mubr.msk.f32.mxu0 %vm401_vm0, %v641_v43  ;;  %v619_v49 = vmul.f32 %v4592_v16, %v596_v36 }
 0x156   : > { %v3940_v50 = vpop.eup %3939  ;;  %v572_v51 = vadd.f32 1e-05, %v556_v46  ;;  %v620_v29 = vmul.f32 %v4592_v16, %v597_v48 }
 0x157   : > { %v573_v28 = vadd.f32 1e-05, %v557_v24  ;;  %v3942_v52 = vpop.eup %3941  ;;  %v534_v53 = vpop.xlane.xlu1 %533  ;;  %v642_v44 = vadd.f32 %v4598_v33, %v619_v49  ;;  %v598_v57 = vmul.f32 %v3940_v50, %v4498_v45 }
 0x158   : > { %v537_v56 = vpop.xlane.xlu0 %536  ;;  %3951 = vrsqrt.f32 %v572_v51  ;;  %v558_v58 = vmul.f32 0.0625, %v534_v53  ;;  %v643_v59 = vadd.f32 %v4598_v33, %v620_v29  ;;  %v599_v61 = vmul.f32 %v3942_v52, %v4506_v54 }
 0x159   : > { %v559_v37 = vmul.f32 0.0625, %v537_v56  ;;  %3953 = vrsqrt.f32 %v573_v28  ;;  %3663 = vmatmul.mubr.msk.f32.vlgmr.msra.gmra.mrb[0].mxu0 %vm401_vm0, %v642_v44  ;;  %v621_v60 = vmul.f32 %v4592_v16, %v598_v57 }
 0x15a   : > { %v3944_v62 = vpop.eup %3943  ;;  %v574_v63 = vadd.f32 1e-05, %v558_v58  ;;  %3665 = vmatprep.mubr.msk.f32.mxu0 %vm401_vm0, %v643_v59  ;;  %v622_v6 = vmul.f32 %v4592_v16, %v599_v61  ;;  %v1424_v59 = vld [vmem:[%s5847_s6] sm:$0xff] }
 0x15b   : > { %v575_v2 = vadd.f32 1e-05, %v559_v37  ;;  %v3946_v3 = vpop.eup %3945  ;;  %v540_v4 = vpop.xlane.xlu1 %539  ;;  %v644_v5 = vadd.f32 %v4598_v33, %v621_v60  ;;  %v600_v7 = vmul.f32 %v3944_v62, %v4508_v55  ;;  %v1426_v60 = vld [vmem:[%s5847_s6 + $0x10] sm:$0xff]  ;;  %v852_v62 = vlaneseq }
 0x15c   : > { %v543_v45 = vpop.xlane.xlu0 %542  ;;  %3955 = vrsqrt.f32 %v574_v63  ;;  %v560_v8 = vmul.f32 0.0625, %v540_v4  ;;  %v601_v12 = vmul.f32 %v3946_v3, %v4517_v0  ;;  %v645_v54 = vadd.f32 %v4598_v33, %v622_v6  ;;  %v4690_v4 = vld [vmem:[%s5846_s5] ss:$0 sm:$0xff] }
 0x15d   : > { %v561_v9 = vmul.f32 0.0625, %v543_v45  ;;  %3957 = vrsqrt.f32 %v575_v2  ;;  %3666 = vmatmul.mubr.msk.f32.gmra.mrb[2].mxu0 %vm401_vm0, %v644_v5  ;;  %v623_v13 = vmul.f32 %v4592_v16, %v600_v7  ;;  %v4675_v63 = vshrl.u32 %v852_v62, 7  ;;  %v4680_v2 = vld [vmem:[%s5845_s4 + $0x3] ss:$0 sm:$0xff] }
 0x15e   : > { %v3948_v14 = vpop.eup %3947  ;;  %v576_v15 = vadd.f32 1e-05, %v560_v8  ;;  %v624_v19 = vmul.f32 %v4592_v16, %v601_v12  ;;  %3668 = vmatprep.mubr.msk.f32.mxu0 %vm401_vm0, %v645_v54  ;;  %v4705_v54 = vld [vmem:[%s5845_s4] ss:$0 sm:$0xff] }
 0x15f   : > { %v577_v18 = vadd.f32 1e-05, %v561_v9  ;;  %v3950_v22 = vpop.eup %3949  ;;  %v546_v55 = vpop.xlane.xlu1 %545  ;;  %v646_v26 = vadd.f32 %v4598_v33, %v623_v13  ;;  %v602_v0 = vmul.f32 %v3948_v14, %v4520_v1  ;;  %vm929_vm1 = vcmp.lt.s32.totalorder %v4675_v63, 3 }
 0x160   : > { %3959 = vrsqrt.f32 %v576_v15  ;;  %v562_v27 = vmul.f32 0.0625, %v546_v55  ;;  %v647_v30 = vadd.f32 %v4598_v33, %v624_v19  ;;  %v603_v31 = vmul.f32 %v3950_v22, %v4529_v10 }
 0x161   : > { %3961 = vrsqrt.f32 %v577_v18  ;;  %3669 = vmatmul.mubr.msk.f32.gmra.mrb[4].mxu0 %vm401_vm0, %v646_v26  ;;  %v625_v32 = vmul.f32 %v4592_v16, %v602_v0  ;;  %vm1062_vm2 = vcmp.lt.s32.totalorder %v4675_v63, 2  ;;  %vm1195_vm3 = vcmp.lt.s32.totalorder %v4675_v63, 1 }
 0x162   : > { %v3952_v34 = vpop.eup %3951  ;;  %v578_v20 = vadd.f32 1e-05, %v562_v27  ;;  %3671 = vmatprep.mubr.msk.f32.mxu0 %vm401_vm0, %v647_v30  ;;  %v626_v38 = vmul.f32 %v4592_v16, %v603_v31  ;;  %v4731_v27 = vld [vmem:[%s5845_s4 + $0x1] ss:$0 sm:$0xff]  ;;  %v4736_v30 = vld [vmem:[%s5845_s4 + $0x2] ss:$0 sm:$0xff] }
 0x163   : > { %v3954_v39 = vpop.eup %3953  ;;  %v648_v1 = vadd.f32 %v4598_v33, %v625_v32  ;;  %v604_v40 = vmul.f32 %v3952_v34, %v4532_v11 }
 0x164   : > { %3963 = vrsqrt.f32 %v578_v20  ;;  %v649_v41 = vadd.f32 %v4598_v33, %v626_v38  ;;  %v605_v10 = vmul.f32 %v3954_v39, %v4541_v23 }
 0x165   : > { %3672 = vmatmul.mubr.msk.f32.gmra.mrb[6].mxu0 %vm401_vm0, %v648_v1  ;;  %v627_v42 = vmul.f32 %v4592_v16, %v604_v40 }
 0x166   : > { %v3956_v43 = vpop.eup %3955  ;;  %3674 = vmatprep.mubr.msk.f32.mxu0 %vm401_vm0, %v649_v41  ;;  %v628_v36 = vmul.f32 %v4592_v16, %v605_v10 }
 0x167   : > { %v3958_v46 = vpop.eup %3957  ;;  %v650_v24 = vadd.f32 %v4598_v33, %v627_v42  ;;  %v606_v48 = vmul.f32 %v3956_v43, %v4544_v17 }
 0x168   : > { %v651_v11 = vadd.f32 %v4598_v33, %v628_v36  ;;  %v607_v49 = vmul.f32 %v3958_v46, %v4553_v35 }
 0x169   : > { %3675 = vmatmul.mubr.msk.f32.gmra.mrb[8].mxu0 %vm401_vm0, %v650_v24  ;;  %v629_v23 = vmul.f32 %v4592_v16, %v606_v48 }
 0x16a   : > { %v3960_v50 = vpop.eup %3959  ;;  %3677 = vmatprep.mubr.msk.f32.mxu0 %vm401_vm0, %v651_v11  ;;  %v630_v51 = vmul.f32 %v4592_v16, %v607_v49 }
 0x16b   : > { %v3962_v28 = vpop.eup %3961  ;;  %v652_v29 = vadd.f32 %v4598_v33, %v629_v23  ;;  %v608_v52 = vmul.f32 %v3960_v50, %v4556_v21 }
 0x16c   : > { %v653_v17 = vadd.f32 %v4598_v33, %v630_v51  ;;  %v609_v53 = vmul.f32 %v3962_v28, %v4565_v47 }
 0x16d   : > { %3678 = vmatmul.mubr.msk.f32.gmra.mrb[10].mxu0 %vm401_vm0, %v652_v29  ;;  %v631_v35 = vmul.f32 %v4592_v16, %v608_v52 }
 0x16e   : > { %v3964_v56 = vpop.eup %3963  ;;  %3680 = vmatprep.mubr.msk.f32.mxu0 %vm401_vm0, %v653_v17  ;;  %v632_v44 = vmul.f32 %v4592_v16, %v609_v53 }
 0x16f   : > { %v654_v57 = vadd.f32 %v4598_v33, %v631_v35  ;;  %v610_v58 = vmul.f32 %v3964_v56, %v4568_v25  ;;  %v1425_v25 = vld [vmem:[%s5847_s6 + $0x8] sm:$0xff] }
 0x170   : > { %v655_v37 = vadd.f32 %v4598_v33, %v632_v44  ;;  %v3810_v61 = vpack.c.bf16 %v1425_v25, %v1424_v59 }
 0x171   : > { %3681 = vmatmul.mubr.msk.f32.gmra.mrb[12].mxu0 %vm401_vm0, %v654_v57  ;;  %v633_v21 = vmul.f32 %v4592_v16, %v610_v58  ;;  %v1427_v16 = vld [vmem:[%s5847_s6 + $0x18] sm:$0xff] }
 0x172   : > { %3683 = vmatprep.mubr.msk.f32.mxu0 %vm401_vm0, %v655_v37  ;;  %3811 = vmatprep.subr.bf16.mxu1 %v3810_v61 }
 0x173   : > { %v656_v47 = vadd.f32 %v4598_v33, %v633_v21  ;;  %v3814_v33 = vpack.c.bf16 %v1427_v16, %v1426_v60  ;;  %3813 = vmatpush3.bf16.msra.mxu1 %v3810_v61 }
 0x175   : > { %3684 = vmatmul.mubr.msk.f32.gmra.mrb[14].mxu0 %vm401_vm0, %v656_v47  ;;  %3815 = vmatprep.subr.bf16.mxu1 %v3814_v33 }
 0x177   : > { %3817 = vmatpush3.bf16.msra.mxu1 %v3814_v33 }
 0x22c   : > { %v4682_v3 = vpop.f32.mrb[0].mxu0 }
 0x22d   : > { %5890 = vst [vmem:[#allocation10_spill] sm:$0xff] %v4682_v3  ;;  %v876_v45 = vmul.f32 %v4682_v3, %v4680_v2  ;;  %v914_v5 = vrot.slane %v4682_v3, 5  ;;  %v1047_v6 = vrot.slane %v4682_v3, 6  ;;  %v1180_v7 = vrot.slane %v4682_v3, 7  ;;  %v4697_v8 = vpop.f32.mrb[1].mxu0 }
 0x22e   : > { %5891 = vst [vmem:[#allocation11_spill] sm:$0xff] %v4697_v8  ;;  %v875_v9 = vmul.f32 %v4680_v2, %v4697_v8  ;;  %v5855_v12 = vrot.slane %v4697_v8, 5  ;;  %v5854_v13 = vrot.slane %v4697_v8, 6  ;;  %v5853_v14 = vrot.slane %v4697_v8, 7 }
 0x22f   : > { %v898_v55 = vadd.f32 %v4690_v4, %v876_v45 }
 0x230   : > { %v944_v15 = vsel %vm929_vm1, %v5855_v12, %v914_v5  ;;  %v1077_v18 = vsel %vm1062_vm2, %v5854_v13, %v1047_v6  ;;  %v1210_v19 = vsel %vm1195_vm3, %v5853_v14, %v1180_v7  ;;  %v4721_v22 = vpop.f32.mrb[2].mxu0  ;;  %v4725_v26 = vadd.f32 %v4690_v4, %v875_v9 }
 0x231   : > { %5892 = vst [vmem:[#allocation12_spill] sm:$0xff] %v4721_v22  ;;  %v1015_v0 = vmul.f32 %v4705_v54, %v944_v15  ;;  %v4738_v31 = vpop.f32.mrb[3].mxu0  ;;  %v878_v32 = vmul.f32 %v4721_v22, %v4680_v2  ;;  %v916_v34 = vrot.slane %v4721_v22, 5  ;;  %v1049_v20 = vrot.slane %v4721_v22, 6 }
 0x232   : > { %5893 = vst [vmem:[#allocation13_spill] sm:$0xff] %v4738_v31  ;;  %v877_v38 = vmul.f32 %v4680_v2, %v4738_v31  ;;  %v1182_v1 = vrot.slane %v4721_v22, 7  ;;  %v915_v40 = vrot.slane %v4738_v31, 5  ;;  %v1048_v41 = vrot.slane %v4738_v31, 6 }
 0x233   : > { %v4746_v39 = vadd.f32 %v1015_v0, %v898_v55  ;;  %v4752_v10 = vmul.f32 %v4731_v27, %v1077_v18  ;;  %v4755_v42 = vmul.f32 %v4736_v30, %v1210_v19  ;;  %v1181_v36 = vrot.slane %v4738_v31, 7 }
 0x234   : > { %v899_v43 = vadd.f32 %v4690_v4, %v877_v38  ;;  %v4759_v46 = vpop.f32.mrb[4].mxu0  ;;  %v942_v24 = vsel %vm929_vm1, %v915_v40, %v916_v34  ;;  %v943_v48 = vsel %vm929_vm1, %v914_v5, %v915_v40  ;;  %v1075_v11 = vsel %vm1062_vm2, %v1048_v41, %v1049_v20 }
 0x235   : > { %5894 = vst [vmem:[#allocation14_spill] sm:$0xff] %v4759_v46  ;;  %v1076_v49 = vsel %vm1062_vm2, %v1047_v6, %v1048_v41  ;;  %v4769_v23 = vpop.f32.mrb[5].mxu0  ;;  %v900_v50 = vadd.f32 %v4690_v4, %v878_v32  ;;  %v1016_v51 = vmul.f32 %v4705_v54, %v943_v48  ;;  %v1017_v28 = vmul.f32 %v4705_v54, %v942_v24 }
 0x236   : > { %5895 = vst [vmem:[#allocation15_spill] sm:$0xff] %v4769_v23  ;;  %v4775_v29 = vmul.f32 %v4731_v27, %v1076_v49  ;;  %v4778_v52 = vmul.f32 %v4731_v27, %v1075_v11  ;;  %v1208_v17 = vsel %vm1195_vm3, %v1181_v36, %v1182_v1  ;;  %v1209_v53 = vsel %vm1195_vm3, %v1180_v7, %v1181_v36 }
 0x237   : > { %v880_v35 = vmul.f32 %v4759_v46, %v4680_v2  ;;  %v4786_v56 = vadd.f32 %v1016_v51, %v899_v43  ;;  %v4788_v44 = vadd.f32 %v1017_v28, %v900_v50  ;;  %v4791_v57 = vmul.f32 %v4736_v30, %v1209_v53 }
 0x238   : > { %v918_v58 = vrot.slane %v4759_v46, 5  ;;  %v4794_v37 = vpop.f32.mrb[6].mxu0  ;;  %v4797_v21 = vmul.f32 %v4736_v30, %v1208_v17  ;;  %v1051_v59 = vrot.slane %v4759_v46, 6  ;;  %v879_v25 = vmul.f32 %v4680_v2, %v4769_v23 }
 0x239   : > { %5896 = vst [vmem:[#allocation16_spill] sm:$0xff] %v4794_v37  ;;  %v902_v47 = vadd.f32 %v4690_v4, %v880_v35  ;;  %v4803_v60 = vpop.f32.mrb[7].mxu0  ;;  %v1184_v61 = vrot.slane %v4759_v46, 7  ;;  %v917_v16 = vrot.slane %v4769_v23, 5  ;;  %v1050_v33 = vrot.slane %v4769_v23, 6 }
 0x23a   : > { %5897 = vst [vmem:[#allocation17_spill] sm:$0xff] %v4803_v60  ;;  %v1183_v62 = vrot.slane %v4769_v23, 7  ;;  %v901_v45 = vadd.f32 %v4690_v4, %v879_v25  ;;  %v882_v5 = vmul.f32 %v4794_v37, %v4680_v2  ;;  %v920_v6 = vrot.slane %v4794_v37, 5 }
 0x23b   : > { %v1053_v7 = vrot.slane %v4794_v37, 6  ;;  %v940_v9 = vsel %vm929_vm1, %v917_v16, %v918_v58  ;;  %v941_v15 = vsel %vm929_vm1, %v916_v34, %v917_v16  ;;  %v1073_v18 = vsel %vm1062_vm2, %v1050_v33, %v1051_v59 }
 0x23c   : > { %v1074_v19 = vsel %vm1062_vm2, %v1049_v20, %v1050_v33  ;;  %v4822_v55 = vpop.f32.mrb[8].mxu0  ;;  %v1018_v0 = vmul.f32 %v4705_v54, %v941_v15  ;;  %v1019_v32 = vmul.f32 %v4705_v54, %v940_v9  ;;  %v1186_v40 = vrot.slane %v4794_v37, 7 }
 0x23d   : > { %5898 = vst [vmem:[#allocation18_spill] sm:$0xff] %v4822_v55  ;;  %v4827_v38 = vmul.f32 %v4731_v27, %v1074_v19  ;;  %v4830_v41 = vpop.f32.mrb[9].mxu0  ;;  %v4833_v34 = vmul.f32 %v4731_v27, %v1073_v18  ;;  %v1206_v43 = vsel %vm1195_vm3, %v1183_v62, %v1184_v61  ;;  %v1207_v20 = vsel %vm1195_vm3, %v1182_v1, %v1183_v62 }
 0x23e   : > { %5899 = vst [vmem:[#allocation19_spill] sm:$0xff] %v4830_v41  ;;  %v881_v36 = vmul.f32 %v4680_v2, %v4803_v60  ;;  %v4841_v24 = vadd.f32 %v1018_v0, %v901_v45  ;;  %v4843_v48 = vadd.f32 %v1019_v32, %v902_v47  ;;  %v4846_v11 = vmul.f32 %v4736_v30, %v1207_v20 }
 0x23f   : > { %v904_v49 = vadd.f32 %v4690_v4, %v882_v5  ;;  %v4850_v50 = vmul.f32 %v4736_v30, %v1206_v43  ;;  %v919_v51 = vrot.slane %v4803_v60, 5  ;;  %v1052_v28 = vrot.slane %v4803_v60, 6 }
 0x240   : > { %v1185_v1 = vrot.slane %v4803_v60, 7  ;;  %v4855_v17 = vpop.f32.mrb[10].mxu0  ;;  %v903_v53 = vadd.f32 %v4690_v4, %v881_v36  ;;  %v884_v35 = vmul.f32 %v4822_v55, %v4680_v2  ;;  %v922_v47 = vrot.slane %v4822_v55, 5 }
 0x241   : > { %5900 = vst [vmem:[#allocation20_spill] sm:$0xff] %v4855_v17  ;;  %v1055_v25 = vrot.slane %v4822_v55, 6  ;;  %v4862_v16 = vpop.f32.mrb[11].mxu0  ;;  %v938_v33 = vsel %vm929_vm1, %v919_v51, %v920_v6  ;;  %v939_v62 = vsel %vm929_vm1, %v918_v58, %v919_v51  ;;  %v1071_v45 = vsel %vm1062_vm2, %v1052_v28, %v1053_v7 }
 0x242   : > { %5901 = vst [vmem:[#allocation21_spill] sm:$0xff] %v4862_v16  ;;  %v1072_v5 = vsel %vm1062_vm2, %v1051_v59, %v1052_v28  ;;  %v1020_v9 = vmul.f32 %v4705_v54, %v939_v62  ;;  %v1021_v15 = vmul.f32 %v4705_v54, %v938_v33  ;;  %v1188_v19 = vrot.slane %v4822_v55, 7 }
 0x243   : > { %v4875_v18 = vmul.f32 %v4731_v27, %v1072_v5  ;;  %v4879_v0 = vmul.f32 %v4731_v27, %v1071_v45  ;;  %v1204_v58 = vsel %vm1195_vm3, %v1185_v1, %v1186_v40  ;;  %v1205_v32 = vsel %vm1195_vm3, %v1184_v61, %v1185_v1 }
 0x244   : > { %v883_v59 = vmul.f32 %v4680_v2, %v4830_v41  ;;  %v4887_v43 = vpop.f32.mrb[12].mxu0  ;;  %v4889_v20 = vadd.f32 %v1020_v9, %v903_v53  ;;  %v4891_v36 = vadd.f32 %v1021_v15, %v904_v49  ;;  %v4894_v51 = vmul.f32 %v4736_v30, %v1205_v32 }
 0x245   : > { %5902 = vst [vmem:[#allocation22_spill] sm:$0xff] %v4887_v43  ;;  %v906_v28 = vadd.f32 %v4690_v4, %v884_v35  ;;  %v4897_v33 = vpop.f32.mrb[13].mxu0  ;;  %v4900_v62 = vmul.f32 %v4736_v30, %v1204_v58  ;;  %v921_v61 = vrot.slane %v4830_v41, 5  ;;  %v1054_v1 = vrot.slane %v4830_v41, 6 }
 0x246   : > { %5903 = vst [vmem:[#allocation23_spill] sm:$0xff] %v4897_v33  ;;  %v1187_v45 = vrot.slane %v4830_v41, 7  ;;  %v905_v53 = vadd.f32 %v4690_v4, %v883_v59  ;;  %v886_v49 = vmul.f32 %v4855_v17, %v4680_v2  ;;  %v924_v5 = vrot.slane %v4855_v17, 5 }
 0x247   : > { %v1057_v35 = vrot.slane %v4855_v17, 6  ;;  %v936_v9 = vsel %vm929_vm1, %v921_v61, %v922_v47  ;;  %v937_v15 = vsel %vm929_vm1, %v920_v6, %v921_v61  ;;  %v1069_v58 = vsel %vm1062_vm2, %v1054_v1, %v1055_v25 }
 0x248   : > { %v1070_v32 = vsel %vm1062_vm2, %v1053_v7, %v1054_v1  ;;  %v4918_v59 = vpop.f32.mrb[14].mxu0  ;;  %v1022_v14 = vmul.f32 %v4705_v54, %v937_v15  ;;  %v1023_v13 = vmul.f32 %v4705_v54, %v936_v9  ;;  %v1190_v55 = vrot.slane %v4855_v17, 7 }
 0x249   : > { %5904 = vst [vmem:[#allocation24_spill] sm:$0xff] %v4918_v59  ;;  %v4923_v12 = vmul.f32 %v4731_v27, %v1070_v32  ;;  %v4926_v41 = vpop.f32.mrb[15].mxu0  ;;  %v4929_v6 = vmul.f32 %v4731_v27, %v1069_v58  ;;  %v1202_v61 = vsel %vm1195_vm3, %v1187_v45, %v1188_v19  ;;  %v1203_v7 = vsel %vm1195_vm3, %v1186_v40, %v1187_v45 }
 0x24a   : > { %5905 = vst [vmem:[#allocation25_spill] sm:$0xff] %v4926_v41  ;;  %v885_v1 = vmul.f32 %v4680_v2, %v4862_v16  ;;  %v4937_v9 = vadd.f32 %v1022_v14, %v905_v53  ;;  %v4939_v15 = vadd.f32 %v1023_v13, %v906_v28  ;;  %v4942_v32 = vmul.f32 %v4736_v30, %v1203_v7 }
 0x24b   : > { %v908_v17 = vadd.f32 %v4690_v4, %v886_v49  ;;  %v4946_v58 = vmul.f32 %v4736_v30, %v1202_v61  ;;  %v923_v37 = vrot.slane %v4862_v16, 5  ;;  %v1056_v60 = vrot.slane %v4862_v16, 6 }
 0x24c   : > { %v1189_v40 = vrot.slane %v4862_v16, 7  ;;  %v907_v45 = vadd.f32 %v4690_v4, %v885_v1  ;;  %v888_v13 = vmul.f32 %v4887_v43, %v4680_v2  ;;  %v926_v14 = vrot.slane %v4887_v43, 5 }
 0x24d   : > { %v1059_v28 = vrot.slane %v4887_v43, 6  ;;  %v934_v53 = vsel %vm929_vm1, %v923_v37, %v924_v5  ;;  %v935_v49 = vsel %vm929_vm1, %v922_v47, %v923_v37  ;;  %v1067_v61 = vsel %vm1062_vm2, %v1056_v60, %v1057_v35 }
 0x24e   : > { %v1068_v7 = vsel %vm1062_vm2, %v1055_v25, %v1056_v60  ;;  %v1024_v1 = vmul.f32 %v4705_v54, %v935_v49  ;;  %v1025_v16 = vmul.f32 %v4705_v54, %v934_v53  ;;  %v1192_v23 = vrot.slane %v4887_v43, 7 }
 0x24f   : > { %v4967_v46 = vmul.f32 %v4731_v27, %v1068_v7  ;;  %v4971_v22 = vmul.f32 %v4731_v27, %v1067_v61  ;;  %v1200_v37 = vsel %vm1195_vm3, %v1189_v40, %v1190_v55  ;;  %v1201_v47 = vsel %vm1195_vm3, %v1188_v19, %v1189_v40 }
 0x250   : > { %v887_v60 = vmul.f32 %v4680_v2, %v4897_v33  ;;  %v4979_v25 = vadd.f32 %v1024_v1, %v907_v45  ;;  %v4981_v53 = vadd.f32 %v1025_v16, %v908_v17  ;;  %v4984_v49 = vmul.f32 %v4736_v30, %v1201_v47 }
 0x251   : > { %v910_v7 = vadd.f32 %v4690_v4, %v888_v13  ;;  %v4988_v61 = vmul.f32 %v4736_v30, %v1200_v37  ;;  %v925_v43 = vrot.slane %v4897_v33, 5  ;;  %v1058_v31 = vrot.slane %v4897_v33, 6 }
 0x252   : > { %5906 = vst [vmem:[#allocation26_spill] sm:$0xff] %v4984_v49  ;;  %v1191_v19 = vrot.slane %v4897_v33, 7  ;;  %v909_v40 = vadd.f32 %v4690_v4, %v887_v60  ;;  %v890_v17 = vmul.f32 %v4918_v59, %v4680_v2  ;;  %v928_v16 = vrot.slane %v4918_v59, 5 }
 0x253   : > { %5907 = vst [vmem:[#allocation27_spill] sm:$0xff] %v4988_v61  ;;  %v1061_v45 = vrot.slane %v4918_v59, 6  ;;  %v932_v13 = vsel %vm929_vm1, %v925_v43, %v926_v14  ;;  %v933_v1 = vsel %vm929_vm1, %v924_v5, %v925_v43  ;;  %v1065_v37 = vsel %vm1062_vm2, %v1058_v31, %v1059_v28 }
 0x254   : > { %v1066_v47 = vsel %vm1062_vm2, %v1057_v35, %v1058_v31  ;;  %v1026_v60 = vmul.f32 %v4705_v54, %v933_v1  ;;  %v1027_v33 = vmul.f32 %v4705_v54, %v932_v13  ;;  %v1194_v61 = vrot.slane %v4918_v59, 7 }
 0x255   : > { %v5009_v3 = vmul.f32 %v4731_v27, %v1066_v47  ;;  %v5013_v49 = vmul.f32 %v4731_v27, %v1065_v37  ;;  %v1198_v43 = vsel %vm1195_vm3, %v1191_v19, %v1192_v23  ;;  %v1199_v5 = vsel %vm1195_vm3, %v1190_v55, %v1191_v19 }
 0x256   : > { %v5909_v31 = vrot.slane %v4697_v8, 5  ;;  %v5023_v13 = vadd.f32 %v1026_v60, %v909_v40  ;;  %v5025_v1 = vadd.f32 %v1027_v33, %v910_v7  ;;  %v5028_v47 = vmul.f32 %v4736_v30, %v1199_v5 }
 0x257   : > { %5908 = vst [vmem:[#allocation28_spill] sm:$0xff] %v5013_v49  ;;  %v912_v37 = vadd.f32 %v4690_v4, %v890_v17  ;;  %v889_v59 = vmul.f32 %v4680_v2, %v4926_v41  ;;  %v927_v49 = vrot.slane %v4926_v41, 5  ;;  %v1060_v55 = vrot.slane %v4926_v41, 6 }
 0x258   : > { %v945_v35 = vsel %vm929_vm1, %v928_v16, %v5909_v31  ;;  %v1193_v19 = vrot.slane %v4926_v41, 7  ;;  %v5910_v33 = vrot.slane %v4697_v8, 6  ;;  %v5911_v60 = vrot.slane %v4697_v8, 7 }
 0x259   : > { %v993_v40 = vsel %vm929_vm1, 0.0, %v945_v35  ;;  %v1164_v2 = vadd.f32 %v4752_v10, %v4746_v39  ;;  %v911_v5 = vadd.f32 %v4690_v4, %v889_v59  ;;  %v930_v31 = vsel %vm929_vm1, %v927_v49, %v928_v16 }
 0x25a   : > { %v1078_v7 = vsel %vm1062_vm2, %v1061_v45, %v5910_v33  ;;  %v1211_v17 = vsel %vm1195_vm3, %v1194_v61, %v5911_v60  ;;  %v931_v35 = vsel %vm929_vm1, %v926_v14, %v927_v49  ;;  %v1063_v41 = vsel %vm1062_vm2, %v1060_v55, %v1061_v45 }
 0x25b   : > { %v5056_v33 = vmul.f32 %v4736_v30, %v1198_v43  ;;  %v1028_v8 = vmul.f32 %v4705_v54, %v931_v35  ;;  %v1029_v60 = vmul.f32 %v4705_v54, %v930_v31  ;;  %v1064_v39 = vsel %vm1062_vm2, %v1059_v28, %v1060_v55 }
 0x25c   : > { %v1162_v4 = vmul.f32 %v4731_v27, %v1063_v41  ;;  %v5065_v10 = vsel %vm1195_vm3, %v1193_v19, %v1194_v61  ;;  %v1197_v59 = vsel %vm1195_vm3, %v1192_v23, %v1193_v19  ;;  %v1014_v14 = vmul.f32 %v4705_v54, %v993_v40 }
 0x25d   : > { %v1044_v49 = vadd.f32 %v1028_v8, %v911_v5  ;;  %v1045_v16 = vadd.f32 %v1029_v60, %v912_v37  ;;  %v1161_v45 = vmul.f32 %v4731_v27, %v1064_v39  ;;  %v5072_v43 = vmul.f32 %v4736_v30, %v1197_v59 }
 0x25e   : > { %v1030_v28 = vadd.f32 %v1014_v14, %v4725_v26  ;;  %v1126_v41 = vsel %vm1062_vm2, 0.0, %v1078_v7  ;;  %v1259_v61 = vsel %vm1195_vm3, 0.0, %v1211_v17  ;;  %v5080_v55 = vadd.f32 %v4755_v42, %v1164_v2 }
 0x25f   : > { %v1177_v23 = vadd.f32 %v1161_v45, %v1044_v49  ;;  %v5082_v54 = vadd.f32 %v1162_v4, %v1045_v16  ;;  %v1147_v8 = vmul.f32 %v4731_v27, %v1126_v41  ;;  %v1280_v37 = vmul.f32 %v4736_v30, %v1259_v61 }
 0x260   : > { %v1313_v19 = vsub.f32 0.0, %v5080_v55  ;;  %v1165_v26 = vadd.f32 %v4775_v29, %v4786_v56  ;;  %v1166_v40 = vadd.f32 %v4778_v52, %v4788_v44  ;;  %v1167_v7 = vadd.f32 %v4827_v38, %v4841_v24 }
 0x261   : > { %v1163_v42 = vadd.f32 %v1147_v8, %v1030_v28  ;;  %v1168_v17 = vadd.f32 %v4833_v34, %v4843_v48  ;;  %v1169_v27 = vadd.f32 %v4875_v18, %v4889_v20  ;;  %v1170_v2 = vadd.f32 %v4879_v0, %v4891_v36 }
 0x262   : > { %v1330_v5 = vmul.f32 1.442695, %v1313_v19  ;;  %v5100_v31 = vadd.f32 %v4791_v57, %v1165_v26  ;;  %v5103_v29 = vadd.f32 %v4797_v21, %v1166_v40  ;;  %v5106_v52 = vadd.f32 %v4846_v11, %v1167_v7 }
 0x263   : > { %v5108_v56 = vadd.f32 %v1280_v37, %v1163_v42  ;;  %v5111_v44 = vadd.f32 %v4850_v50, %v1168_v17  ;;  %v5114_v38 = vadd.f32 %v4894_v51, %v1169_v27  ;;  %v5117_v34 = vadd.f32 %v4900_v62, %v1170_v2 }
 0x264   : > { %3965 = vpow2.f32 %v1330_v5  ;;  %v1314_v57 = vsub.f32 0.0, %v5100_v31  ;;  %v1315_v21 = vsub.f32 0.0, %v5103_v29  ;;  %v1316_v24 = vsub.f32 0.0, %v5106_v52 }
 0x265   : > { %v1312_v48 = vsub.f32 0.0, %v5108_v56  ;;  %v1317_v11 = vsub.f32 0.0, %v5111_v44  ;;  %v1318_v50 = vsub.f32 0.0, %v5114_v38  ;;  %v1319_v18 = vsub.f32 0.0, %v5117_v34 }
 0x266   : > { %v1332_v0 = vmul.f32 1.442695, %v1314_v57  ;;  %v1334_v20 = vmul.f32 1.442695, %v1315_v21  ;;  %v1336_v36 = vmul.f32 1.442695, %v1316_v24  ;;  %v1171_v51 = vadd.f32 %v4923_v12, %v4937_v9 }
 0x267   : > { %v1328_v62 = vmul.f32 1.442695, %v1312_v48  ;;  %v1338_v35 = vmul.f32 1.442695, %v1317_v11  ;;  %v1340_v60 = vmul.f32 1.442695, %v1318_v50  ;;  %v1172_v39 = vadd.f32 %v4929_v6, %v4939_v15 }
 0x268   : > { %3967 = vpow2.f32 %v1332_v0  ;;  %v1342_v4 = vmul.f32 1.442695, %v1319_v18  ;;  %v5131_v59 = vadd.f32 %v4942_v32, %v1171_v51  ;;  %v1173_v14 = vadd.f32 %v4967_v46, %v4979_v25  ;;  %v5912_v15 = vld [vmem:[#allocation26_spill] sm:$0xff]  ;;  %v5913_v32 = vld [vmem:[#allocation28_spill] sm:$0xff] }
 0x269   : > { %3969 = vpow2.f32 %v1328_v62  ;;  %v5136_v49 = vadd.f32 %v4946_v58, %v1172_v39  ;;  %v1174_v12 = vadd.f32 %v4971_v22, %v4981_v53  ;;  %v1175_v9 = vadd.f32 %v5009_v3, %v5023_v13  ;;  %v5914_v58 = vld [vmem:[#allocation27_spill] sm:$0xff] }
 0x26a   : > { %3971 = vpow2.f32 %v1334_v20  ;;  %v1320_v6 = vsub.f32 0.0, %v5131_v59  ;;  %v5144_v16 = vadd.f32 %v5912_v15, %v1173_v14  ;;  %v1176_v45 = vadd.f32 %v5913_v32, %v5025_v1 }
 0x26b   : > { %3973 = vpow2.f32 %v1336_v36  ;;  %v1321_v46 = vsub.f32 0.0, %v5136_v49  ;;  %v5150_v25 = vadd.f32 %v5914_v58, %v1174_v12  ;;  %v5153_v22 = vadd.f32 %v5028_v47, %v1175_v9 }
 0x26c   : > { %3975 = vpow2.f32 %v1338_v35  ;;  %v1344_v3 = vmul.f32 1.442695, %v1320_v6  ;;  %v1322_v53 = vsub.f32 0.0, %v5144_v16  ;;  %v5157_v13 = vadd.f32 %v5056_v33, %v1176_v45 }
 0x26d   : > { %3977 = vpow2.f32 %v1340_v60  ;;  %v1295_v1 = vmul.f32 %v4736_v30, %v5065_v10  ;;  %v1346_v41 = vmul.f32 1.442695, %v1321_v46  ;;  %v5162_v61 = vadd.f32 %v5072_v43, %v1177_v23 }
 0x26e   : > { %v3966_v28 = vpop.eup %3965  ;;  %3979 = vpow2.f32 %v1342_v4  ;;  %v1323_v47 = vsub.f32 0.0, %v5150_v25  ;;  %v1348_v37 = vmul.f32 1.442695, %v1322_v53  ;;  %v1324_v19 = vsub.f32 0.0, %v5153_v22 }
 0x26f   : > { %v1361_v8 = vadd.f32 1.0, %v3966_v28  ;;  %3981 = vpow2.f32 %v1344_v3  ;;  %v5167_v33 = vadd.f32 %v1295_v1, %v5082_v54  ;;  %v1325_v5 = vsub.f32 0.0, %v5157_v13 }
 0x270   : > { %3983 = vpow2.f32 %v1346_v41  ;;  %v1350_v10 = vmul.f32 1.442695, %v1323_v47  ;;  %v1352_v23 = vmul.f32 1.442695, %v1324_v19  ;;  %v1326_v50 = vsub.f32 0.0, %v5162_v61 }
 0x271   : > { %3985 = vrcp.f32 %v1361_v8  ;;  %v1354_v11 = vmul.f32 1.442695, %v1325_v5  ;;  %v1327_v18 = vsub.f32 0.0, %v5167_v33 }
 0x272   : > { %v3968_v26 = vpop.eup %3967  ;;  %3987 = vpow2.f32 %v1348_v37  ;;  %v1356_v35 = vmul.f32 1.442695, %v1326_v50 }
 0x273   : > { %v3970_v40 = vpop.eup %3969  ;;  %v1362_v30 = vadd.f32 1.0, %v3968_v26  ;;  %v1358_v39 = vmul.f32 1.442695, %v1327_v18 }
 0x274   : > { %v3972_v7 = vpop.eup %3971  ;;  %v1360_v43 = vadd.f32 1.0, %v3970_v40 }
 0x275   : > { %v3974_v42 = vpop.eup %3973  ;;  %3989 = vrcp.f32 %v1362_v30  ;;  %v1363_v17 = vadd.f32 1.0, %v3972_v7 }
 0x276   : > { %v3976_v27 = vpop.eup %3975  ;;  %3991 = vrcp.f32 %v1360_v43  ;;  %v1364_v2 = vadd.f32 1.0, %v3974_v42 }
 0x277   : > { %v3978_v54 = vpop.eup %3977  ;;  %3993 = vpow2.f32 %v1350_v10  ;;  %v1365_v57 = vadd.f32 1.0, %v3976_v27 }
 0x278   : > { %3995 = vpow2.f32 %v1352_v23  ;;  %v3980_v21 = vpop.eup %3979  ;;  %v1366_v24 = vadd.f32 1.0, %v3978_v54 }
 0x279   : > { %3997 = vrcp.f32 %v1363_v17  ;;  %v3982_v48 = vpop.eup %3981  ;;  %v1367_v20 = vadd.f32 1.0, %v3980_v21 }
 0x27a   : > { %3999 = vrcp.f32 %v1364_v2  ;;  %v3984_v0 = vpop.eup %3983  ;;  %v1368_v51 = vadd.f32 1.0, %v3982_v48 }
 0x27b   : > { %4001 = vrcp.f32 %v1365_v57  ;;  %v3986_v36 = vpop.eup %3985  ;;  %v1369_v9 = vadd.f32 1.0, %v3984_v0 }
 0x27c   : > { %4003 = vrcp.f32 %v1366_v24  ;;  %v3988_v62 = vpop.eup %3987  ;;  %v5176_v15 = vmul.f32 %v3986_v36, %v5080_v55 }
 0x27d   : > { %4005 = vpow2.f32 %v1354_v11  ;;  %v1370_v32 = vadd.f32 1.0, %v3988_v62 }
 0x27e   : > { %4007 = vrcp.f32 %v1367_v20 }
 0x27f   : > { %v3990_v60 = vpop.eup %3989  ;;  %4009 = vrcp.f32 %v1368_v51 }
 0x280   : > { %v3992_v4 = vpop.eup %3991  ;;  %4011 = vpow2.f32 %v1356_v35  ;;  %v5181_v46 = vmul.f32 %v3990_v60, %v5100_v31 }
 0x281   : > { %v3994_v14 = vpop.eup %3993  ;;  %v5173_v12 = vmul.f32 %v3992_v4, %v5108_v56  ;;  %4013 = vpow2.f32 %v1358_v39 }
 0x282   : > { %v3996_v6 = vpop.eup %3995  ;;  %4015 = vrcp.f32 %v1369_v9  ;;  %v1371_v55 = vadd.f32 1.0, %v3994_v14 }
 0x283   : > { %v3998_v45 = vpop.eup %3997  ;;  %3694 = vmatprep.mubr.msk.f32.mxu1 %vm1428_vm4, %v5173_v12  ;;  %4017 = vrcp.f32 %v1370_v32  ;;  %v1372_v53 = vadd.f32 1.0, %v3996_v6 }
 0x284   : > { %v4000_v58 = vpop.eup %3999  ;;  %3695 = vmatmul.mubr.msk.f32.vlgmr.msra.gmra.mrb[0].mxu1 %vm1428_vm4, %v5176_v15  ;;  %v5188_v3 = vmul.f32 %v3998_v45, %v5103_v29  ;;  %4019 = vrcp.f32 %v1371_v55 }
 0x285   : > { %3697 = vmatprep.mubr.msk.f32.mxu1 %vm1428_vm4, %v5181_v46  ;;  %v4002_v56 = vpop.eup %4001  ;;  %v5191_v31 = vmul.f32 %v4000_v58, %v5106_v52  ;;  %4021 = vrcp.f32 %v1372_v53 }
 0x286   : > { %v4004_v28 = vpop.eup %4003  ;;  %v5198_v47 = vmul.f32 %v4002_v56, %v5111_v44 }
 0x287   : > { %v4006_v1 = vpop.eup %4005  ;;  %v5201_v37 = vmul.f32 %v4004_v28, %v5114_v38 }
 0x288   : > { %3698 = vmatmul.mubr.msk.f32.gmra.mrb[2].mxu1 %vm1428_vm4, %v5188_v3  ;;  %v1373_v41 = vadd.f32 1.0, %v4006_v1  ;;  %v4008_v8 = vpop.eup %4007 }
 0x289   : > { %3700 = vmatprep.mubr.msk.f32.mxu1 %vm1428_vm4, %v5191_v31  ;;  %v4010_v29 = vpop.eup %4009  ;;  %v5208_v40 = vmul.f32 %v4008_v8, %v5117_v34 }
 0x28a   : > { %v4012_v52 = vpop.eup %4011  ;;  %4023 = vrcp.f32 %v1373_v41  ;;  %v5211_v10 = vmul.f32 %v4010_v29, %v5131_v59 }
 0x28b   : > { %v4014_v19 = vpop.eup %4013  ;;  %v1374_v26 = vadd.f32 1.0, %v4012_v52 }
 0x28c   : > { %3701 = vmatmul.mubr.msk.f32.gmra.mrb[4].mxu1 %vm1428_vm4, %v5198_v47  ;;  %v1375_v44 = vadd.f32 1.0, %v4014_v19  ;;  %v4016_v30 = vpop.eup %4015 }
 0x28d   : > { %3703 = vmatprep.mubr.msk.f32.mxu1 %vm1428_vm4, %v5201_v37  ;;  %4025 = vrcp.f32 %v1374_v26  ;;  %v4018_v38 = vpop.eup %4017  ;;  %v5218_v7 = vmul.f32 %v4016_v30, %v5136_v49 }
 0x28e   : > { %4027 = vrcp.f32 %v1375_v44  ;;  %v4020_v43 = vpop.eup %4019  ;;  %v5221_v34 = vmul.f32 %v4018_v38, %v5144_v16 }
 0x28f   : > { %v4022_v23 = vpop.eup %4021  ;;  %v5228_v59 = vmul.f32 %v4020_v43, %v5150_v25 }
 0x290   : > { %3704 = vmatmul.mubr.msk.f32.gmra.mrb[6].mxu1 %vm1428_vm4, %v5208_v40  ;;  %v5231_v17 = vmul.f32 %v4022_v23, %v5153_v22  ;;  %v5255_v22 = vld [vmem:[%s5848_s7] ss:$0 sm:$0xff] }
 0x291   : > { %3706 = vmatprep.mubr.msk.f32.mxu1 %vm1428_vm4, %v5211_v10 }
 0x294   : > { %3707 = vmatmul.mubr.msk.f32.gmra.mrb[8].mxu1 %vm1428_vm4, %v5218_v7  ;;  %v4024_v42 = vpop.eup %4023 }
 0x295   : > { %3709 = vmatprep.mubr.msk.f32.mxu1 %vm1428_vm4, %v5221_v34  ;;  %v5238_v16 = vmul.f32 %v4024_v42, %v5157_v13 }
 0x297   : > { %v4026_v49 = vpop.eup %4025 }
 0x298   : > { %3710 = vmatmul.mubr.msk.f32.gmra.mrb[10].mxu1 %vm1428_vm4, %v5228_v59  ;;  %v4028_v27 = vpop.eup %4027  ;;  %v5241_v2 = vmul.f32 %v4026_v49, %v5162_v61 }
 0x299   : > { %3712 = vmatprep.mubr.msk.f32.mxu1 %vm1428_vm4, %v5231_v17  ;;  %v5248_v25 = vmul.f32 %v4028_v27, %v5167_v33 }
 0x29c   : > { %3713 = vmatmul.mubr.msk.f32.gmra.mrb[12].mxu1 %vm1428_vm4, %v5238_v16 }
 0x29d   : > { %3715 = vmatprep.mubr.msk.f32.mxu1 %vm1428_vm4, %v5241_v2 }
 0x2a0   : > { %3716 = vmatmul.mubr.msk.f32.gmra.mrb[14].mxu1 %vm1428_vm4, %v5248_v25 }
 0x357   : > { %v3696_v13 = vpop.f32.mrb[0].mxu1 }
 0x358   : > { %v5258_v61 = vadd.f32 %v3696_v13, %v5255_v22  ;;  %1839 = vrot.lane.b32.xlu1 %v3696_v13, %s4294_s30  ;;  %v1543_v5 = vpop.f32.mrb[1].mxu1 }
 0x359   : > { %v5262_v54 = vadd.f32 %v5255_v22, %v1543_v5  ;;  %1837 = vrot.lane.b32.xlu0 %v1543_v5, %s4294_s30 }
 0x35a   : > { %v1662_v33 = vmin.f32 %v5258_v61, 20.0  ;;  %vm1646_vm5 = vcmp.gt.f32.partialorder %v5258_v61, 20.0 }
 0x35b   : > { %v1661_v57 = vmin.f32 %v5262_v54, 20.0  ;;  %v3699_v21 = vpop.f32.mrb[2].mxu1  ;;  %vm1645_vm6 = vcmp.gt.f32.partialorder %v5262_v54, 20.0 }
 0x35c   : > { %v1679_v24 = vmul.f32 1.442695, %v1662_v33  ;;  %v5268_v48 = vadd.f32 %v3699_v21, %v5255_v22  ;;  %1903 = vrot.lane.b32.xlu1 %v3696_v13, %s4295_s12  ;;  %v1553_v11 = vpop.f32.mrb[3].mxu1 }
 0x35d   : > { %v1677_v50 = vmul.f32 1.442695, %v1661_v57  ;;  %v5272_v18 = vadd.f32 %v5255_v22, %v1553_v11  ;;  %1901 = vrot.lane.b32.xlu0 %v1543_v5, %s4295_s12 }
 0x35e   : > { %4029 = vpow2.f32 %v1679_v24  ;;  %v1664_v0 = vmin.f32 %v5268_v48, 20.0  ;;  %vm1648_vm7 = vcmp.gt.f32.partialorder %v5268_v48, 20.0 }
 0x35f   : > { %4031 = vpow2.f32 %v1677_v50  ;;  %v1663_v20 = vmin.f32 %v5272_v18, 20.0  ;;  %v5277_v36 = vpop.f32.mrb[4].mxu1  ;;  %vm1647_vm8 = vcmp.gt.f32.partialorder %v5272_v18, 20.0 }
 0x360   : > { %v1683_v51 = vmul.f32 1.442695, %v1664_v0  ;;  %v5281_v62 = vadd.f32 %v5277_v36, %v5255_v22  ;;  %1843 = vrot.lane.b32.xlu1 %v3699_v21, %s4294_s30  ;;  %v1563_v35 = vpop.f32.mrb[5].mxu1 }
 0x361   : > { %v1681_v60 = vmul.f32 1.442695, %v1663_v20  ;;  %v5285_v39 = vadd.f32 %v5255_v22, %v1563_v35  ;;  %1905 = vrot.lane.b32.xlu0 %v1553_v11, %s4295_s12 }
 0x362   : > { %4033 = vpow2.f32 %v1683_v51  ;;  %v1666_v4 = vmin.f32 %v5281_v62, 20.0  ;;  %vm1650_vm9 = vcmp.gt.f32.partialorder %v5281_v62, 20.0 }
 0x363   : > { %4035 = vpow2.f32 %v1681_v60  ;;  %v1665_v14 = vmin.f32 %v5285_v39, 20.0  ;;  %v5290_v9 = vpop.f32.mrb[6].mxu1  ;;  %vm1649_vm10 = vcmp.gt.f32.partialorder %v5285_v39, 20.0 }
 0x364   : > { %v1687_v6 = vmul.f32 1.442695, %v1666_v4  ;;  %v5294_v32 = vadd.f32 %v5290_v9, %v5255_v22  ;;  %1907 = vrot.lane.b32.xlu1 %v3699_v21, %s4295_s12  ;;  %v1573_v45 = vpop.f32.mrb[7].mxu1 }
 0x365   : > { %v1685_v58 = vmul.f32 1.442695, %v1665_v14  ;;  %v5298_v55 = vadd.f32 %v5255_v22, %v1573_v45  ;;  %1845 = vrot.lane.b32.xlu0 %v1563_v35, %s4294_s30 }
 0x366   : > { %4037 = vpow2.f32 %v1687_v6  ;;  %v1668_v56 = vmin.f32 %v5294_v32, 20.0  ;;  %vm1652_vm11 = vcmp.gt.f32.partialorder %v5294_v32, 20.0 }
 0x367   : > { %4039 = vpow2.f32 %v1685_v58  ;;  %v1667_v53 = vmin.f32 %v5298_v55, 20.0  ;;  %v5303_v28 = vpop.f32.mrb[8].mxu1  ;;  %vm1651_vm12 = vcmp.gt.f32.partialorder %v5298_v55, 20.0 }
 0x368   : > { %v4030_v1 = vpop.eup %4029  ;;  %v1691_v41 = vmul.f32 1.442695, %v1668_v56  ;;  %v5307_v8 = vadd.f32 %v5303_v28, %v5255_v22  ;;  %1841 = vrot.lane.b32.xlu1 %v1553_v11, %s4294_s30  ;;  %v5310_v29 = vpop.f32.mrb[9].mxu1 }
 0x369   : > { %v4032_v52 = vpop.eup %4031  ;;  %v1710_v19 = vadd.f32 1.0, %v4030_v1  ;;  %v1689_v26 = vmul.f32 1.442695, %v1667_v53  ;;  %v5314_v44 = vadd.f32 %v5255_v22, %v5310_v29  ;;  %1909 = vrot.lane.b32.xlu0 %v1563_v35, %s4295_s12 }
 0x36a   : > { %v1709_v30 = vadd.f32 1.0, %v4032_v52  ;;  %4041 = vpow2.f32 %v1691_v41  ;;  %v1670_v38 = vmin.f32 %v5307_v8, 20.0  ;;  %vm1654_vm13 = vcmp.gt.f32.partialorder %v5307_v8, 20.0 }
 0x36b   : > { %4043 = vlog2.f32 %v1710_v19  ;;  %v1669_v43 = vmin.f32 %v5314_v44, 20.0  ;;  %v5319_v23 = vpop.f32.mrb[10].mxu1  ;;  %vm1653_vm14 = vcmp.gt.f32.partialorder %v5314_v44, 20.0 }
 0x36c   : > { %v4034_v42 = vpop.eup %4033  ;;  %4045 = vlog2.f32 %v1709_v30  ;;  %v1695_v49 = vmul.f32 1.442695, %v1670_v38  ;;  %v5323_v27 = vadd.f32 %v5319_v23, %v5255_v22  ;;  %1847 = vrot.lane.b32.xlu1 %v5277_v36, %s4294_s30  ;;  %v5327_v13 = vpop.f32.mrb[11].mxu1 }
 0x36d   : > { %v4036_v5 = vpop.eup %4035  ;;  %v1712_v33 = vadd.f32 1.0, %v4034_v42  ;;  %4047 = vpow2.f32 %v1689_v26  ;;  %v1693_v57 = vmul.f32 1.442695, %v1669_v43  ;;  %v5331_v21 = vadd.f32 %v5255_v22, %v5327_v13  ;;  %1849 = vrot.lane.b32.xlu0 %v1573_v45, %s4294_s30 }
 0x36e   : > { %v1711_v24 = vadd.f32 1.0, %v4036_v5  ;;  %4049 = vpow2.f32 %v1695_v49  ;;  %v1672_v11 = vmin.f32 %v5323_v27, 20.0  ;;  %vm1656_vm15 = vcmp.gt.f32.partialorder %v5323_v27, 20.0 }
 0x36f   : > { %4051 = vlog2.f32 %v1712_v33  ;;  %v1671_v50 = vmin.f32 %v5331_v21, 20.0  ;;  %v5336_v0 = vpop.f32.mrb[12].mxu1  ;;  %vm1655_vm1 = vcmp.gt.f32.partialorder %v5331_v21, 20.0 }
 0x370   : > { %v4038_v20 = vpop.eup %4037  ;;  %4053 = vlog2.f32 %v1711_v24  ;;  %v1699_v51 = vmul.f32 1.442695, %v1672_v11  ;;  %v5340_v35 = vadd.f32 %v5336_v0, %v5255_v22  ;;  %1911 = vrot.lane.b32.xlu1 %v5277_v36, %s4295_s12  ;;  %v5344_v60 = vpop.f32.mrb[13].mxu1 }
 0x371   : > { %v4040_v4 = vpop.eup %4039  ;;  %v1714_v14 = vadd.f32 1.0, %v4038_v20  ;;  %4055 = vpow2.f32 %v1693_v57  ;;  %v1697_v6 = vmul.f32 1.442695, %v1671_v50  ;;  %v5348_v58 = vadd.f32 %v5255_v22, %v5344_v60  ;;  %1913 = vrot.lane.b32.xlu0 %v1573_v45, %s4295_s12 }
 0x372   : > { %v1713_v56 = vadd.f32 1.0, %v4040_v4  ;;  %4057 = vpow2.f32 %v1699_v51  ;;  %v1674_v53 = vmin.f32 %v5340_v35, 20.0  ;;  %vm1658_vm2 = vcmp.gt.f32.partialorder %v5340_v35, 20.0 }
 0x373   : > { %4059 = vlog2.f32 %v1714_v14  ;;  %v1673_v1 = vmin.f32 %v5348_v58, 20.0  ;;  %v5353_v36 = vpop.f32.mrb[14].mxu1  ;;  %vm1657_vm3 = vcmp.gt.f32.partialorder %v5348_v58, 20.0 }
 0x374   : > { %v4042_v41 = vpop.eup %4041  ;;  %4061 = vlog2.f32 %v1713_v56  ;;  %v1703_v52 = vmul.f32 1.442695, %v1674_v53  ;;  %v5357_v19 = vadd.f32 %v5353_v36, %v5255_v22  ;;  %1851 = vrot.lane.b32.xlu1 %v5290_v9, %s4294_s30  ;;  %v5361_v45 = vpop.f32.mrb[15].mxu1 }
 0x375   : > { %v4044_v26 = vpop.eup %4043  ;;  %v1716_v30 = vadd.f32 1.0, %v4042_v41  ;;  %4063 = vpow2.f32 %v1697_v6  ;;  %v1701_v38 = vmul.f32 1.442695, %v1673_v1  ;;  %v5365_v43 = vadd.f32 %v5255_v22, %v5361_v45  ;;  %1853 = vrot.lane.b32.xlu0 %v5310_v29, %s4294_s30 }
 0x376   : > { %v4046_v42 = vpop.eup %4045  ;;  %v1728_v49 = vmul.f32 0.6931472, %v4044_v26  ;;  %4065 = vpow2.f32 %v1703_v52  ;;  %v1676_v5 = vmin.f32 %v5357_v19, 20.0 }
 0x377   : > { %v4048_v33 = vpop.eup %4047  ;;  %v1726_v57 = vmul.f32 0.6931472, %v4046_v42  ;;  %4067 = vlog2.f32 %v1716_v30  ;;  %v1675_v24 = vmin.f32 %v5365_v43, 20.0 }
 0x378   : > { %v4050_v11 = vpop.eup %4049  ;;  %v1758_v22 = vsel %vm1646_vm5, %v5258_v61, %v1728_v49  ;;  %v1715_v50 = vadd.f32 1.0, %v4048_v33  ;;  %4069 = vpow2.f32 %v1701_v38  ;;  %v1707_v20 = vmul.f32 1.442695, %v1676_v5  ;;  %1915 = vrot.lane.b32.xlu1 %v5290_v9, %s4295_s12 }
 0x379   : > { %v4052_v51 = vpop.eup %4051  ;;  %1774 = vst.msk [vmem:[#allocation2 + $0x8] sm:$0xff] %vm1428_vm4, %v1758_v22  ;;  %v1790_v4 = vmul.f32 %v1758_v22, %v5176_v15  ;;  %v1757_v14 = vsel %vm1645_vm6, %v5262_v54, %v1726_v57  ;;  %v1718_v6 = vadd.f32 1.0, %v4050_v11  ;;  %v1705_v56 = vmul.f32 1.442695, %v1675_v24  ;;  %1917 = vrot.lane.b32.xlu0 %v5310_v29, %s4295_s12 }
 0x37a   : > { %v4054_v53 = vpop.eup %4053  ;;  %1773 = vst.msk [vmem:[#allocation2] sm:$0xff] %vm1428_vm4, %v1757_v14  ;;  %v1789_v61 = vmul.f32 %v1757_v14, %v5173_v12  ;;  %v1732_v1 = vmul.f32 0.6931472, %v4052_v51  ;;  %4071 = vlog2.f32 %v1715_v50  ;;  %vm1660_vm5 = vcmp.gt.f32.partialorder %v5357_v19, 20.0 }
 0x37b   : > { %v4056_v9 = vpop.eup %4055  ;;  %1806 = vst.msk [vmem:[#allocation3 + $0x8] sm:$0xff] %vm1428_vm4, %v1790_v4  ;;  %v1730_v41 = vmul.f32 0.6931472, %v4054_v53  ;;  %4073 = vlog2.f32 %v1718_v6  ;;  %vm1659_vm6 = vcmp.gt.f32.partialorder %v5365_v43, 20.0 }
 0x37c   : > { %v4058_v54 = vpop.eup %4057  ;;  %1805 = vst.msk [vmem:[#allocation3] sm:$0xff] %vm1428_vm4, %v1789_v61  ;;  %v1760_v52 = vsel %vm1648_vm7, %v5268_v48, %v1732_v1  ;;  %v1717_v29 = vadd.f32 1.0, %v4056_v9  ;;  %4075 = vpow2.f32 %v1707_v20  ;;  %1855 = vrot.lane.b32.xlu1 %v5303_v28, %s4294_s30 }
 0x37d   : > { %v4060_v26 = vpop.eup %4059  ;;  %1776 = vst.msk [vmem:[#allocation2 + $0x18] sm:$0xff] %vm1428_vm4, %v1760_v52  ;;  %v1792_v30 = vmul.f32 %v1760_v52, %v5188_v3  ;;  %v1759_v38 = vsel %vm1647_vm8, %v5272_v18, %v1730_v41  ;;  %v1720_v42 = vadd.f32 1.0, %v4058_v54  ;;  %4077 = vpow2.f32 %v1705_v56  ;;  %1857 = vrot.lane.b32.xlu0 %v5327_v13, %s4294_s30 }
 0x37e   : > { %v4062_v48 = vpop.eup %4061  ;;  %1775 = vst.msk [vmem:[#allocation2 + $0x10] sm:$0xff] %vm1428_vm4, %v1759_v38  ;;  %v1791_v49 = vmul.f32 %v1759_v38, %v5181_v46  ;;  %v1736_v5 = vmul.f32 0.6931472, %v4060_v26  ;;  %4079 = vlog2.f32 %v1717_v29 }
 0x37f   : > { %v4064_v33 = vpop.eup %4063  ;;  %1808 = vst.msk [vmem:[#allocation3 + $0x18] sm:$0xff] %vm1428_vm4, %v1792_v30  ;;  %v1734_v57 = vmul.f32 0.6931472, %v4062_v48  ;;  %4081 = vlog2.f32 %v1720_v42 }
 0x380   : > { %v4066_v18 = vpop.eup %4065  ;;  %1807 = vst.msk [vmem:[#allocation3 + $0x10] sm:$0xff] %vm1428_vm4, %v1791_v49  ;;  %v1762_v24 = vsel %vm1650_vm9, %v5281_v62, %v1736_v5  ;;  %v1719_v11 = vadd.f32 1.0, %v4064_v33  ;;  %1919 = vrot.lane.b32.xlu1 %v5303_v28, %s4295_s12 }
 0x381   : > { %v4068_v22 = vpop.eup %4067  ;;  %1778 = vst.msk [vmem:[#allocation2 + $0x28] sm:$0xff] %vm1428_vm4, %v1762_v24  ;;  %v1794_v50 = vmul.f32 %v1762_v24, %v5198_v47  ;;  %v1761_v20 = vsel %vm1649_vm10, %v5285_v39, %v1734_v57  ;;  %v1722_v51 = vadd.f32 1.0, %v4066_v18  ;;  %1921 = vrot.lane.b32.xlu0 %v5327_v13, %s4295_s12 }
 0x382   : > { %v4070_v4 = vpop.eup %4069  ;;  %1777 = vst.msk [vmem:[#allocation2 + $0x20] sm:$0xff] %vm1428_vm4, %v1761_v20  ;;  %v1793_v62 = vmul.f32 %v1761_v20, %v5191_v31  ;;  %v1740_v14 = vmul.f32 0.6931472, %v4068_v22  ;;  %4083 = vlog2.f32 %v1719_v11 }
 0x383   : > { %1810 = vst.msk [vmem:[#allocation3 + $0x28] sm:$0xff] %vm1428_vm4, %v1794_v50  ;;  %4085 = vlog2.f32 %v1722_v51  ;;  %v1721_v28 = vadd.f32 1.0, %v4070_v4 }
 0x384   : > { %v4072_v6 = vpop.eup %4071  ;;  %1809 = vst.msk [vmem:[#allocation3 + $0x20] sm:$0xff] %vm1428_vm4, %v1793_v62  ;;  %v1764_v39 = vsel %vm1652_vm11, %v5294_v32, %v1740_v14  ;;  %1859 = vrot.lane.b32.xlu1 %v5319_v23, %s4294_s30 }
 0x385   : > { %v4074_v13 = vpop.eup %4073  ;;  %1780 = vst.msk [vmem:[#allocation2 + $0x38] sm:$0xff] %vm1428_vm4, %v1764_v39  ;;  %v1796_v56 = vmul.f32 %v1764_v39, %v5208_v40  ;;  %v1738_v53 = vmul.f32 0.6931472, %v4072_v6  ;;  %4087 = vlog2.f32 %v1721_v28  ;;  %1861 = vrot.lane.b32.xlu0 %v5344_v60, %s4294_s30 }
 0x386   : > { %v4076_v61 = vpop.eup %4075  ;;  %v1744_v1 = vmul.f32 0.6931472, %v4074_v13 }
 0x387   : > { %v4078_v9 = vpop.eup %4077  ;;  %1812 = vst.msk [vmem:[#allocation3 + $0x38] sm:$0xff] %vm1428_vm4, %v1796_v56  ;;  %v1763_v32 = vsel %vm1651_vm12, %v5298_v55, %v1738_v53  ;;  %v1724_v41 = vadd.f32 1.0, %v4076_v61 }
 0x388   : > { %v4080_v54 = vpop.eup %4079  ;;  %1779 = vst.msk [vmem:[#allocation2 + $0x30] sm:$0xff] %vm1428_vm4, %v1763_v32  ;;  %v1795_v52 = vmul.f32 %v1763_v32, %v5201_v37  ;;  %v1766_v29 = vsel %vm1654_vm13, %v5307_v8, %v1744_v1  ;;  %v1723_v26 = vadd.f32 1.0, %v4078_v9  ;;  %1923 = vrot.lane.b32.xlu1 %v5319_v23, %s4295_s12  ;;  %v5442_v23 = vld [vmem:[%s5849_s8] sm:$0xff] }
 0x389   : > { %v4082_v30 = vpop.eup %4081  ;;  %1782 = vst.msk [vmem:[#allocation2 + $0x48] sm:$0xff] %vm1428_vm4, %v1766_v29  ;;  %v1798_v38 = vmul.f32 %v1766_v29, %v5218_v7  ;;  %v1742_v55 = vmul.f32 0.6931472, %v4080_v54  ;;  %4089 = vlog2.f32 %v1724_v41  ;;  %1925 = vrot.lane.b32.xlu0 %v5344_v60, %s4295_s12  ;;  %v5447_v60 = vld [vmem:[%s5849_s8 + $0x8] sm:$0xff] }
 0x38a   : > { %1811 = vst.msk [vmem:[#allocation3 + $0x30] sm:$0xff] %vm1428_vm4, %v1795_v52  ;;  %v1748_v42 = vmul.f32 0.6931472, %v4082_v30  ;;  %4091 = vlog2.f32 %v1723_v26 }
 0x38b   : > { %1814 = vst.msk [vmem:[#allocation3 + $0x48] sm:$0xff] %vm1428_vm4, %v1798_v38  ;;  %v1765_v8 = vsel %vm1653_vm14, %v5314_v44, %v1742_v55 }
 0x38c   : > { %v4084_v48 = vpop.eup %4083  ;;  %1781 = vst.msk [vmem:[#allocation2 + $0x40] sm:$0xff] %vm1428_vm4, %v1765_v8  ;;  %v1797_v49 = vmul.f32 %v1765_v8, %v5211_v10  ;;  %v1768_v5 = vsel %vm1656_vm15, %v5323_v27, %v1748_v42  ;;  %1863 = vrot.lane.b32.xlu1 %v5336_v0, %s4294_s30 }
 0x38d   : > { %v4086_v44 = vpop.eup %4085  ;;  %1784 = vst.msk [vmem:[#allocation2 + $0x58] sm:$0xff] %vm1428_vm4, %v1768_v5  ;;  %v1800_v33 = vmul.f32 %v1768_v5, %v5228_v59  ;;  %v1746_v57 = vmul.f32 0.6931472, %v4084_v48  ;;  %1865 = vrot.lane.b32.xlu0 %v5361_v45, %s4294_s30 }
 0x38e   : > { %1813 = vst.msk [vmem:[#allocation3 + $0x40] sm:$0xff] %vm1428_vm4, %v1797_v49  ;;  %v1752_v18 = vmul.f32 0.6931472, %v4086_v44 }
 0x38f   : > { %v4088_v24 = vpop.eup %4087  ;;  %1816 = vst.msk [vmem:[#allocation3 + $0x58] sm:$0xff] %vm1428_vm4, %v1800_v33  ;;  %v1767_v27 = vsel %vm1655_vm1, %v5331_v21, %v1746_v57 }
 0x390   : > { %1783 = vst.msk [vmem:[#allocation2 + $0x50] sm:$0xff] %vm1428_vm4, %v1767_v27  ;;  %v1799_v11 = vmul.f32 %v1767_v27, %v5221_v34  ;;  %v1770_v22 = vsel %vm1658_vm2, %v5340_v35, %v1752_v18  ;;  %v1750_v50 = vmul.f32 0.6931472, %v4088_v24  ;;  %1927 = vrot.lane.b32.xlu1 %v5336_v0, %s4295_s12 }
 0x391   : > { %1786 = vst.msk [vmem:[#allocation2 + $0x68] sm:$0xff] %vm1428_vm4, %v1770_v22  ;;  %v1802_v20 = vmul.f32 %v1770_v22, %v5238_v16  ;;  %1929 = vrot.lane.b32.xlu0 %v5361_v45, %s4295_s12  ;;  %v5528_v22 = vmov 0.0  }
 0x392   : > { %1815 = vst.msk [vmem:[#allocation3 + $0x50] sm:$0xff] %vm1428_vm4, %v1799_v11  ;;  %v1769_v21 = vsel %vm1657_vm3, %v5348_v58, %v1750_v50  ;;  %v5530_v50 = vmov 0.0  }
 0x393   : > { %v4090_v51 = vpop.eup %4089  ;;  %1818 = vst.msk [vmem:[#allocation3 + $0x68] sm:$0xff] %vm1428_vm4, %v1802_v20  ;;  %1785 = vst.msk [vmem:[#allocation2 + $0x60] sm:$0xff] %vm1428_vm4, %v1769_v21  ;;  %v1801_v0 = vmul.f32 %v1769_v21, %v5231_v17 }
 0x394   : > { %v4092_v35 = vpop.eup %4091  ;;  %v1756_v4 = vmul.f32 0.6931472, %v4090_v51  ;;  %1867 = vrot.lane.b32.xlu1 %v5353_v36, %s4294_s30 }
 0x395   : > { %1817 = vst.msk [vmem:[#allocation3 + $0x60] sm:$0xff] %vm1428_vm4, %v1801_v0  ;;  %v1754_v45 = vmul.f32 0.6931472, %v4092_v35 }
 0x396   : > { %v1772_v62 = vsel %vm1660_vm5, %v5357_v19, %v1756_v4 }
 0x397   : > { %1788 = vst.msk [vmem:[#allocation2 + $0x78] sm:$0xff] %vm1428_vm4, %v1772_v62  ;;  %v1804_v58 = vmul.f32 %v1772_v62, %v5248_v25  ;;  %v1771_v14 = vsel %vm1659_vm6, %v5365_v43, %v1754_v45 }
 0x398   : > { %1787 = vst.msk [vmem:[#allocation2 + $0x70] sm:$0xff] %vm1428_vm4, %v1771_v14  ;;  %v1803_v28 = vmul.f32 %v1771_v14, %v5241_v2  ;;  %1931 = vrot.lane.b32.xlu1 %v5353_v36, %s4295_s12 }
 0x399   : > { %1820 = vst.msk [vmem:[#allocation3 + $0x78] sm:$0xff] %vm1428_vm4, %v1804_v58 }
 0x39a   : > { %1819 = vst.msk [vmem:[#allocation3 + $0x70] sm:$0xff] %vm1428_vm4, %v1803_v28 }
 0x3ca   : > { %v1840_v19 = vpop.permute.xlu1 %1839 }
 0x3cb   : > { %1886 = vst.msk [vmem:[#allocation4 + $0x8] sm:$0xff] %vm401_vm0, %v1840_v19  ;;  %v1838_v6 = vpop.permute.xlu0 %1837 }
 0x3cc   : > { %1885 = vst.msk [vmem:[#allocation4] sm:$0xff] %vm401_vm0, %v1838_v6 }
 0x3ce   : > { %v1904_v39 = vpop.permute.xlu1 %1903 }
 0x3cf   : > { %1950 = vst.msk [vmem:[#allocation5 + $0x8] sm:$0xff] %vm401_vm0, %v1904_v39  ;;  %v1902_v43 = vpop.permute.xlu0 %1901 }
 0x3d0   : > { %1949 = vst.msk [vmem:[#allocation5] sm:$0xff] %vm401_vm0, %v1902_v43 }
 0x3d2   : > { %v1844_v13 = vpop.permute.xlu1 %1843 }
 0x3d3   : > { %1888 = vst.msk [vmem:[#allocation4 + $0x18] sm:$0xff] %vm401_vm0, %v1844_v13  ;;  %v1906_v36 = vpop.permute.xlu0 %1905 }
 0x3d4   : > { %1951 = vst.msk [vmem:[#allocation5 + $0x10] sm:$0xff] %vm401_vm0, %v1906_v36 }
 0x3d6   : > { %v1908_v56 = vpop.permute.xlu1 %1907 }
 0x3d7   : > { %1952 = vst.msk [vmem:[#allocation5 + $0x18] sm:$0xff] %vm401_vm0, %v1908_v56  ;;  %v1846_v53 = vpop.permute.xlu0 %1845 }
 0x3d8   : > { %1889 = vst.msk [vmem:[#allocation4 + $0x20] sm:$0xff] %vm401_vm0, %v1846_v53 }
 0x3da   : > { %v1842_v61 = vpop.permute.xlu1 %1841 }
 0x3db   : > { %1887 = vst.msk [vmem:[#allocation4 + $0x10] sm:$0xff] %vm401_vm0, %v1842_v61  ;;  %v1910_v1 = vpop.permute.xlu0 %1909 }
 0x3dc   : > { %1953 = vst.msk [vmem:[#allocation5 + $0x20] sm:$0xff] %vm401_vm0, %v1910_v1 }
 0x3de   : > { %v1848_v9 = vpop.permute.xlu1 %1847 }
 0x3df   : > { %1890 = vst.msk [vmem:[#allocation4 + $0x28] sm:$0xff] %vm401_vm0, %v1848_v9  ;;  %v1850_v32 = vpop.permute.xlu0 %1849 }
 0x3e0   : > { %1891 = vst.msk [vmem:[#allocation4 + $0x30] sm:$0xff] %vm401_vm0, %v1850_v32 }
 0x3e2   : > { %v1912_v41 = vpop.permute.xlu1 %1911 }
 0x3e3   : > { %1954 = vst.msk [vmem:[#allocation5 + $0x28] sm:$0xff] %vm401_vm0, %v1912_v41  ;;  %v1914_v54 = vpop.permute.xlu0 %1913 }
 0x3e4   : > { %1955 = vst.msk [vmem:[#allocation5 + $0x30] sm:$0xff] %vm401_vm0, %v1914_v54 }
 0x3e6   : > { %v1852_v52 = vpop.permute.xlu1 %1851 }
 0x3e7   : > { %1892 = vst.msk [vmem:[#allocation4 + $0x38] sm:$0xff] %vm401_vm0, %v1852_v52  ;;  %v1854_v29 = vpop.permute.xlu0 %1853 }
 0x3e8   : > { %1893 = vst.msk [vmem:[#allocation4 + $0x40] sm:$0xff] %vm401_vm0, %v1854_v29 }
 0x3ea   : > { %v1916_v26 = vpop.permute.xlu1 %1915 }
 0x3eb   : > { %1956 = vst.msk [vmem:[#allocation5 + $0x38] sm:$0xff] %vm401_vm0, %v1916_v26  ;;  %v1918_v30 = vpop.permute.xlu0 %1917 }
 0x3ec   : > { %1957 = vst.msk [vmem:[#allocation5 + $0x40] sm:$0xff] %vm401_vm0, %v1918_v30 }
 0x3ee   : > { %v1856_v38 = vpop.permute.xlu1 %1855 }
 0x3ef   : > { %1894 = vst.msk [vmem:[#allocation4 + $0x48] sm:$0xff] %vm401_vm0, %v1856_v38  ;;  %v1858_v55 = vpop.permute.xlu0 %1857 }
 0x3f0   : > { %1895 = vst.msk [vmem:[#allocation4 + $0x50] sm:$0xff] %vm401_vm0, %v1858_v55 }
 0x3f2   : > { %v1920_v42 = vpop.permute.xlu1 %1919 }
 0x3f3   : > { %1958 = vst.msk [vmem:[#allocation5 + $0x48] sm:$0xff] %vm401_vm0, %v1920_v42  ;;  %v1922_v8 = vpop.permute.xlu0 %1921 }
 0x3f4   : > { %1959 = vst.msk [vmem:[#allocation5 + $0x50] sm:$0xff] %vm401_vm0, %v1922_v8 }
 0x3f6   : > { %v1860_v48 = vpop.permute.xlu1 %1859 }
 0x3f7   : > { %1896 = vst.msk [vmem:[#allocation4 + $0x58] sm:$0xff] %vm401_vm0, %v1860_v48  ;;  %v1862_v49 = vpop.permute.xlu0 %1861 }
 0x3f8   : > { %1897 = vst.msk [vmem:[#allocation4 + $0x60] sm:$0xff] %vm401_vm0, %v1862_v49 }
 0x3fa   : > { %v1924_v5 = vpop.permute.xlu1 %1923 }
 0x3fb   : > { %1960 = vst.msk [vmem:[#allocation5 + $0x58] sm:$0xff] %vm401_vm0, %v1924_v5  ;;  %v1926_v44 = vpop.permute.xlu0 %1925 }
 0x3fc   : > { %1961 = vst.msk [vmem:[#allocation5 + $0x60] sm:$0xff] %vm401_vm0, %v1926_v44 }
 0x3fe   : > { %v1864_v33 = vpop.permute.xlu1 %1863 }
 0x3ff   : > { %1898 = vst.msk [vmem:[#allocation4 + $0x68] sm:$0xff] %vm401_vm0, %v1864_v33  ;;  %v1866_v57 = vpop.permute.xlu0 %1865 }
 0x400   : > { %1899 = vst.msk [vmem:[#allocation4 + $0x70] sm:$0xff] %vm401_vm0, %v1866_v57 }
 0x402   : > { %v1928_v18 = vpop.permute.xlu1 %1927 }
 0x403   : > { %1962 = vst.msk [vmem:[#allocation5 + $0x68] sm:$0xff] %vm401_vm0, %v1928_v18  ;;  %v1930_v24 = vpop.permute.xlu0 %1929 }
 0x404   : > { %1963 = vst.msk [vmem:[#allocation5 + $0x70] sm:$0xff] %vm401_vm0, %v1930_v24 }
 0x406   : > { %v1868_v27 = vpop.permute.xlu1 %1867 }
 0x407   : > { %1900 = vst.msk [vmem:[#allocation4 + $0x78] sm:$0xff] %vm401_vm0, %v1868_v27 }
 0x40a   : > { %v1932_v11 = vpop.permute.xlu1 %1931 }
 0x40b   : > { %1964 = vst.msk [vmem:[#allocation5 + $0x78] sm:$0xff] %vm401_vm0, %v1932_v11 }
 0x40c LB: >> { %v4296_v20 = vmov 1   ;;  %s5544_s29 = sshll.u32 %s4292_s24, 3  ;;  %v4297_v51 = vmov 0   ;;  %v4298_v35 = vmov 2   ;;  %v4299_v4 = vmov 7   ;;  %s1972_s24 = sadd.s32 1, %s4292_s24   ;;  %s4292_s24 = sphi %s5532_s24, %s1972_s24   ;;  %v4288_v50 = vphi %v5530_v50, %v2809_v50   ;;  %v4284_v22 = vphi %v5528_v22, %v2810_v22  }
 0x40d   : >> { %4094 = vset.pattern.permute.xlu1 %v4296_v20  ;;  %s1980_s12 = scalar_lea.vmem [#allocation4], %s5544_s29  ;;  %v4300_v45 = vmov 3   ;;  %v4301_v62 = vmov 4   ;;  %v4302_v58 = vmov 5   ;;  %v4303_v14 = vmov 6   ;;  %s1976_s13 = scalar_lea.vmem [#allocation2], %s5544_s29 }
 0x40e   : >> { %v1981_v21 = vld [vmem:[%s1980_s12] sm:$0xff]  ;;  %v4304_v19 = vmov 0.0|0.0   ;;  %vm4305_vm7 = vmmov 0   ;;  %v4306_v6 = vmov 0.0   ;;  %v4307_v39 = vmov 1966171168  }
 0x40f   : >> { %2122 = vxpose.xlu0.b32.start.end [1/1] (short) (narrow) %v1981_v21, 16  ;;  %3818 = vmatprep.subr.bf16.mxu0 %v4304_v19  ;;  %v1987_v43 = vunpack.c.l.s4 %v4307_v39  ;;  %v1977_v56 = vld [vmem:[%s1976_s13] sm:$0xff]  ;;  %v5556_v61 = vsub.s32 0, %v4675_v63  ;;  %s1978_s14 = scalar_lea.vmem [#allocation3], %s5544_s29  ;;  %s1982_s15 = scalar_lea.vmem [#allocation5], %s5544_s29  ;;  %vm2905_vm8 = vcmask 1040384  }
 0x410   : >> { %3821 = vmatprep.subr.bf16.mxu1 %v4304_v19  ;;  %3722 = vmatprep.mubr.msk.f32.mxu0 %vm4305_vm7, %v4306_v6  ;;  %v5564_v8 = vld [vmem:[%s1978_s14] sm:$0xff]  ;;  %v1985_v48 = vcombine.high %v1977_v56, %v1977_v56  ;;  %vm2907_vm9 = vcmask 1041408   ;;  %vm2909_vm10 = vcmask 1042432   ;;  %vm2911_vm11 = vcmask 1043456   ;;  %s2919_s16 = scalar_lea.vmem [#allocation6], %s5544_s29  ;;  %p1969_p11 = scmp.ge.s32.totalorder %s1972_s24, 16  }
 0x411   : >> { %3729 = vmatprep.mubr.msk.f32.mxu1 %vm4305_vm7, %v4306_v6  ;;  %v1988_v13 = vunpack.c.0.s8 %v1987_v43  ;;  %v2167_v44 = vrot.slane %v5564_v8, %v5556_v61  ;;  %vm2913_vm12 = vcmask 1044480   ;;  %vm2915_vm13 = vcmask 1045504   ;;  %s3413_s14 = sshll.u32 (%p1969_p11), %s5526_s22, 4  ;;  %s5800_s29 = scalar_lea.sflag (%p1969_p11), [#allocation8], %s377_s25  ;;  %s5795_s14 = int_to_ptr.vmem [resolvable:$true] %s3413_s14 }
 0x412   : >> { %vm2917_vm14 = vcmask 1046528   ;;  %s4206_s12 = scalar_lea.vmem (%p1969_p11), %s5795_s14, 256 }
 0x413   : >> { %v1991_v36 = vsub.s32 %v1988_v13, %v4675_v63  ;;  %p4207_p12 = scmp.ne.s32.totalorder (%p1969_p11), %s5795_s14, %s4206_s12 }
 0x415   : >> { %v1992_v53 = vrot.slane %v1977_v56, %v1991_v36  ;;  %v1999_v57 = vrot.slane %v1985_v48, %v1991_v36  ;;  %p4208_p13 = pnand (%p1969_p11), %p4207_p12, %p4409_p5 }
 0x417   : >> { %v2008_v1 = vrot.slane %v1992_v53, %v1991_v36  ;;  %v2000_v9 = vcombine.high %v1992_v53, %v1992_v53  ;;  %v2001_v39 = vcombine.high %v1999_v57, %v1999_v57  ;;  %p4209_p0 = pneg (%p1969_p11), %p4208_p13 }
 0x419   : >> { %v2037_v32 = vrot.slane %v2008_v1, %v5556_v61  ;;  %v2022_v41 = vrot.slane %v2000_v9, %v1991_v36  ;;  %v2030_v26 = vcombine.high %v2008_v1, %v2008_v1  ;;  %v2029_v9 = vrot.slane %v2001_v39, %v1991_v36 }
 0x41b   : >> { %v2074_v54 = vmul.f32 %v2037_v32, %v5442_v23  ;;  %v2041_v52 = vrot.slane %v2022_v41, %v5556_v61  ;;  %v2045_v55 = vrot.slane %v2030_v26, %v5556_v61  ;;  %v2032_v49 = vcombine.high %v2022_v41, %v2022_v41 }
 0x41c   : >> { %v2348_v41 = vsub.s32 2, %v4675_v63 }
 0x41d   : >> { %v2090_v29 = vmul.f32 1.442695, %v2074_v54  ;;  %v2076_v30 = vmul.f32 %v2041_v52, %v5442_v23  ;;  %v2078_v5 = vmul.f32 %v2045_v55, %v5442_v23  ;;  %v2049_v11 = vrot.slane %v2032_v49, %v5556_v61 }
 0x41e   : >> { %v2349_v48 = vrot.slane %v5564_v8, %v2348_v41  ;;  %v2057_v49 = vrot.slane %v2029_v9, %v5556_v61 }
 0x41f   : >> { %4110 = vpow2.f32 %v2090_v29  ;;  %v2094_v38 = vmul.f32 1.442695, %v2076_v30  ;;  %v2098_v27 = vmul.f32 1.442695, %v2078_v5  ;;  %v2079_v29 = vmul.f32 %v2045_v55, %v5447_v60 }
 0x421   : >> { %4112 = vpow2.f32 %v2094_v38  ;;  %v2100_v5 = vmul.f32 1.442695, %v2079_v29 }
 0x422   : >> { %4114 = vpow2.f32 %v2098_v27  ;;  %v2084_v27 = vmul.f32 %v2057_v49, %v5442_v23 }
 0x429   : >> { %v4111_v33 = vpop.eup %4110 }
 0x42a   : >> { %v2170_v21 = vmul.f32 %v4288_v50, %v4111_v33  ;;  %v2077_v50 = vmul.f32 %v2041_v52, %v5447_v60 }
 0x42c   : >> { %v2096_v54 = vmul.f32 1.442695, %v2077_v50 }
 0x438   : >> { %4093 = vset.pattern.permute.xlu0 %v4297_v51 }
 0x48f   : >> { %v2138_v0 = vpop.trf.xlu0 }
 0x490   : >> { %2248 = vperm.xlu1 %4094, %v2138_v0   ;;  %2156 = vperm.xlu0 %4093, %v2138_v0  }
 0x493   : >> { %v2139_v28 = vpop.trf.xlu0 }
 0x494   : >> { %4095 = vset.pattern.permute.xlu1 %v4298_v35  ;;  %4107 = vset.pattern.permute.xlu0 %v4299_v4 }
 0x495   : >> { %2339 = vperm.xlu1 %4095, %v2138_v0   ;;  %2794 = vperm.xlu0 %4107, %v2138_v0  }
 0x499   : >> { %4096 = vset.pattern.permute.xlu1 %v4300_v45 }
 0x49a   : >> { %2430 = vperm.xlu1 %4096, %v2138_v0  }
 0x49e   : >> { %4097 = vset.pattern.permute.xlu1 %v4301_v62 }
 0x49f   : >> { %2521 = vperm.xlu1 %4097, %v2138_v0  }
 0x4a3   : >> { %4098 = vset.pattern.permute.xlu1 %v4302_v58 }
 0x4a4   : >> { %2612 = vperm.xlu1 %4098, %v2138_v0  }
 0x4a8   : >> { %4099 = vset.pattern.permute.xlu1 %v4303_v14 }
 0x4a9   : >> { %2703 = vperm.xlu1 %4099, %v2138_v0   ;;  %v2015_v0 = vrot.slane %v1999_v57, %v1991_v36 }
 0x4ad   : >> { %4100 = vset.pattern.permute.xlu1 %v4297_v51  ;;  %v2075_v51 = vmul.f32 %v2037_v32, %v5447_v60 }
 0x4ae   : >> { %2161 = vperm.xlu1 %4100, %v2139_v28  }
 0x4b2   : >> { %4101 = vset.pattern.permute.xlu1 %v4296_v20 }
 0x4b3   : >> { %2252 = vperm.xlu1 %4101, %v2139_v28  }
 0x4b7   : >> { %4102 = vset.pattern.permute.xlu1 %v4298_v35  ;;  %v2257_v35 = vsub.s32 1, %v4675_v63 }
 0x4b8   : >> { %2343 = vperm.xlu1 %4102, %v2139_v28  }
 0x4b9   : >> { %v2258_v43 = vrot.slane %v5564_v8, %v2257_v35 }
 0x4bc   : >> { %4103 = vset.pattern.permute.xlu1 %v4300_v45  ;;  %v2080_v45 = vmul.f32 %v2049_v11, %v5442_v23 }
 0x4bd   : >> { %2434 = vperm.xlu1 %4103, %v2139_v28  }
 0x4be   : >> { %v2102_v13 = vmul.f32 1.442695, %v2080_v45 }
 0x4c1   : >> { %4104 = vset.pattern.permute.xlu1 %v4301_v62 }
 0x4c2   : >> { %2525 = vperm.xlu1 %4104, %v2139_v28  }
 0x4c6   : >> { %4105 = vset.pattern.permute.xlu1 %v4302_v58  ;;  %v2092_v58 = vmul.f32 1.442695, %v2075_v51 }
 0x4c7   : >> { %2616 = vperm.xlu1 %4105, %v2139_v28  }
 0x4c8   : >> { %4116 = vpow2.f32 %v2092_v58 }
 0x4c9   : >> { %4118 = vpow2.f32 %v2102_v13 }
 0x4ca   : >> { %4120 = vpow2.f32 %v2096_v54  ;;  %v2033_v54 = vcombine.high %v2029_v9, %v2029_v9 }
 0x4cb   : >> { %4106 = vset.pattern.permute.xlu1 %v4303_v14  ;;  %v4113_v14 = vpop.eup %4112 }
 0x4cc   : >> { %2707 = vperm.xlu1 %4106, %v2139_v28   ;;  %v4115_v52 = vpop.eup %4114 }
 0x4d0   : >> { %4108 = vset.pattern.permute.xlu1 %v4299_v4 }
 0x4d1   : >> { %2798 = vperm.xlu1 %4108, %v2139_v28   ;;  %v2053_v28 = vrot.slane %v2015_v0, %v5556_v61 }
 0x4d2   : >> { %v4117_v55 = vpop.eup %4116 }
 0x4d3   : >> { %v2082_v1 = vmul.f32 %v2053_v28, %v5442_v23  ;;  %v4119_v35 = vpop.eup %4118  ;;  %v2171_v45 = vmul.f32 %v4284_v22, %v4117_v55  ;;  %v2083_v58 = vmul.f32 %v2053_v28, %v5447_v60  ;;  %v2085_v22 = vmul.f32 %v2057_v49, %v5447_v60 }
 0x4d4   : >> { %v4121_v13 = vpop.eup %4120  ;;  %v2621_v49 = vsub.s32 5, %v4675_v63 }
 0x4d5   : >> { %v2106_v38 = vmul.f32 1.442695, %v2082_v1  ;;  %v2112_v9 = vmul.f32 1.442695, %v2085_v22 }
 0x4d7   : >> { %4122 = vpow2.f32 %v2106_v38 }
 0x4d8   : >> { %4124 = vpow2.f32 %v2100_v5 }
 0x4e1   : >> { %v4123_v28 = vpop.eup %4122 }
 0x4e2   : >> { %v4125_v55 = vpop.eup %4124 }
 0x50f   : >> { %v2249_v42 = vpop.permute.xlu1 %2248  ;;  %v2157_v18 = vpop.permute.xlu0 %2156 }
 0x510   : >> { %v2168_v20 = vmul.f32 %v2167_v44, %v2157_v18  ;;  %v2259_v32 = vmul.f32 %v2258_v43, %v2249_v42  ;;  %v2081_v42 = vmul.f32 %v2049_v11, %v5447_v60  ;;  %v2439_v18 = vsub.s32 3, %v4675_v63 }
 0x512   : >> { %v5574_v62 = vadd.f32 %v2170_v21, %v2168_v20  ;;  %v2031_v20 = vcombine.high %v2015_v0, %v2015_v0  ;;  %v2104_v51 = vmul.f32 1.442695, %v2081_v42  ;;  %v2440_v11 = vrot.slane %v5564_v8, %v2439_v18 }
 0x513   : >> { %v2530_v0 = vsub.s32 4, %v4675_v63  ;;  %v2065_v18 = vrot.slane %v2033_v54, %v5556_v61 }
 0x514   : >> { %v2340_v24 = vpop.permute.xlu1 %2339  ;;  %v2261_v53 = vmul.f32 %v4113_v14, %v5574_v62  ;;  %v2110_v14 = vmul.f32 1.442695, %v2084_v27  ;;  %4126 = vpow2.f32 %v2104_v51 }
 0x515   : >> { %v2350_v57 = vmul.f32 %v2349_v48, %v2340_v24  ;;  %v2061_v24 = vrot.slane %v2031_v20, %v5556_v61 }
 0x516   : >> { %v5585_v26 = vadd.f32 %v2261_v53, %v2259_v32  ;;  %v2108_v32 = vmul.f32 1.442695, %v2083_v58  ;;  %4128 = vpow2.f32 %v2110_v14 }
 0x517   : >> { %v2086_v29 = vmul.f32 %v2061_v24, %v5442_v23  ;;  %v2087_v27 = vmul.f32 %v2061_v24, %v5447_v60 }
 0x518   : >> { %v2352_v36 = vmul.f32 %v4115_v52, %v5585_v26  ;;  %4130 = vpow2.f32 %v2108_v32 }
 0x519   : >> { %v2431_v4 = vpop.permute.xlu1 %2430  ;;  %4132 = vpow2.f32 %v2112_v9  ;;  %v2116_v24 = vmul.f32 1.442695, %v2087_v27 }
 0x51a   : >> { %v5597_v21 = vadd.f32 %v2352_v36, %v2350_v57  ;;  %v2441_v41 = vmul.f32 %v2440_v11, %v2431_v4  ;;  %v2531_v36 = vrot.slane %v5564_v8, %v2530_v0  ;;  %v5612_v57 = vld [vmem:[%s1982_s15] sm:$0xff] }
 0x51b   : >> { %v2265_v14 = vrot.slane %v5612_v57, 1 }
 0x51c   : >> { %v2443_v53 = vmul.f32 %v4119_v35, %v5597_v21 }
 0x51e   : >> { %v5579_v56 = vpop.permute.xlu1 %2521  ;;  %v5608_v5 = vadd.f32 %v2443_v53, %v2441_v41  ;;  %v4127_v61 = vpop.eup %4126  ;;  %v2356_v41 = vrot.slane %v5612_v57, 2 }
 0x51f   : >> { %v2532_v20 = vmul.f32 %v2531_v36, %v5579_v56  ;;  %v2088_v56 = vmul.f32 %v2065_v18, %v5442_v23 }
 0x521   : >> { %v2118_v54 = vmul.f32 1.442695, %v2088_v56 }
 0x523   : >> { %v5587_v30 = vpop.permute.xlu1 %2612 }
 0x528   : >> { %v5593_v33 = vpop.permute.xlu1 %2703 }
 0x52d   : >> { %v2162_v39 = vpop.permute.xlu1 %2161 }
 0x52e   : >> { %v2169_v50 = vmul.f32 %v2167_v44, %v2162_v39 }
 0x530   : >> { %v2173_v1 = vadd.f32 %v2171_v45, %v2169_v50 }
 0x532   : >> { %v2253_v52 = vpop.permute.xlu1 %2252  ;;  %v2262_v38 = vmul.f32 %v4121_v13, %v2173_v1  ;;  %v3819_v44 = vpack.c.bf16 %v2173_v1, %v5574_v62  ;;  %v2114_v62 = vmul.f32 1.442695, %v2086_v29  ;;  %v2622_v13 = vrot.slane %v5564_v8, %v2621_v49 }
 0x533   : >> { %v2260_v42 = vmul.f32 %v2258_v43, %v2253_v52  ;;  %v2534_v43 = vmul.f32 %v4123_v28, %v5608_v5  ;;  %v2712_v28 = vsub.s32 6, %v4675_v63 }
 0x534   : >> { %3820 = vmatpush3.bf16.msra.mxu0 %v3819_v44  ;;  %4134 = vpow2.f32 %v2114_v62  ;;  %v2623_v29 = vmul.f32 %v2622_v13, %v5587_v30 }
 0x535   : >> { %v2264_v4 = vadd.f32 %v2262_v38, %v2260_v42  ;;  %3824 = vmatprep.subr.bf16.mxu0 %v4304_v19  ;;  %v2536_v50 = vadd.f32 %v2534_v43, %v2532_v20  ;;  %4136 = vpow2.f32 %v2116_v24  ;;  %v2713_v49 = vrot.slane %v5564_v8, %v2712_v28 }
 0x536   : >> { %4138 = vpow2.f32 %v2118_v54 }
 0x537   : >> { %v2344_v51 = vpop.permute.xlu1 %2343  ;;  %v2353_v35 = vmul.f32 %v4125_v55, %v2264_v4  ;;  %v3822_v45 = vpack.c.bf16 %v2264_v4, %v5585_v26  ;;  %3723 = vmatmul.mubr.msk.f32.vlgmr.msra.gmra.mrb[0].mxu0 %vm401_vm0, %v5612_v57  ;;  %v4129_v26 = vpop.eup %4128  ;;  %v2447_v4 = vrot.slane %v5612_v57, 3 }
 0x538   : >> { %v2351_v58 = vmul.f32 %v2349_v48, %v2344_v51  ;;  %3736 = vmatprep.mubr.msk.f32.mxu0 %vm4305_vm7, %v4306_v6  ;;  %v2089_v48 = vmul.f32 %v2065_v18, %v5447_v60  ;;  %v4131_v22 = vpop.eup %4130  ;;  %v2625_v52 = vmul.f32 %v4129_v26, %v2536_v50 }
 0x539   : >> { %3823 = vmatpush3.bf16.msra.mxu1 %v3822_v45  ;;  %v4133_v9 = vpop.eup %4132 }
 0x53a   : >> { %v2355_v39 = vadd.f32 %v2353_v35, %v2351_v58  ;;  %3827 = vmatprep.subr.bf16.mxu1 %v4304_v19  ;;  %v2120_v38 = vmul.f32 1.442695, %v2089_v48  ;;  %v2627_v30 = vadd.f32 %v2625_v52, %v2623_v29  ;;  %v2538_v35 = vrot.slane %v5612_v57, 4 }
 0x53b   : >> { %v2803_v58 = vsub.s32 7, %v4675_v63  ;;  %v2720_v29 = vrot.slane %v5612_v57, 6  ;;  %v5921_v63 = vld [vmem:[#allocation17_spill] sm:$0xff] (%p1969_p11) }
 0x53c   : >> { %v3825_v53 = vpack.c.bf16 %v2355_v39, %v5597_v21  ;;  %v2435_v0 = vpop.permute.xlu1 %2434  ;;  %v2444_v1 = vmul.f32 %v4127_v61, %v2355_v39  ;;  %3730 = vmatmul.mubr.msk.f32.vlgmr.msra.gmra.mrb[0].mxu1 %vm401_vm0, %v2265_v14  ;;  %4140 = vpow2.f32 %v2120_v38  ;;  %v2982_v23 = vsub.f32 (%p1969_p11), 0.0, %v5921_v63 }
 0x53d   : >> { %v2442_v32 = vmul.f32 %v2440_v11, %v2435_v0  ;;  %3743 = vmatprep.mubr.msk.f32.mxu1 %vm4305_vm7, %v4306_v6  ;;  %v2804_v48 = vrot.slane %v5564_v8, %v2803_v58 }
 0x53e   : >> { %3826 = vmatpush3.bf16.msra.mxu0 %v3825_v53  ;;  %v4135_v18 = vpop.eup %4134  ;;  %v2795_v53 = vpop.permute.xlu0 %2794 }
 0x53f   : >> { %v2446_v21 = vadd.f32 %v2444_v1, %v2442_v32  ;;  %3830 = vmatprep.subr.bf16.mxu0 %v4304_v19  ;;  %v2716_v43 = vmul.f32 %v4135_v18, %v2627_v30  ;;  %v4137_v45 = vpop.eup %4136  ;;  %v2805_v28 = vmul.f32 %v2804_v48, %v2795_v53 }
 0x541   : >> { %v3828_v11 = vpack.c.bf16 %v2446_v21, %v5608_v5  ;;  %v2526_v44 = vpop.permute.xlu1 %2525  ;;  %v2535_v42 = vmul.f32 %v4131_v22, %v2446_v21  ;;  %3737 = vmatmul.mubr.msk.f32.vlgmr.msra.gmra.mrb[2].mxu0 %vm401_vm0, %v2356_v41 }
 0x542   : >> { %v2533_v55 = vmul.f32 %v2531_v36, %v2526_v44  ;;  %3750 = vmatprep.mubr.msk.f32.mxu0 %vm4305_vm7, %v4306_v6  ;;  %v2714_v36 = vmul.f32 %v2713_v49, %v5593_v33  ;;  %v4139_v33 = vpop.eup %4138 }
 0x543   : >> { %3829 = vmatpush3.bf16.msra.mxu1 %v3828_v11 }
 0x544   : >> { %v2537_v62 = vadd.f32 %v2535_v42, %v2533_v55  ;;  %3833 = vmatprep.subr.bf16.mxu1 %v4304_v19  ;;  %v2718_v61 = vadd.f32 %v2716_v43, %v2714_v36 }
 0x546   : >> { %v3831_v5 = vpack.c.bf16 %v2537_v62, %v2536_v50  ;;  %v2617_v27 = vpop.permute.xlu1 %2616  ;;  %v2626_v20 = vmul.f32 %v4133_v9, %v2537_v62  ;;  %3744 = vmatmul.mubr.msk.f32.vlgmr.msra.gmra.mrb[2].mxu1 %vm401_vm0, %v2447_v4  ;;  %v2629_v50 = vrot.slane %v5612_v57, 5  ;;  %v2807_v1 = vmul.f32 %v4139_v33, %v2718_v61 }
 0x547   : >> { %v2624_v51 = vmul.f32 %v2622_v13, %v2617_v27  ;;  %3757 = vmatprep.mubr.msk.f32.mxu1 %vm4305_vm7, %v4306_v6  ;;  %v4141_v13 = vpop.eup %4140 }
 0x548   : >> { %3832 = vmatpush3.bf16.msra.mxu0 %v3831_v5 }
 0x549   : >> { %v2628_v14 = vadd.f32 %v2626_v20, %v2624_v51  ;;  %3836 = vmatprep.subr.bf16.mxu0 %v4304_v19 }
 0x54b   : >> { %v3834_v56 = vpack.c.bf16 %v2628_v14, %v2627_v30  ;;  %v2708_v39 = vpop.permute.xlu1 %2707  ;;  %v2717_v24 = vmul.f32 %v4137_v45, %v2628_v14  ;;  %3751 = vmatmul.mubr.msk.f32.vlgmr.msra.gmra.mrb[4].mxu0 %vm401_vm0, %v2538_v35 }
 0x54c   : >> { %v2715_v26 = vmul.f32 %v2713_v49, %v2708_v39  ;;  %3764 = vmatprep.mubr.msk.f32.mxu0 %vm4305_vm7, %v4306_v6 }
 0x54d   : >> { %3835 = vmatpush3.bf16.msra.mxu1 %v3834_v56 }
 0x54e   : >> { %v2719_v0 = vadd.f32 %v2717_v24, %v2715_v26  ;;  %3839 = vmatprep.subr.bf16.mxu1 %v4304_v19  ;;  %v2811_v19 = vrot.slane %v5612_v57, 7  ;;  %v5915_v26 = vld [vmem:[#allocation11_spill] sm:$0xff] (%p1969_p11) }
 0x550   : >> { %v3837_v32 = vpack.c.bf16 %v2719_v0, %v2718_v61  ;;  %v2799_v41 = vpop.permute.xlu1 %2798  ;;  %v2808_v22 = vmul.f32 %v4141_v13, %v2719_v0  ;;  %3758 = vmatmul.mubr.msk.f32.vlgmr.msra.gmra.mrb[4].mxu1 %vm401_vm0, %v2629_v50  ;;  %v2809_v50 = vadd.f32 %v2807_v1, %v2805_v28   ;;  %v2976_v13 = vsub.f32 (%p1969_p11), 0.0, %v5915_v26  ;;  %v5917_v0 = vld [vmem:[#allocation13_spill] sm:$0xff] (%p1969_p11)  ;;  %v3168_v28 = vld [vmem:[%s5851_s10] sm:$0xff] (%p1969_p11) }
 0x551   : >> { %v2806_v54 = vmul.f32 %v2804_v48, %v2799_v41  ;;  %3771 = vmatprep.mubr.msk.f32.mxu1 %vm4305_vm7, %v4306_v6  ;;  %v5916_v48 = vld [vmem:[#allocation10_spill] sm:$0xff] (%p1969_p11)  ;;  %v2978_v1 = vsub.f32 (%p1969_p11), 0.0, %v5917_v0 }
 0x552   : >> { %3838 = vmatpush3.bf16.msra.mxu0 %v3837_v32  ;;  %v2977_v53 = vsub.f32 (%p1969_p11), 0.0, %v5916_v48  ;;  %v5918_v32 = vld [vmem:[#allocation12_spill] sm:$0xff] (%p1969_p11)  ;;  %v2992_v60 = vmul.f32 (%p1969_p11), 1.442695, %v2976_v13  ;;  %v3171_v13 = vld [vmem:[%s5851_s10 + $0x18] sm:$0xff] (%p1969_p11) }
 0x553   : >> { %v2810_v22 = vadd.f32 %v2808_v22, %v2806_v54   ;;  %v2979_v41 = vsub.f32 (%p1969_p11), 0.0, %v5918_v32  ;;  %v3169_v54 = vld [vmem:[%s5851_s10 + $0x8] sm:$0xff] (%p1969_p11) }
 0x554   : > { %4142 = vpow2.f32 (%p1969_p11), %v2992_v60 }
 0x555   : >> { %v3840_v8 = vpack.c.bf16 %v2810_v22, %v2809_v50  ;;  %3765 = vmatmul.mubr.msk.f32.vlgmr.msra.gmra.mrb[6].mxu0 %vm401_vm0, %v2720_v29  ;;  %v5919_v50 = vld [vmem:[#allocation15_spill] sm:$0xff] (%p1969_p11)  ;;  %v2994_v22 = vmul.f32 (%p1969_p11), 1.442695, %v2977_v53 }
 0x556   : > { %v2980_v29 = vsub.f32 (%p1969_p11), 0.0, %v5919_v50 }
 0x557   : >> { %3841 = vmatpush3.bf16.msra.mxu1 %v3840_v8  ;;  %v5920_v8 = vld [vmem:[#allocation14_spill] sm:$0xff] (%p1969_p11)  ;;  %4144 = vpow2.f32 (%p1969_p11), %v2994_v22 }
 0x55a   : >> { %3772 = vmatmul.mubr.msk.f32.vlgmr.msra.gmra.mrb[6].mxu1 %vm401_vm0, %v2811_v19  ;;  %v2981_v19 = vsub.f32 (%p1969_p11), 0.0, %v5920_v8 }
 0x60a   : >> { %v2243_v52 = vpop.f32.mrb[0].mxu0 }
 0x60b   : >> { %v3724_v21 = vpop.f32.mrb[1].mxu0 }
 0x60c   : > { %v3842_v21 = vpack.c.bf16 (%p1969_p11), %v3169_v54, %v3168_v28 }
 0x60e   : > { %3843 = vmatprep.subr.bf16.mxu0 (%p1969_p11), %v3842_v21  ;;  %3850 = vmatprep.subr.bf16.mxu1 (%p1969_p11), %v3842_v21 }
 0x60f   : >> { %v2334_v38 = vpop.f32.mrb[0].mxu1  ;;  %3845 = vmatpush3.bf16.msra.mxu0 (%p1969_p11), %v3842_v21  ;;  %3852 = vmatpush3.bf16.msra.mxu1 (%p1969_p11), %v3842_v21 }
 0x610   : >> { %v2885_v11 = vrot.slane %v2334_v38, 7  ;;  %v3731_v44 = vpop.f32.mrb[1].mxu1  ;;  %v2998_v38 = vmul.f32 (%p1969_p11), 1.442695, %v2979_v41 }
 0x612   : >> { %v2906_v42 = vsel %vm2905_vm8, %v2243_v52, %v2885_v11  ;;  %v2996_v52 = vmul.f32 (%p1969_p11), 1.442695, %v2978_v1  ;;  %v5922_v11 = vld [vmem:[#allocation16_spill] sm:$0xff] (%p1969_p11) }
 0x613   : > { %v2983_v44 = vsub.f32 (%p1969_p11), 0.0, %v5922_v11 }
 0x614   : >> { %v2425_v55 = vpop.f32.mrb[2].mxu0  ;;  %4146 = vpow2.f32 (%p1969_p11), %v2996_v52 }
 0x615   : >> { %v2888_v6 = vrot.slane %v2425_v55, 6  ;;  %v3738_v4 = vpop.f32.mrb[3].mxu0  ;;  %v5923_v55 = vld [vmem:[#allocation19_spill] sm:$0xff] (%p1969_p11)  ;;  %4148 = vpow2.f32 (%p1969_p11), %v2998_v38  ;;  %v5928_v38 = vld [vmem:[#allocation22_spill] sm:$0xff] (%p1969_p11) }
 0x616   : > { %v3002_v4 = vmul.f32 (%p1969_p11), 1.442695, %v2981_v19 }
 0x617   : >> { %v2908_v9 = vsel %vm2907_vm9, %v2906_v42, %v2888_v6  ;;  %v3000_v42 = vmul.f32 (%p1969_p11), 1.442695, %v2980_v29  ;;  %v2984_v6 = vsub.f32 (%p1969_p11), 0.0, %v5923_v55 }
 0x619   : >> { %v2516_v30 = vpop.f32.mrb[2].mxu1  ;;  %4150 = vpow2.f32 (%p1969_p11), %v3000_v42 }
 0x61a   : >> { %v2891_v49 = vrot.slane %v2516_v30, 5  ;;  %v3745_v18 = vpop.f32.mrb[3].mxu1  ;;  %4152 = vpow2.f32 (%p1969_p11), %v3002_v4  ;;  %v5929_v4 = vld [vmem:[#allocation25_spill] sm:$0xff] (%p1969_p11) }
 0x61b   : > { %v5925_v18 = vld [vmem:[#allocation21_spill] sm:$0xff] (%p1969_p11) }
 0x61c   : >> { %v2910_v57 = vsel %vm2909_vm10, %v2908_v9, %v2891_v49  ;;  %v5924_v9 = vld [vmem:[#allocation18_spill] sm:$0xff] (%p1969_p11)  ;;  %v3004_v49 = vmul.f32 (%p1969_p11), 1.442695, %v2982_v23 }
 0x61d   : > { %v2985_v30 = vsub.f32 (%p1969_p11), 0.0, %v5924_v9 }
 0x61e   : >> { %v2607_v62 = vpop.f32.mrb[4].mxu0  ;;  %4154 = vpow2.f32 (%p1969_p11), %v3004_v49 }
 0x61f   : >> { %v2894_v5 = vrot.slane %v2607_v62, 4  ;;  %v3752_v27 = vpop.f32.mrb[5].mxu0  ;;  %v3006_v62 = vmul.f32 (%p1969_p11), 1.442695, %v2983_v44  ;;  %v2989_v44 = vsub.f32 (%p1969_p11), 0.0, %v5928_v38 }
 0x621   : >> { %v2912_v20 = vsel %vm2911_vm11, %v2910_v57, %v2894_v5  ;;  %v2986_v57 = vsub.f32 (%p1969_p11), 0.0, %v5925_v18  ;;  %v5926_v5 = vld [vmem:[#allocation20_spill] sm:$0xff] (%p1969_p11)  ;;  %4156 = vpow2.f32 (%p1969_p11), %v3006_v62 }
 0x622   : > { %v2987_v27 = vsub.f32 (%p1969_p11), 0.0, %v5926_v5  ;;  %v5930_v62 = vld [vmem:[#allocation24_spill] sm:$0xff] (%p1969_p11) }
 0x623   : >> { %v2698_v36 = vpop.f32.mrb[4].mxu1 }
 0x624   : >> { %v2897_v43 = vrot.slane %v2698_v36, 3  ;;  %v3759_v51 = vpop.f32.mrb[5].mxu1  ;;  %v5927_v36 = vld [vmem:[#allocation23_spill] sm:$0xff] (%p1969_p11) }
 0x625   : > { %v3010_v51 = vmul.f32 (%p1969_p11), 1.442695, %v2985_v30  ;;  %v2990_v30 = vsub.f32 (%p1969_p11), 0.0, %v5929_v4 }
 0x626   : >> { %v2914_v35 = vsel %vm2913_vm12, %v2912_v20, %v2897_v43  ;;  %v3008_v20 = vmul.f32 (%p1969_p11), 1.442695, %v2984_v6  ;;  %v2988_v43 = vsub.f32 (%p1969_p11), 0.0, %v5927_v36 }
 0x628   : >> { %v2789_v45 = vpop.f32.mrb[6].mxu0  ;;  %4158 = vpow2.f32 (%p1969_p11), %v3008_v20 }
 0x629   : >> { %v2900_v58 = vrot.slane %v2789_v45, 2  ;;  %v3766_v14 = vpop.f32.mrb[7].mxu0  ;;  %v3014_v45 = vmul.f32 (%p1969_p11), 1.442695, %v2987_v27  ;;  %4160 = vpow2.f32 (%p1969_p11), %v3010_v51  ;;  %v2991_v27 = vsub.f32 (%p1969_p11), 0.0, %v5930_v62 }
 0x62a   : > { %v4143_v14 = vpop.eup (%p1969_p11), %4142 }
 0x62b   : >> { %v2916_v61 = vsel %vm2915_vm13, %v2914_v35, %v2900_v58  ;;  %1971 = sbr.rel (!%p1969_p11) target bundleno = 1036 (0x40c), region = 111  ;;  %v3012_v35 = vmul.f32 (%p1969_p11), 1.442695, %v2986_v57  ;;  %v3016_v58 = vmul.f32 (%p1969_p11), 1.442695, %v2988_v43 }
 0x62d   : >> { %v2880_v56 = vpop.f32.mrb[6].mxu1  ;;  %4162 = vpow2.f32 (%p1969_p11), %v3012_v35  ;;  %v3018_v35 = vmul.f32 (%p1969_p11), 1.442695, %v2989_v44 }
 0x62e   : >> { %v2903_v39 = vrot.slane %v2880_v56, 1  ;;  %v3773_v24 = vpop.f32.mrb[7].mxu1  ;;  %v3024_v56 = vadd.f32 (%p1969_p11), 1.0, %v4143_v14  ;;  %4164 = vpow2.f32 (%p1969_p11), %v3014_v45 }
 0x62f   : > { %4166 = vpow2.f32 (%p1969_p11), %v3016_v58  ;;  %v3020_v58 = vmul.f32 (%p1969_p11), 1.442695, %v2990_v30 }
 0x630   : >> { %v2918_v33 = vsel %vm2917_vm14, %v2916_v61, %v2903_v39  ;;  %v4145_v61 = vpop.eup (%p1969_p11), %4144  ;;  %4168 = vrcp.f32 (%p1969_p11), %v3024_v56  ;;  %v3022_v56 = vmul.f32 (%p1969_p11), 1.442695, %v2991_v27 }
 0x631   : >> { %2920 = vst.msk [vmem:[%s2919_s16] sm:$0xff] %vm1428_vm4, %v2918_v33  ;;  %v4147_v39 = vpop.eup (%p1969_p11), %4146  ;;  %v3025_v24 = vadd.f32 (%p1969_p11), 1.0, %v4145_v61  ;;  %v3170_v33 = vld [vmem:[%s5851_s10 + $0x10] sm:$0xff] (%p1969_p11) }
 0x632   : > { %v4149_v53 = vpop.eup %4148  ;;  %v3026_v1 = vadd.f32 1.0, %v4147_v39  ;;  %v3846_v41 = vpack.c.bf16 %v3171_v13, %v3170_v33 }
 0x633   : > { %v4151_v28 = vpop.eup %4150  ;;  %4170 = vrcp.f32 %v3025_v24  ;;  %v3027_v54 = vadd.f32 1.0, %v4149_v53 }
 0x634   : > { %v4153_v29 = vpop.eup %4152  ;;  %4172 = vrcp.f32 %v3026_v1  ;;  %v3028_v19 = vadd.f32 1.0, %v4151_v28  ;;  %3847 = vmatprep.subr.bf16.mxu0 %v3846_v41  ;;  %3851 = vmatprep.subr.bf16.mxu1 %v3846_v41 }
 0x635   : > { %v4155_v23 = vpop.eup %4154  ;;  %4174 = vrcp.f32 %v3027_v54  ;;  %v3029_v60 = vadd.f32 1.0, %v4153_v29  ;;  %3849 = vmatpush3.bf16.msra.mxu0 %v3846_v41  ;;  %3853 = vmatpush3.bf16.msra.mxu1 %v3846_v41 }
 0x636   : > { %v4157_v22 = vpop.eup %4156  ;;  %4176 = vrcp.f32 %v3028_v19  ;;  %v3030_v52 = vadd.f32 1.0, %v4155_v23 }
 0x637   : > { %v4159_v21 = vpop.eup %4158  ;;  %4178 = vrcp.f32 %v3029_v60  ;;  %v3031_v6 = vadd.f32 1.0, %v4157_v22 }
 0x638   : > { %v4161_v42 = vpop.eup %4160  ;;  %v3032_v57 = vadd.f32 1.0, %v4159_v21  ;;  %4180 = vrcp.f32 %v3030_v52 }
 0x639   : > { %v4163_v49 = vpop.eup %4162  ;;  %v3033_v43 = vadd.f32 1.0, %v4161_v42  ;;  %4182 = vrcp.f32 %v3031_v6 }
 0x63a   : > { %v4165_v20 = vpop.eup %4164  ;;  %4184 = vrcp.f32 %v3032_v57  ;;  %v3034_v24 = vadd.f32 1.0, %v4163_v49 }
 0x63b   : > { %v4167_v51 = vpop.eup %4166  ;;  %4186 = vrcp.f32 %v3033_v43  ;;  %v3035_v41 = vadd.f32 1.0, %v4165_v20 }
 0x63c   : > { %v4169_v45 = vpop.eup %4168  ;;  %4188 = vpow2.f32 %v3018_v35  ;;  %v3036_v54 = vadd.f32 1.0, %v4167_v51 }
 0x63d   : > { %v4171_v14 = vpop.eup %4170  ;;  %v3072_v61 = vmul.f32 %v4169_v45, %v5915_v26  ;;  %4190 = vpow2.f32 %v3020_v58  ;;  %v2923_v58 = vld [vmem:[#allocation6 + $0x10] sm:$0xff] }
 0x63e   : > { %v4173_v39 = vpop.eup %4172  ;;  %v3073_v13 = vmul.f32 %v4171_v14, %v5916_v48  ;;  %4192 = vpow2.f32 %v3022_v56  ;;  %v2922_v14 = vld [vmem:[#allocation6 + $0x8] sm:$0xff] }
 0x63f   : > { %v4175_v33 = vpop.eup %4174  ;;  %3104 = vrot.lane.b32.xlu0 %v3072_v61, %s4294_s30  ;;  %v3074_v53 = vmul.f32 %v4173_v39, %v5917_v0  ;;  %4194 = vrcp.f32 %v3034_v24  ;;  %v2924_v24 = vld [vmem:[#allocation6 + $0x18] sm:$0xff] }
 0x640   : > { %v4177_v1 = vpop.eup %4176  ;;  %v3075_v26 = vmul.f32 %v4175_v33, %v5918_v32  ;;  %4196 = vrcp.f32 %v3035_v41 }
 0x641   : > { %3108 = vrot.lane.b32.xlu1 %v3074_v53, %s4294_s30  ;;  %v4179_v28 = vpop.eup %4178  ;;  %v3076_v29 = vmul.f32 %v4177_v1, %v5919_v50  ;;  %4198 = vrcp.f32 %v3036_v54  ;;  %v2925_v1 = vld [vmem:[#allocation6 + $0x20] sm:$0xff] }
 0x642   : > { %v4181_v19 = vpop.eup %4180  ;;  %v3077_v48 = vmul.f32 %v4179_v28, %v5920_v8  ;;  %v2926_v28 = vld [vmem:[#allocation6 + $0x28] sm:$0xff] }
 0x643   : > { %3106 = vrot.lane.b32.xlu0 %v3073_v13, %s4294_s30  ;;  %v4183_v0 = vpop.eup %4182  ;;  %v3078_v32 = vmul.f32 %v4181_v19, %v5921_v63 }
 0x644   : > { %v4185_v23 = vpop.eup %4184  ;;  %v3079_v52 = vmul.f32 %v4183_v0, %v5922_v11 }
 0x645   : > { %3110 = vrot.lane.b32.xlu1 %v3075_v26, %s4294_s30  ;;  %v4187_v60 = vpop.eup %4186  ;;  %v3080_v8 = vmul.f32 %v4185_v23, %v5923_v55 }
 0x646   : > { %v4189_v22 = vpop.eup %4188  ;;  %v3081_v63 = vmul.f32 %v4187_v60, %v5924_v9 }
 0x647   : > { %3112 = vrot.lane.b32.xlu0 %v3076_v29, %s4294_s30  ;;  %v4191_v50 = vpop.eup %4190  ;;  %v3037_v21 = vadd.f32 1.0, %v4189_v22 }
 0x648   : > { %v4193_v44 = vpop.eup %4192  ;;  %v3038_v42 = vadd.f32 1.0, %v4191_v50 }
 0x649   : > { %3114 = vrot.lane.b32.xlu1 %v3077_v48, %s4294_s30  ;;  %v4195_v6 = vpop.eup %4194  ;;  %4200 = vrcp.f32 %v3037_v21  ;;  %v3039_v30 = vadd.f32 1.0, %v4193_v44  ;;  %v2927_v48 = vld [vmem:[#allocation6 + $0x30] sm:$0xff] }
 0x64a   : > { %4202 = vrcp.f32 %v3038_v42  ;;  %v4197_v49 = vpop.eup %4196  ;;  %v3082_v11 = vmul.f32 %v4195_v6, %v5925_v18  ;;  %v2930_v42 = vld [vmem:[#allocation6 + $0x48] sm:$0xff] }
 0x64b   : > { %3116 = vrot.lane.b32.xlu0 %v3078_v32, %s4294_s30  ;;  %4204 = vrcp.f32 %v3039_v30  ;;  %v4199_v57 = vpop.eup %4198  ;;  %v3083_v55 = vmul.f32 %v4197_v49, %v5926_v5  ;;  %v5737_v5 = vld [vmem:[%s5850_s9] ss:$0 sm:$0xff]  ;;  %v2928_v32 = vld [vmem:[#allocation6 + $0x38] sm:$0xff] }
 0x64c   : > { %v3084_v27 = vmul.f32 %v4199_v57, %v5927_v36  ;;  %v2944_v36 = vmul.f32 %v5737_v5, %v5173_v12  ;;  %v2947_v61 = vmul.f32 %v5737_v5, %v5188_v3  ;;  %v2948_v12 = vmul.f32 %v5737_v5, %v5191_v31 }
 0x64d   : > { %3118 = vrot.lane.b32.xlu1 %v3079_v52, %s4294_s30  ;;  %v2950_v29 = vmul.f32 %v5737_v5, %v5201_v37  ;;  %v2951_v23 = vmul.f32 %v5737_v5, %v5208_v40  ;;  %v2952_v52 = vmul.f32 %v5737_v5, %v5211_v10  ;;  %v2929_v37 = vld [vmem:[#allocation6 + $0x40] sm:$0xff]  ;;  %v2931_v10 = vld [vmem:[#allocation6 + $0x50] sm:$0xff] }
 0x64e   : > { %v2964_v54 = vadd.f32 %v2948_v12, %v2925_v1 }
 0x64f   : > { %3120 = vrot.lane.b32.xlu0 %v3080_v8, %s4294_s30  ;;  %v2966_v22 = vadd.f32 %v2950_v29, %v2927_v48  ;;  %v2967_v44 = vadd.f32 %v2951_v23, %v2928_v32  ;;  %v2953_v8 = vmul.f32 %v5737_v5, %v5218_v7  ;;  %v2968_v30 = vadd.f32 %v2952_v52, %v2929_v37 }
 0x651   : > { %3122 = vrot.lane.b32.xlu1 %v3081_v63, %s4294_s30  ;;  %v2954_v63 = vmul.f32 %v5737_v5, %v5221_v34  ;;  %v2969_v57 = vadd.f32 %v2953_v8, %v2930_v42  ;;  %v2933_v34 = vld [vmem:[#allocation6 + $0x60] sm:$0xff] }
 0x653   : > { %3124 = vrot.lane.b32.xlu0 %v3082_v11, %s4294_s30  ;;  %v4201_v20 = vpop.eup %4200 }
 0x654   : > { %v4203_v9 = vpop.eup %4202  ;;  %v3085_v43 = vmul.f32 %v4201_v20, %v5928_v38  ;;  %v2921_v38 = vld [vmem:[#allocation6] sm:$0xff] }
 0x655   : > { %3126 = vrot.lane.b32.xlu1 %v3083_v55, %s4294_s30  ;;  %v4205_v51 = vpop.eup %4204  ;;  %v3086_v18 = vmul.f32 %v4203_v9, %v5929_v4  ;;  %v2946_v4 = vmul.f32 %v5737_v5, %v5181_v46  ;;  %v2960_v45 = vadd.f32 %v2944_v36, %v2921_v38  ;;  %v2963_v46 = vadd.f32 %v2947_v61, %v2924_v24  ;;  %v2934_v38 = vld [vmem:[#allocation6 + $0x68] sm:$0xff] }
 0x656   : > { %v3087_v35 = vmul.f32 %v4205_v51, %v5930_v62  ;;  %v2945_v62 = vmul.f32 %v5737_v5, %v5176_v15  ;;  %v2949_v15 = vmul.f32 %v5737_v5, %v5198_v47  ;;  %v2955_v55 = vmul.f32 %v5737_v5, %v5228_v59 }
 0x657   : > { %3128 = vrot.lane.b32.xlu0 %v3084_v27, %s4294_s30  ;;  %v2962_v39 = vadd.f32 %v2946_v4, %v2923_v58  ;;  %v2932_v27 = vld [vmem:[#allocation6 + $0x58] sm:$0xff]  ;;  %v2970_v9 = vadd.f32 %v2954_v63, %v2931_v10  ;;  %v2957_v59 = vmul.f32 %v5737_v5, %v5238_v16  ;;  %v2935_v58 = vld [vmem:[#allocation6 + $0x70] sm:$0xff] }
 0x658   : > { %v2961_v13 = vadd.f32 %v2945_v62, %v2922_v14  ;;  %v2965_v0 = vadd.f32 %v2949_v15, %v2926_v28  ;;  %v2936_v16 = vld [vmem:[#allocation6 + $0x78] sm:$0xff] }
 0x659   : > { %3130 = vrot.lane.b32.xlu1 %v3085_v43, %s4294_s30  ;;  %v2956_v43 = vmul.f32 %v5737_v5, %v5231_v17  ;;  %v2958_v17 = vmul.f32 %v5737_v5, %v5241_v2  ;;  %v2973_v61 = vadd.f32 %v2957_v59, %v2934_v38 }
 0x65b   : > { %3132 = vrot.lane.b32.xlu0 %v3086_v18, %s4294_s30 }
 0x65d   : > { %3134 = vrot.lane.b32.xlu1 %v3087_v35, %s4294_s30  ;;  %v2971_v35 = vadd.f32 %v2955_v55, %v2932_v27  ;;  %s3575_s30 = sshll.u32 %s4392_s21, 8  ;;  %s4308_s21 = smov [#allocation7]  }
 0x65e   : > { %s5793_s16 = scalar_lea.hbm %s5852_s11, %s3575_s30  ;;  %s4210_s13 = sshll.u32 %s4308_s21, 4  ;;  %s4211_s13 = int_to_ptr.vmem [resolvable:$false] %s4210_s13 }
 0x65f   : > { %s4212_s30 = scalar_lea.vmem %s4211_s13, 512  ;;  %p4213_p1 = scmp.lt.s32.totalorder %s5795_s14, %s4211_s13 }
 0x660   : > { %p4214_p2 = scmp.lt.s32.totalorder %s4212_s30, %s4206_s12 }
 0x662   : > { %p4215_p3 = por %p4214_p2, %p4213_p1 }
 0x664   : > { %p4216_p4 = pnand %p4215_p3, %p4209_p0 }
 0x6b1   : > { %v3105_v56 = vpop.permute.xlu0 %3104 }
 0x6b2   : > { %v3152_v33 = vmul.f32 %v3105_v56, %v2960_v45  ;;  %v2972_v45 = vadd.f32 %v2956_v43, %v2933_v34  ;;  %v2959_v56 = vmul.f32 %v5737_v5, %v5248_v25 }
 0x6b3   : > { %v3109_v53 = vpop.permute.xlu1 %3108 }
 0x6b4   : > { %3782 = vmatprep.mubr.msk.f32.mxu0 %vm1428_vm4, %v3152_v33  ;;  %v3154_v26 = vmul.f32 %v3109_v53, %v2962_v39  ;;  %v2974_v33 = vadd.f32 %v2958_v17, %v2935_v58  ;;  %v2975_v2 = vadd.f32 %v2959_v56, %v2936_v16 }
 0x6b5   : > { %v3107_v41 = vpop.permute.xlu0 %3106 }
 0x6b6   : > { %v3153_v3 = vmul.f32 %v3107_v41, %v2961_v13 }
 0x6b7   : > { %v3111_v19 = vpop.permute.xlu1 %3110 }
 0x6b8   : > { %3783 = vmatmul.mubr.msk.f32.vlgmr.msra.gmra.mrb[0].mxu0 %vm1428_vm4, %v3153_v3  ;;  %v3155_v31 = vmul.f32 %v3111_v19, %v2963_v46 }
 0x6b9   : > { %3785 = vmatprep.mubr.msk.f32.mxu0 %vm1428_vm4, %v3154_v26  ;;  %v3113_v47 = vpop.permute.xlu0 %3112 }
 0x6ba   : > { %v3156_v60 = vmul.f32 %v3113_v47, %v2964_v54 }
 0x6bb   : > { %v3115_v50 = vpop.permute.xlu1 %3114 }
 0x6bc   : > { %3786 = vmatmul.mubr.msk.f32.gmra.mrb[2].mxu0 %vm1428_vm4, %v3155_v31  ;;  %v3157_v21 = vmul.f32 %v3115_v50, %v2965_v0 }
 0x6bd   : > { %3788 = vmatprep.mubr.msk.f32.mxu0 %vm1428_vm4, %v3156_v60  ;;  %v3117_v40 = vpop.permute.xlu0 %3116 }
 0x6be   : > { %v3158_v6 = vmul.f32 %v3117_v40, %v2966_v22 }
 0x6bf   : > { %v3119_v49 = vpop.permute.xlu1 %3118 }
 0x6c0   : > { %3789 = vmatmul.mubr.msk.f32.gmra.mrb[4].mxu0 %vm1428_vm4, %v3157_v21  ;;  %v3159_v11 = vmul.f32 %v3119_v49, %v2967_v44 }
 0x6c1   : > { %3791 = vmatprep.mubr.msk.f32.mxu0 %vm1428_vm4, %v3158_v6  ;;  %v3121_v7 = vpop.permute.xlu0 %3120 }
 0x6c2   : > { %v3160_v20 = vmul.f32 %v3121_v7, %v2968_v30 }
 0x6c3   : > { %v3123_v51 = vpop.permute.xlu1 %3122 }
 0x6c4   : > { %3792 = vmatmul.mubr.msk.f32.gmra.mrb[6].mxu0 %vm1428_vm4, %v3159_v11  ;;  %v3161_v18 = vmul.f32 %v3123_v51, %v2969_v57  ;;  %3794 = vmatprep.mubr.msk.f32.mxu1 %vm1428_vm4, %v3160_v20 }
 0x6c5   : > { %v3125_v36 = vpop.permute.xlu0 %3124 }
 0x6c6   : > { %3795 = vmatmul.mubr.msk.f32.vlgmr.msra.gmra.mrb[0].mxu1 %vm1428_vm4, %v3161_v18  ;;  %v3162_v4 = vmul.f32 %v3125_v36, %v2970_v9 }
 0x6c7   : > { %v3127_v62 = vpop.permute.xlu1 %3126 }
 0x6c8   : > { %v3163_v14 = vmul.f32 %v3127_v62, %v2971_v35  ;;  %3797 = vmatprep.mubr.msk.f32.mxu1 %vm1428_vm4, %v3162_v4 }
 0x6c9   : > { %v3129_v39 = vpop.permute.xlu0 %3128 }
 0x6ca   : > { %3798 = vmatmul.mubr.msk.f32.gmra.mrb[2].mxu1 %vm1428_vm4, %v3163_v14  ;;  %v3164_v24 = vmul.f32 %v3129_v39, %v2972_v45 }
 0x6cb   : > { %v3131_v13 = vpop.permute.xlu1 %3130 }
 0x6cc   : > { %v3165_v12 = vmul.f32 %v3131_v13, %v2973_v61  ;;  %3800 = vmatprep.mubr.msk.f32.mxu1 %vm1428_vm4, %v3164_v24 }
 0x6cd   : > { %v3133_v53 = vpop.permute.xlu0 %3132 }
 0x6ce   : > { %3801 = vmatmul.mubr.msk.f32.gmra.mrb[4].mxu1 %vm1428_vm4, %v3165_v12  ;;  %v3166_v1 = vmul.f32 %v3133_v53, %v2974_v33 }
 0x6cf   : > { %v3135_v46 = vpop.permute.xlu1 %3134 }
 0x6d0   : > { %v3167_v15 = vmul.f32 %v3135_v46, %v2975_v2  ;;  %3803 = vmatprep.mubr.msk.f32.mxu1 %vm1428_vm4, %v3166_v1 }
 0x6d2   : > { %3804 = vmatmul.mubr.msk.f32.gmra.mrb[6].mxu1 %vm1428_vm4, %v3167_v15 }
 0x78b   : > { %v3784_v25 = vpop.f32.mrb[0].mxu0 }
 0x78c   : > { %v3286_v5 = vpop.f32.mrb[1].mxu0 }
 0x78d   : > { %3365 = vxpose.xlu0.b32.start [1/16] (narrow) %v3286_v5, 16 }
 0x78f   : > { %v3787_v41 = vpop.f32.mrb[2].mxu0 }
 0x790   : > { %v3296_v26 = vpop.f32.mrb[3].mxu0 }
 0x791   : > { %3366 = vxpose.xlu0.b32.cont [2/16] (narrow) %v3784_v25, 16 }
 0x793   : > { %v3790_v28 = vpop.f32.mrb[4].mxu0 }
 0x794   : > { %v3306_v3 = vpop.f32.mrb[5].mxu0 }
 0x795   : > { %3367 = vxpose.xlu0.b32.cont [3/16] (narrow) %v3296_v26, 16 }
 0x797   : > { %v3793_v54 = vpop.f32.mrb[6].mxu0 }
 0x798   : > { %v3316_v29 = vpop.f32.mrb[7].mxu0 }
 0x799   : > { %3368 = vxpose.xlu0.b32.cont [4/16] (narrow) %v3787_v41, 16  ;;  %v3796_v19 = vpop.f32.mrb[0].mxu1 }
 0x79a   : > { %v3326_v48 = vpop.f32.mrb[1].mxu1 }
 0x79d   : > { %3369 = vxpose.xlu0.b32.cont [5/16] (narrow) %v3306_v3, 16  ;;  %v3799_v31 = vpop.f32.mrb[2].mxu1 }
 0x79e   : > { %v3336_v0 = vpop.f32.mrb[3].mxu1 }
 0x7a1   : > { %3370 = vxpose.xlu0.b32.cont [6/16] (narrow) %v3790_v28, 16  ;;  %v3802_v23 = vpop.f32.mrb[4].mxu1 }
 0x7a2   : > { %v3346_v47 = vpop.f32.mrb[5].mxu1 }
 0x7a5   : > { %3371 = vxpose.xlu0.b32.cont [7/16] (narrow) %v3316_v29, 16  ;;  %v3805_v32 = vpop.f32.mrb[6].mxu1 }
 0x7a6   : > { %v3356_v60 = vpop.f32.mrb[7].mxu1 }
 0x7a9   : > { %3372 = vxpose.xlu0.b32.cont [8/16] (narrow) %v3793_v54, 16 }
 0x7ad   : > { %3373 = vxpose.xlu0.b32.cont [9/16] (narrow) %v3326_v48, 16 }
 0x7b1   : > { %3374 = vxpose.xlu0.b32.cont [10/16] (narrow) %v3796_v19, 16 }
 0x7b5   : > { %3375 = vxpose.xlu0.b32.cont [11/16] (narrow) %v3336_v0, 16 }
 0x7b9   : > { %3376 = vxpose.xlu0.b32.cont [12/16] (narrow) %v3799_v31, 16 }
 0x7bd   : > { %3377 = vxpose.xlu0.b32.cont [13/16] (narrow) %v3346_v47, 16 }
 0x7c1   : > { %3378 = vxpose.xlu0.b32.cont [14/16] (narrow) %v3802_v23, 16 }
 0x7c5   : > { %3379 = vxpose.xlu0.b32.cont [15/16] (narrow) %v3356_v60, 16 }
 0x7c9   : > { %3380 = vxpose.xlu0.b32.end [16/16] (narrow) %v3805_v32, 16 }
 0x80d   : > { %v3381_v22 = vpop.trf.xlu0 }
 0x80e   : > { %3397 = vst [vmem:[%s5526_s22] sm:$0xff] %v3381_v22 }
 0x811   : > { %v3382_v52 = vpop.trf.xlu0 }
 0x812   : > { %3398 = vst [vmem:[%s5526_s22 + $0x8] sm:$0xff] %v3382_v52 }
 0x813   : > { %4219 = shalt.err (!%p4216_p4)
}
 0x814   : > { %s4220_s25 = scalar_lea.hbm %s5793_s16, 256  ;;  %s4224_s15 = scalar_lea.hbm %s5852_s11, 512 }
 0x815   : > { %p4221_p7 = scmp.ne.s32.totalorder %s5793_s16, %s4220_s25  ;;  %p4225_p10 = scmp.lt.u32.totalorder %s5793_s16, %s5852_s11 }
 0x816   : > { %p4226_p11 = scmp.lt.u32.totalorder %s4224_s15, %s4220_s25  ;;  %p4228_p13 = scmp.lt.u32.totalorder %s4220_s25, %s5793_s16 }
 0x817   : > { %p4222_p8 = pnand %p4221_p7, %p4409_p5 }
 0x818   : > { %p4227_p12 = por %p4226_p11, %p4225_p10 }
 0x819   : > { %p4223_p9 = pneg %p4222_p8 }
 0x81a   : > { %p4229_p0 = por %p4228_p13, %p4227_p12 }
 0x81c   : > { %p4230_p1 = pnand %p4229_p0, %p4223_p9 }
 0x81e   : > { %4233 = shalt.err (!%p4230_p1)
}
 0x81f   : > { %s4309_s12 = smov 128   ;;  %s4310_s30 = smov 8  }
 0x820   : > { %3854 = dma.vmem_to_hbm [thread:$0]  (%p4409_p5), %s5795_s14, 256, %s5793_s16, %s5800_s29, %s4309_s12, %s4309_s12, %s4310_s30  }
 0x821 PF: > { %p3860_p2 = scmp.ge.s32.totalorder %s4280_s20, 2  ;;  %s3428_s22 = sand.u32 1, %s4268_s17  }
 0x822   : > { %s3429_s25 = scalar_lea.sflag [#allocation8], %s3428_s22 }
 0x823   : > { %p3857_p3 = pnand %p3860_p2, %p4413_p6 }
 0x825   : > { %4263 = dma.done.wait (!%p3857_p3), %s3429_s25, 256  }
 0x826   : > { %4265 = vsyncadd (!%p3857_p3), %s3429_s25, 4294967040  ;;  %p21_p4 = scmp.ge.s32.totalorder %s4396_s23, 4   ;;  %s5931_s17 = smov %s4272_s18 }
 0x827   : > { %s5932_s18 = smov %s4276_s19  ;;  %s5933_s19 = smov %s4407_s26 }
 0x828   : > { %s5934_s20 = smov %s4396_s23  ;;  %23 = sbr.rel (!%p21_p4) target bundleno = 3 (0x3), region = 122 }
 0x82f   :  { %3434 = vsyncpa [#allocation8], 1 }
 0x830   :  { %3436 = vsyncpa [#allocation8 + $0x1], 1 }

</bundles_post_ra>
